<compile_context>
chip_gen: v7x
topology: tpu7x:2x2x1
jax: 0.10.0
libtpu: 0.0.40
codegen_flags: <defaults>
</compile_context>

<pallas_src>
import jax
import jax.numpy as jnp
from jax.experimental import pallas as pl
from jax.experimental.pallas import tpu as pltpu

IN_FEATURES = 4096
HID1 = 512
HID2 = 32


def anomaly_detector_kernel(x_ref, w1_ref, b1_ref, w23_ref, b23_ref, o_ref):
    x = x_ref[...]
    if x.dtype != jnp.bfloat16:           # trace-time branch: only emitted for f32 callers
        x = x.astype(jnp.bfloat16)

    # fc1: native bf16 MXU pass, f32 accumulate, + bias + ReLU.
    # (dropout1 = identity at inference)
    h1 = jnp.dot(x, w1_ref[...], preferred_element_type=jnp.float32)
    h1 = jnp.maximum(h1 + b1_ref[...], 0.0)

    # fc2 + fc3 folded offline into a single f32 512-vector (dropout2 = identity):
    # VPU broadcast-mul + XLU lane reduction — no MXU pass, no bf16 recast of h1.
    h3 = jnp.sum(h1 * w23_ref[...], axis=-1, keepdims=True) + b23_ref[0, 0]

    # sigmoid: exp routes to the EUP slot; exp overflow for very negative h3
    # still rounds to 0.0 correctly in f32.
    o_ref[...] = 1.0 / (1.0 + jnp.exp(-h3))


def anomaly_detector(x, w1, b1, w2, b2, w3, b3, *, block_b=512):
    """Fused inference forward pass.  x: (B, 4096) bf16/f32 -> (B, 1) f32."""
    B, F = x.shape
    assert F == IN_FEATURES

    # Large weight matrix in bf16 (in real serving this happens once at
    # parameter-load time).  Biases stay f32.
    w1 = w1.astype(jnp.bfloat16)
    b1 = b1.astype(jnp.float32).reshape(1, HID1)

    # fc2+fc3 fold (inference-only): (512,32)@(32,1) -> (1,512), scalar bias.
    w3f = w3.astype(jnp.float32).reshape(HID2, 1)
    w23 = (w2.astype(jnp.float32) @ w3f).reshape(1, HID1)
    b23 = (b2.astype(jnp.float32).reshape(1, HID2) @ w3f
           + b3.astype(jnp.float32).reshape(1, 1))           # (1, 1) scalar

    # Batch tiling: 8-aligned block, pad B up to a multiple of it.
    block_b = max(8, min(block_b, ((B + 7) // 8) * 8))
    b_padded = ((B + block_b - 1) // block_b) * block_b
    if b_padded != B:
        x = jnp.pad(x, ((0, b_padded - B), (0, 0)))
    grid = (b_padded // block_b,)

    const = lambda i: (0, 0)                # invariant operands: same block every step
    resident = dict(pipeline_mode=pl.Buffered(1))   # single-buffered (DMA'd once)

    x_bytes = 2 if x.dtype == jnp.bfloat16 else 4
    cost = pl.CostEstimate(
        flops=2 * b_padded * (IN_FEATURES * HID1 + HID1),
        transcendentals=b_padded,
        bytes_accessed=(b_padded * IN_FEATURES * x_bytes     # x stream
                        + IN_FEATURES * HID1 * 2             # w1 (bf16, once)
                        + (2 * HID1 + 1) * 4                 # b1 + w23 + b23
                        + b_padded * 4),                     # out
    )

    out = pl.pallas_call(
        anomaly_detector_kernel,
        out_shape=jax.ShapeDtypeStruct((b_padded, 1), jnp.float32),
        grid=grid,
        in_specs=[
            pl.BlockSpec((block_b, IN_FEATURES), lambda i: (i, 0)),   # x tile (streams)
            pl.BlockSpec((IN_FEATURES, HID1), const, **resident),     # w1 (VMEM-resident)
            pl.BlockSpec((1, HID1), const, **resident),               # b1
            pl.BlockSpec((1, HID1), const, **resident),               # w23 (fc2·fc3)
            pl.BlockSpec(memory_space=pltpu.MemorySpace.SMEM),        # b23 scalar
        ],
        out_specs=pl.BlockSpec((block_b, 1), lambda i: (i, 0)),
        compiler_params=pltpu.CompilerParams(
            dimension_semantics=("parallel",),
            vmem_limit_bytes=40 * 1024 * 1024,
        ),
        cost_estimate=cost,
    )(x, w1, b1, w23, b23)

    return out[:B]


def xavier_normal(key, fan_in, fan_out):
    std = (2.0 / (fan_in + fan_out)) ** 0.5
    # stored transposed relative to torch, i.e. (in, out), so kernel does x @ W
    return std * jax.random.normal(key, (fan_in, fan_out), dtype=jnp.float32)


def linear_bias(key, fan_in, fan_out):
    bound = 1.0 / (fan_in ** 0.5)
    return jax.random.uniform(key, (1, fan_out), dtype=jnp.float32,
                              minval=-bound, maxval=bound)


if __name__ == "__main__":
    key = jax.random.PRNGKey(0)
    kx, k1, k2, k3, kb1, kb2, kb3 = jax.random.split(key, 7)

    # Small batch; deliberately not a multiple of the block to exercise the
    # padding + multi-step grid path (block_b=8 -> grid=(3,)).  The upstream
    # producer hands the kernel bf16 features (halves the x HBM stream).
    B = 20
    x = jax.random.normal(kx, (B, IN_FEATURES), dtype=jnp.float32)
    x = x.astype(jnp.bfloat16)

    w1 = xavier_normal(k1, IN_FEATURES, HID1)
    b1 = linear_bias(kb1, IN_FEATURES, HID1)
    w2 = xavier_normal(k2, HID1, HID2)
    b2 = linear_bias(kb2, HID1, HID2)
    w3 = xavier_normal(k3, HID2, 1)
    b3 = linear_bias(kb3, HID2, 1)

    out = anomaly_detector(x, w1, b1, w2, b2, w3, b3, block_b=8)
    out = jax.block_until_ready(out)

    # Plain-JAX reference mirroring the kernel's bf16 storage + fc2/fc3 fold.
    h = jnp.dot(x, w1.astype(jnp.bfloat16), preferred_element_type=jnp.float32)
    h = jnp.maximum(h + b1, 0.0)
    w23_ref = (w2 @ w3).reshape(1, HID1)
    b23_ref = (b2 @ w3)[0, 0] + b3[0, 0]
    h3 = jnp.sum(h * w23_ref, axis=-1, keepdims=True) + b23_ref
    ref = 1.0 / (1.0 + jnp.exp(-h3))

    assert out.shape == (B, 1)
    assert jnp.allclose(out, ref, atol=2e-3, rtol=2e-3), \
        float(jnp.max(jnp.abs(out - ref)))

    print("KERNEL_OK")
</pallas_src>

<mosaic_0001>
module attributes {stable_mosaic.version = 11 : i64} {
  func.func @anomaly_detector_kernel(%arg0: i32, %arg1: memref<8x4096xbf16, #tpu.memory_space<vmem>>, %arg2: memref<4096x512xbf16, #tpu.memory_space<vmem>>, %arg3: memref<1x512xf32, #tpu.memory_space<vmem>>, %arg4: memref<1x512xf32, #tpu.memory_space<vmem>>, %arg5: memref<1x1xf32, #tpu.memory_space<smem>>, %arg6: memref<8x1xf32, #tpu.memory_space<vmem>>) attributes {dimension_semantics = [#tpu.dimension_semantics<parallel>], iteration_bounds = array<i64: 3>, scalar_prefetch = 0 : i64, scratch_operands = 0 : i64, tpu.core_type = #tpu.core_type<tc>, window_params = [{transform_indices = @transform_0, window_bounds = array<i64: 8, 4096>}, {pipeline_mode = #tpu.pipeline_mode<synchronous>, transform_indices = @transform_1, window_bounds = array<i64: 4096, 512>}, {pipeline_mode = #tpu.pipeline_mode<synchronous>, transform_indices = @transform_2, window_bounds = array<i64: 1, 512>}, {pipeline_mode = #tpu.pipeline_mode<synchronous>, transform_indices = @transform_3, window_bounds = array<i64: 1, 512>}, {transform_indices = @transform_4, window_bounds = array<i64: 1, 1>}, {transform_indices = @transform_5, window_bounds = array<i64: 8, 1>}]} {
    %c0 = arith.constant 0 : index
    %c0_0 = arith.constant 0 : index
    %0 = vector.load %arg1[%c0, %c0_0] : memref<8x4096xbf16, #tpu.memory_space<vmem>>, vector<8x4096xbf16>
    %c0_1 = arith.constant 0 : index
    %c0_2 = arith.constant 0 : index
    %1 = vector.load %arg2[%c0_1, %c0_2] : memref<4096x512xbf16, #tpu.memory_space<vmem>>, vector<4096x512xbf16>
    %cst = arith.constant dense<0.000000e+00> : vector<8x512xf32>
    %2 = tpu.matmul %0, %1, %cst {dimension_numbers = #tpu.dot_dimension_numbers<[1], [0], [0], [1], [0, 0, 1, 1], [], []>} : vector<8x4096xbf16>, vector<4096x512xbf16>, vector<8x512xf32> -> vector<8x512xf32>
    %c0_3 = arith.constant 0 : index
    %c0_4 = arith.constant 0 : index
    %3 = vector.load %arg3[%c0_3, %c0_4] : memref<1x512xf32, #tpu.memory_space<vmem>>, vector<1x512xf32>
    %4 = vector.broadcast %3 : vector<1x512xf32> to vector<8x512xf32>
    %5 = arith.addf %2, %4 : vector<8x512xf32>
    %cst_5 = arith.constant 0.000000e+00 : f32
    %6 = vector.broadcast %cst_5 : f32 to vector<8x512xf32>
    %7 = arith.maximumf %5, %6 : vector<8x512xf32>
    %c0_6 = arith.constant 0 : index
    %c0_7 = arith.constant 0 : index
    %8 = vector.load %arg4[%c0_6, %c0_7] : memref<1x512xf32, #tpu.memory_space<vmem>>, vector<1x512xf32>
    %9 = vector.broadcast %8 : vector<1x512xf32> to vector<8x512xf32>
    %10 = arith.mulf %7, %9 : vector<8x512xf32>
    %cst_8 = arith.constant dense<0.000000e+00> : vector<8xf32>
    %11 = vector.multi_reduction <add>, %10, %cst_8 [1] : vector<8x512xf32> to vector<8xf32>
    %12 = vector.shape_cast %11 : vector<8xf32> to vector<8x1xf32>
    %c0_9 = arith.constant 0 : index
    %c0_10 = arith.constant 0 : index
    %13 = memref.load %arg5[%c0_9, %c0_10] : memref<1x1xf32, #tpu.memory_space<smem>>
    %14 = vector.broadcast %13 : f32 to vector<8x1xf32>
    %15 = arith.addf %12, %14 : vector<8x1xf32>
    %cst_11 = arith.constant 0.000000e+00 : f32
    %16 = vector.broadcast %cst_11 : f32 to vector<8x1xf32>
    %17 = arith.subf %16, %15 : vector<8x1xf32>
    %18 = math.exp %17 : vector<8x1xf32>
    %cst_12 = arith.constant 1.000000e+00 : f32
    %19 = vector.broadcast %cst_12 : f32 to vector<8x1xf32>
    %20 = arith.addf %19, %18 : vector<8x1xf32>
    %cst_13 = arith.constant 1.000000e+00 : f32
    %21 = vector.broadcast %cst_13 : f32 to vector<8x1xf32>
    %22 = arith.divf %21, %20 : vector<8x1xf32>
    %c0_14 = arith.constant 0 : index
    %c0_15 = arith.constant 0 : index
    %23 = vector.load %arg6[%c0_14, %c0_15] : memref<8x1xf32, #tpu.memory_space<vmem>>, vector<8x1xf32>
    tpu.vector_store %arg6[%c0_14, %c0_15], %22 {strides = array<i32>} : memref<8x1xf32, #tpu.memory_space<vmem>>, vector<8x1xf32>,
    return
  }
  func.func @transform_0(%arg0: i32) -> (i32, i32) {
    %c0_i32 = arith.constant 0 : i32
    %c0_i32_0 = arith.constant 0 : i32
    return %arg0, %c0_i32 : i32, i32
  }
  func.func @transform_1(%arg0: i32) -> (i32, i32) {
    %c0_i32 = arith.constant 0 : i32
    %c0_i32_0 = arith.constant 0 : i32
    %c0_i32_1 = arith.constant 0 : i32
    return %c0_i32, %c0_i32_0 : i32, i32
  }
  func.func @transform_2(%arg0: i32) -> (i32, i32) {
    %c0_i32 = arith.constant 0 : i32
    %c0_i32_0 = arith.constant 0 : i32
    %c0_i32_1 = arith.constant 0 : i32
    return %c0_i32, %c0_i32_0 : i32, i32
  }
  func.func @transform_3(%arg0: i32) -> (i32, i32) {
    %c0_i32 = arith.constant 0 : i32
    %c0_i32_0 = arith.constant 0 : i32
    %c0_i32_1 = arith.constant 0 : i32
    return %c0_i32, %c0_i32_0 : i32, i32
  }
  func.func @transform_4(%arg0: i32) -> (i32, i32) {
    %c0_i32 = arith.constant 0 : i32
    %c0_i32_0 = arith.constant 0 : i32
    %c0_i32_1 = arith.constant 0 : i32
    return %c0_i32, %c0_i32_0 : i32, i32
  }
  func.func @transform_5(%arg0: i32) -> (i32, i32) {
    %c0_i32 = arith.constant 0 : i32
    %c0_i32_0 = arith.constant 0 : i32
    return %arg0, %c0_i32 : i32, i32
  }
}

</mosaic_0001>

<bundles_post_ra>
// kernel: tpu_custom_call.1
= control target key start
LH: loop header
LB: loop body
LE: loop exit
PB: predicated region body
PF: predicated region fallthrough
CT: control target
= control target key end

     0   :  { %s11379_s0 = inlined_call_operand.hbm [shape: bf16[24,4096], index: 0, kind: input, shape index: {}]   ;;  %s11380_s1 = inlined_call_operand.hbm [shape: bf16[4096,512], index: 1, kind: input, shape index: {}]   ;;  %s11381_s2 = inlined_call_operand.hbm [shape: f32[1,512], index: 2, kind: input, shape index: {}]   ;;  %s11382_s3 = inlined_call_operand.hbm [shape: f32[1,512], index: 3, kind: input, shape index: {}]   ;;  %s11383_s4 = inlined_call_operand.<no memory space> [shape: f32[1,1], index: 4, kind: input, shape index: {}]   ;;  %s11384_s5 = inlined_call_operand.vmem [shape: f32[24,1], index: 5, kind: output, shape index: {}]  }
   0x1   :  { %10 = sst [smem:[#allocation2]] %s11383_s4 }
   0x2   :  { %11 = vsyncpa [#allocation4], 0 }
   0x3   :  { %13 = vsyncpa [#allocation4 + $0x1], 0 }
   0x4   :  { %14 = vsyncpa [#allocation6], 0 }
   0x5   :  { %15 = vsyncpa [#allocation9], 0  ;;  %s11067_s20 = smov 0   ;;  %s11069_s21 = smov 0  }
   0x6   :  { %s11071_s22 = smov 0   ;;  %s11073_s23 = smov 0  }
   0x7 LB: > { %s11086_s4 = sadd.s32 4294967295, %s11026_s23   ;;  %p41_p0 = scmp.ne.s32.totalorder %s11018_s21, %s11014_s20  ;;  %s11026_s23 = sphi %s11073_s23, %s11402_s23   ;;  %s11022_s22 = sphi %s11071_s22, %s11401_s22   ;;  %s11018_s21 = sphi %s11069_s21, %s11400_s21   ;;  %s11014_s20 = sphi %s11067_s20, %s11399_s20  }
   0x8   : > { %p11385_p1 = scmp.eq.s32.totalorder %s11086_s4, 0  ;;  %p8029_p2 = scmp.ge.s32.totalorder %s11026_s23, 1 }
   0x9   : > { %p162_p3 = scmp.lt.s32.totalorder %s11026_s23, 4  ;;  %s11028_s26 = smov [#allocation5]  }
   0xa   : > { %p11094_p4 = por %p11385_p1, %p41_p0  ;;  %s174_s27 = sshll.u32 %s11028_s26, 4  ;;  %s11102_s27 = int_to_ptr.vmem [resolvable:$true] %s174_s27 }
   0xb   : > { %p11098_p5 = pnand %p8029_p2, %p162_p3  ;;  %s11029_s29 = smov [#allocation7]  }
   0xc   : > { %s11388_s24 = scalar_select %p11094_p4, 1, 0 }
   0xd   : > { %s11389_s25 = scalar_select %p11098_p5, 1, 0 }
   0xe   : > { %p9240_p6 = pneg %p11098_p5  ;;  %s188_s30 = sshll.u32 %s11029_s29, 4  ;;  %s11112_s30 = int_to_ptr.vmem [resolvable:$true] %s188_s30 }
   0xf   : > { %s11030_s6 = smov [#allocation8]   ;;  %s10870_s10 = scalar_lea.hbm %s11380_s1, 131072 }
  0x10   : > { %p11108_p7 = pnand %p9240_p6, %p11385_p1  ;;  %s11114_s7 = sshll.u32 %s11030_s6, 4  ;;  %s200_s7 = int_to_ptr.vmem [resolvable:$true] %s11114_s7 }
  0x11   : > { %p10871_p8 = scmp.ne.s32.totalorder %s11380_s1, %s10870_s10  ;;  %p10877_p12 = scmp.lt.u32.totalorder %s10870_s10, %s11380_s1 }
  0x12   : > { %p11124_p9 = pneg %p11108_p7 }
  0x14   : > { %p10873_p10 = pnand %p11124_p9, %p10871_p8 }
  0x16   : > { %p10874_p11 = pneg %p10873_p10 }
  0x18   : > { %p10879_p13 = pnand %p10877_p12, %p10874_p11 }
  0x1a   : > { %10882 = shalt.err (!%p10879_p13)
}
  0x1b   : > { %s10883_s16 = scalar_lea.vmem %s11102_s27, 131072  ;;  %p10891_p6 = scmp.lt.s32.totalorder %s11102_s27, %s11102_s27 }
  0x1c   : > { %p10884_p0 = scmp.ne.s32.totalorder %s11102_s27, %s10883_s16  ;;  %p10892_p1 = scmp.lt.s32.totalorder %s10883_s16, %s10883_s16 }
  0x1e   : > { %p10886_p2 = pnand %p10884_p0, %p11124_p9  ;;  %p10893_p8 = por %p10892_p1, %p10891_p6 }
  0x20   : > { %p10887_p3 = pneg %p10886_p2 }
  0x22   : > { %p10894_p10 = pnand %p10893_p8, %p10887_p3 }
  0x24   : > { %10897 = shalt.err (!%p10894_p10)
}
  0x25   : > { %s11031_s17 = smov 256   ;;  %s11032_s18 = smov 16  }
  0x26   : > { %9243 = dma.hbm_to_vmem [thread:$0]  (!%p11108_p7), %s11380_s1, 131072, %s11102_s27, [#allocation6], %s11031_s17, %s11031_s17, %s11032_s18  }
  0x27   : > { %s10898_s6 = scalar_lea.hbm %s11381_s2, 64 }
  0x28   : > { %p10899_p1 = scmp.ne.s32.totalorder %s11381_s2, %s10898_s6  ;;  %p10905_p13 = scmp.lt.u32.totalorder %s10898_s6, %s11381_s2 }
  0x2a   : > { %p10901_p11 = pnand %p10899_p1, %p11124_p9 }
  0x2c   : > { %p10902_p12 = pneg %p10901_p11 }
  0x2e   : > { %p10907_p0 = pnand %p10905_p13, %p10902_p12 }
  0x30   : > { %10910 = shalt.err (!%p10907_p0)
}
  0x31   : > { %s10911_s27 = scalar_lea.vmem %s11112_s30, 64  ;;  %p10919_p8 = scmp.lt.s32.totalorder %s11112_s30, %s11112_s30 }
  0x32   : > { %p10912_p2 = scmp.ne.s32.totalorder %s11112_s30, %s10911_s27  ;;  %p10920_p10 = scmp.lt.s32.totalorder %s10911_s27, %s10911_s27 }
  0x34   : > { %p10914_p3 = pnand %p10912_p2, %p11124_p9  ;;  %p10921_p1 = por %p10920_p10, %p10919_p8 }
  0x36   : > { %p10915_p6 = pneg %p10914_p3 }
  0x38   : > { %p10922_p11 = pnand %p10921_p1, %p10915_p6 }
  0x3a   : > { %10925 = shalt.err (!%p10922_p11)
}
  0x3b   : > { %9246 = dma.hbm_to_vmem [thread:$0]  (!%p11108_p7), %s11381_s2, 64, %s11112_s30, [#allocation6]  }
  0x3c   : > { %s10926_s17 = scalar_lea.hbm %s11382_s3, 64 }
  0x3d   : > { %p10927_p12 = scmp.ne.s32.totalorder %s11382_s3, %s10926_s17  ;;  %p10933_p2 = scmp.lt.u32.totalorder %s10926_s17, %s11382_s3 }
  0x3f   : > { %p10929_p13 = pnand %p10927_p12, %p11124_p9 }
  0x41   : > { %p10930_p0 = pneg %p10929_p13 }
  0x43   : > { %p10935_p3 = pnand %p10933_p2, %p10930_p0 }
  0x45   : > { %10938 = shalt.err (!%p10935_p3)
}
  0x46   : > { %s10939_s29 = scalar_lea.vmem %s200_s7, 64  ;;  %p10947_p1 = scmp.lt.s32.totalorder %s200_s7, %s200_s7 }
  0x47   : > { %p10940_p6 = scmp.ne.s32.totalorder %s200_s7, %s10939_s29  ;;  %p10948_p11 = scmp.lt.s32.totalorder %s10939_s29, %s10939_s29 }
  0x49   : > { %p10942_p8 = pnand %p10940_p6, %p11124_p9  ;;  %p10949_p4 = por %p10948_p11, %p10947_p1 }
  0x4b   : > { %p10943_p10 = pneg %p10942_p8 }
  0x4d   : > { %p10950_p5 = pnand %p10949_p4, %p10943_p10 }
  0x4f   : > { %10953 = shalt.err (!%p10950_p5)
}
  0x50   : > { %9249 = dma.hbm_to_vmem [thread:$0]  (!%p11108_p7), %s11382_s3, 64, %s200_s7, [#allocation9]  }
  0x51   : > { %s11188_s13 = sadd.s32 1, %s11026_s23   ;;  %s28_s9 = sadd.s32 1, %s11022_s22 }
  0x52   : > { %s25_s8 = ssub.s32 %s11026_s23, %s11188_s13  ;;  %p35_p5 = scmp.ne.s32.totalorder %s11022_s22, %s11018_s21 }
  0x53   : > { %p26_p4 = scmp.eq.s32.totalorder %s25_s8, 0  ;;  %p36_p9 = scmp.eq.s32.totalorder %s11026_s23, 0 }
  0x54   : > { %p9257_p12 = scmp.lt.s32.totalorder %s11026_s23, 3  ;;  %s213_s10 = sand.u32 1, %s11022_s22  }
  0x55   : > { %s11198_s28 = scalar_select %p26_p4, %s11022_s22, %s28_s9  }
  0x56   : > { %p37_p13 = por %p36_p9, %p35_p5  ;;  %s8034_s11 = sshll.u32 %s213_s10, 7 }
  0x57   : > { %s9101_s27 = sshll.u32 %s11026_s23, 11  ;;  %s217_s7 = scalar_lea.vmem [#allocation3], %s8034_s11 }
  0x58   : > { %s11205_s15 = scalar_lea.hbm %s11379_s0, %s9101_s27  ;;  %s225_s16 = sshll.u32 %s217_s7, 4  ;;  %s11207_s16 = int_to_ptr.vmem [resolvable:$true] %s225_s16 }
  0x59   : > { %p11209_p7 = pnand %p9257_p12, %p37_p13  ;;  %s214_s23 = scalar_lea.sflag [#allocation4], %s213_s10 }
  0x5a   : > { %s10954_s18 = scalar_lea.hbm %s11205_s15, 2048  ;;  %s10959_s26 = scalar_lea.hbm %s11379_s0, 6144 }
  0x5b   : > { %p10955_p0 = scmp.ne.s32.totalorder %s11205_s15, %s10954_s18  ;;  %p10956_p2 = pneg %p11209_p7 }
  0x5c   : > { %p10960_p8 = scmp.lt.u32.totalorder %s11205_s15, %s11379_s0  ;;  %p10961_p10 = scmp.lt.u32.totalorder %s10959_s26, %s10954_s18 }
  0x5d   : > { %p10957_p3 = pnand %p10956_p2, %p10955_p0  ;;  %p10963_p11 = scmp.lt.u32.totalorder %s10954_s18, %s11205_s15 }
  0x5e   : > { %p10962_p1 = por %p10961_p10, %p10960_p8 }
  0x5f   : > { %p10958_p6 = pneg %p10957_p3 }
  0x60   : > { %p10964_p4 = por %p10963_p11, %p10962_p1 }
  0x62   : > { %p10965_p5 = pnand %p10964_p4, %p10958_p6 }
  0x64   : > { %10968 = shalt.err (!%p10965_p5)
}
  0x65   : > { %s10969_s6 = scalar_lea.vmem %s11207_s16, 2048  ;;  %s11033_s8 = smov [#allocation3]  }
  0x66   : > { %p10970_p9 = scmp.ne.s32.totalorder %s11207_s16, %s10969_s6  ;;  %s10974_s9 = sshll.u32 %s11033_s8, 4  ;;  %s10975_s9 = int_to_ptr.vmem [resolvable:$false] %s10974_s9 }
  0x67   : > { %s10976_s10 = scalar_lea.vmem %s10975_s9, 4096  ;;  %p10977_p0 = scmp.lt.s32.totalorder %s11207_s16, %s10975_s9 }
  0x68   : > { %p10972_p12 = pnand %p10970_p9, %p10956_p2  ;;  %p10978_p3 = scmp.lt.s32.totalorder %s10976_s10, %s10969_s6 }
  0x6a   : > { %p10973_p13 = pneg %p10972_p12  ;;  %p10979_p8 = por %p10978_p3, %p10977_p0 }
  0x6c   : > { %p10980_p10 = pnand %p10979_p8, %p10973_p13 }
  0x6e   : > { %10983 = shalt.err (!%p10980_p10)
}
  0x6f   : > { %9253 = dma.hbm_to_vmem [thread:$0]  (!%p11209_p7), %s11205_s15, 2048, %s11207_s16, %s214_s23  }
  0x70   : > { %p11393_p6 = scmp.ne.s32.totalorder %s11389_s25, 0 }
  0x71   : > { %s236_s11 = sand.u32 (!%p11393_p6), 1, %s11018_s21   ;;  %p11394_p2 = scmp.ne.s32.totalorder (!%p11393_p6), %s11388_s24, 0 }
  0x72   : > { %234 = sbr.rel (%p11393_p6) target bundleno = 1551 (0x60f), region = 40  ;;  %s8038_s27 = sshll.u32 (!%p11393_p6), %s236_s11, 7 }
  0x73   : > { %s237_s12 = scalar_lea.sflag (!%p11393_p6), [#allocation4], %s236_s11  ;;  %s11241_s14 = scalar_lea.vmem (!%p11393_p6), [#allocation3], %s8038_s27 }
  0x79   : > { %11001 = dma.done.wait (%p11394_p2), %s237_s12, 2048  }
  0x7a   : > { %11003 = vsyncadd (%p11394_p2), %s237_s12, 4294965248  ;;  %p11395_p1 = scmp.eq.s32.totalorder %s11086_s4, 0 }
  0x7c   : > { %11005 = dma.done.wait (%p11395_p1), [#allocation6], 131136   ;;  %p11396_p7 = pmov %p11395_p1 }
  0x7d   : > { %p11397_p11 = pmov %p11395_p1 }
  0x7e   : > { %11007 = vsyncadd (%p11396_p7), [#allocation6], 4294836160 }
  0x7f   : > { %11009 = dma.done.wait (%p11397_p11), [#allocation9], 64   ;;  %p11398_p4 = pmov %p11395_p1 }
  0x80   : > { %v9298_v0 = vld [vmem:[#allocation5 + $0x4] ss:$16 sps:$4 sm:$0xff]   ;;  %v9300_v1 = vld [vmem:[#allocation5 + $0xc] ss:$16 sps:$4 sm:$0xff]   ;;  %v9302_v2 = vld [vmem:[#allocation5] ss:$16 sps:$4 sm:$0xff]  }
  0x81   : > { %11011 = vsyncadd (%p11398_p4), [#allocation9], 4294967232  ;;  %6576 = vmatprep.subr.bf16.mxu0 %v9298_v0  ;;  %v9303_v3 = vld [vmem:[#allocation5 + $0x8] ss:$16 sps:$4 sm:$0xff]   ;;  %7232 = vmatprep.subr.bf16.mxu1 %v9300_v1  ;;  %v9304_v4 = vld [vmem:[#allocation5 + $0x24] ss:$16 sps:$4 sm:$0xff]  }
  0x82   : > { %6577 = vmatpush1.bf16.msra.mxu0 %v9302_v2  ;;  %7233 = vmatpush1.bf16.msra.mxu1 %v9303_v3  ;;  %v9306_v5 = vld [vmem:[#allocation5 + $0x2c] ss:$16 sps:$4 sm:$0xff]   ;;  %v9308_v6 = vld [vmem:[#allocation5 + $0x20] ss:$16 sps:$4 sm:$0xff]   ;;  %v9309_v7 = vld [vmem:[#allocation5 + $0x28] ss:$16 sps:$4 sm:$0xff]  }
  0x83   : > { %6578 = vmatprep.subr.bf16.mxu0 %v9304_v4  ;;  %7234 = vmatprep.subr.bf16.mxu1 %v9306_v5  ;;  %v9310_v8 = vld [vmem:[#allocation5 + $0x44] ss:$16 sps:$4 sm:$0xff]   ;;  %v9312_v9 = vld [vmem:[#allocation5 + $0x4c] ss:$16 sps:$4 sm:$0xff]   ;;  %v9314_v10 = vld [vmem:[#allocation5 + $0x40] ss:$16 sps:$4 sm:$0xff]  }
  0x84   : > { %v9315_v11 = vld [vmem:[#allocation5 + $0x48] ss:$16 sps:$4 sm:$0xff]   ;;  %v9316_v12 = vld [vmem:[#allocation5 + $0x64] ss:$16 sps:$4 sm:$0xff]   ;;  %v9318_v13 = vld [vmem:[#allocation5 + $0x6c] ss:$16 sps:$4 sm:$0xff]  }
  0x85   : > { %v9320_v14 = vld [vmem:[#allocation5 + $0x60] ss:$16 sps:$4 sm:$0xff]   ;;  %v9321_v15 = vld [vmem:[#allocation5 + $0x68] ss:$16 sps:$4 sm:$0xff]   ;;  %v9322_v16 = vld [vmem:[#allocation5 + $0x84] ss:$16 sps:$4 sm:$0xff]  }
  0x86   : > { %6579 = vmatpush1.bf16.msra.mxu0 %v9308_v6  ;;  %7235 = vmatpush1.bf16.msra.mxu1 %v9309_v7  ;;  %v9324_v17 = vld [vmem:[#allocation5 + $0x8c] ss:$16 sps:$4 sm:$0xff]   ;;  %v9326_v18 = vld [vmem:[#allocation5 + $0x80] ss:$16 sps:$4 sm:$0xff]   ;;  %v9327_v19 = vld [vmem:[#allocation5 + $0x88] ss:$16 sps:$4 sm:$0xff]  }
  0x87   : > { %6580 = vmatprep.subr.bf16.mxu0 %v9310_v8  ;;  %7236 = vmatprep.subr.bf16.mxu1 %v9312_v9  ;;  %v9328_v20 = vld [vmem:[#allocation5 + $0xa4] ss:$16 sps:$4 sm:$0xff]   ;;  %v9330_v21 = vld [vmem:[#allocation5 + $0xac] ss:$16 sps:$4 sm:$0xff]   ;;  %v9332_v22 = vld [vmem:[#allocation5 + $0xa0] ss:$16 sps:$4 sm:$0xff]  }
  0x88   : > { %v9333_v23 = vld [vmem:[#allocation5 + $0xa8] ss:$16 sps:$4 sm:$0xff]   ;;  %v9334_v24 = vld [vmem:[#allocation5 + $0xc4] ss:$16 sps:$4 sm:$0xff]   ;;  %v9336_v25 = vld [vmem:[#allocation5 + $0xcc] ss:$16 sps:$4 sm:$0xff]  }
  0x89   : > { %v9338_v26 = vld [vmem:[#allocation5 + $0xc0] ss:$16 sps:$4 sm:$0xff]   ;;  %v9339_v27 = vld [vmem:[#allocation5 + $0xc8] ss:$16 sps:$4 sm:$0xff]   ;;  %v9340_v28 = vld [vmem:[#allocation5 + $0xe4] ss:$16 sps:$4 sm:$0xff]  }
  0x8a   : > { %6581 = vmatpush1.bf16.msra.mxu0 %v9314_v10  ;;  %7237 = vmatpush1.bf16.msra.mxu1 %v9315_v11  ;;  %v9342_v29 = vld [vmem:[#allocation5 + $0xec] ss:$16 sps:$4 sm:$0xff]   ;;  %v9344_v30 = vld [vmem:[#allocation5 + $0xe0] ss:$16 sps:$4 sm:$0xff]   ;;  %v9345_v31 = vld [vmem:[#allocation5 + $0xe8] ss:$16 sps:$4 sm:$0xff]  }
  0x8b   : > { %6582 = vmatprep.subr.bf16.mxu0 %v9316_v12  ;;  %7238 = vmatprep.subr.bf16.mxu1 %v9318_v13  ;;  %v9346_v32 = vld [vmem:[#allocation5 + $0x104] ss:$16 sps:$4 sm:$0xff]   ;;  %v9348_v33 = vld [vmem:[#allocation5 + $0x10c] ss:$16 sps:$4 sm:$0xff]   ;;  %v9350_v34 = vld [vmem:[#allocation5 + $0x100] ss:$16 sps:$4 sm:$0xff]  }
  0x8c   : > { %v9351_v35 = vld [vmem:[#allocation5 + $0x108] ss:$16 sps:$4 sm:$0xff]   ;;  %v9352_v36 = vld [vmem:[#allocation5 + $0x124] ss:$16 sps:$4 sm:$0xff]   ;;  %v9354_v37 = vld [vmem:[#allocation5 + $0x12c] ss:$16 sps:$4 sm:$0xff]  }
  0x8d   : > { %v9356_v38 = vld [vmem:[#allocation5 + $0x120] ss:$16 sps:$4 sm:$0xff]   ;;  %v9357_v39 = vld [vmem:[#allocation5 + $0x128] ss:$16 sps:$4 sm:$0xff]   ;;  %v9358_v40 = vld [vmem:[#allocation5 + $0x144] ss:$16 sps:$4 sm:$0xff]  }
  0x8e   : > { %6583 = vmatpush1.bf16.msra.mxu0 %v9320_v14  ;;  %7239 = vmatpush1.bf16.msra.mxu1 %v9321_v15  ;;  %v9360_v41 = vld [vmem:[#allocation5 + $0x14c] ss:$16 sps:$4 sm:$0xff]   ;;  %v9362_v42 = vld [vmem:[#allocation5 + $0x140] ss:$16 sps:$4 sm:$0xff]   ;;  %v9363_v43 = vld [vmem:[#allocation5 + $0x148] ss:$16 sps:$4 sm:$0xff]  }
  0x8f   : > { %6584 = vmatprep.subr.bf16.mxu0 %v9322_v16  ;;  %7240 = vmatprep.subr.bf16.mxu1 %v9324_v17  ;;  %v9364_v44 = vld [vmem:[#allocation5 + $0x164] ss:$16 sps:$4 sm:$0xff]   ;;  %v9366_v45 = vld [vmem:[#allocation5 + $0x16c] ss:$16 sps:$4 sm:$0xff]   ;;  %v9368_v47 = vld [vmem:[#allocation5 + $0x160] ss:$16 sps:$4 sm:$0xff]  }
  0x90   : > { %v282_v46 = vld [vmem:[%s11241_s14] sm:$0xff]  ;;  %v9369_v49 = vld [vmem:[#allocation5 + $0x168] ss:$16 sps:$4 sm:$0xff]   ;;  %v9372_v51 = vld [vmem:[#allocation5 + $0x18c] ss:$16 sps:$4 sm:$0xff]   ;;  %s7923_s24 = sld [smem:[#allocation2]] }
  0x91   : > { %v8044_v48 = vcombine.high %v282_v46, %v282_v46  ;;  %v9370_v50 = vld [vmem:[#allocation5 + $0x184] ss:$16 sps:$4 sm:$0xff]   ;;  %v9374_v52 = vld [vmem:[#allocation5 + $0x180] ss:$16 sps:$4 sm:$0xff]   ;;  %v9375_v53 = vld [vmem:[#allocation5 + $0x188] ss:$16 sps:$4 sm:$0xff]   ;;  %v8043_v4 = vcombine.low %v282_v46, %v282_v46 }
  0x92   : > { %6585 = vmatpush1.bf16.msra.mxu0 %v9326_v18  ;;  %7241 = vmatpush1.bf16.msra.mxu1 %v9327_v19  ;;  %v9376_v54 = vld [vmem:[#allocation5 + $0x1a4] ss:$16 sps:$4 sm:$0xff]   ;;  %v9378_v55 = vld [vmem:[#allocation5 + $0x1ac] ss:$16 sps:$4 sm:$0xff]   ;;  %v9380_v56 = vld [vmem:[#allocation5 + $0x1a0] ss:$16 sps:$4 sm:$0xff]  }
  0x93   : > { %6586 = vmatprep.subr.bf16.mxu0 %v9328_v20  ;;  %7242 = vmatprep.subr.bf16.mxu1 %v9330_v21  ;;  %v9381_v57 = vld [vmem:[#allocation5 + $0x1a8] ss:$16 sps:$4 sm:$0xff]   ;;  %v9382_v58 = vld [vmem:[#allocation5 + $0x1c4] ss:$16 sps:$4 sm:$0xff]   ;;  %v9384_v59 = vld [vmem:[#allocation5 + $0x1cc] ss:$16 sps:$4 sm:$0xff]  }
  0x94   : > { %6608 = vmatprep.mubr.bf16.mxu0 %v8044_v48  ;;  %7264 = vmatprep.mubr.bf16.mxu1 %v8044_v48  ;;  %v9386_v60 = vld [vmem:[#allocation5 + $0x1c0] ss:$16 sps:$4 sm:$0xff]   ;;  %v9387_v61 = vld [vmem:[#allocation5 + $0x1c8] ss:$16 sps:$4 sm:$0xff]   ;;  %v9388_v62 = vld [vmem:[#allocation5 + $0x1e4] ss:$16 sps:$4 sm:$0xff]  }
  0x95   : > { %v9390_v63 = vld [vmem:[#allocation5 + $0x1ec] ss:$16 sps:$4 sm:$0xff]   ;;  %v9392_v0 = vld [vmem:[#allocation5 + $0x1e0] ss:$16 sps:$4 sm:$0xff]   ;;  %v9393_v1 = vld [vmem:[#allocation5 + $0x1e8] ss:$16 sps:$4 sm:$0xff]  }
  0x96   : > { %6587 = vmatpush1.bf16.msra.mxu0 %v9332_v22  ;;  %7243 = vmatpush1.bf16.msra.mxu1 %v9333_v23  ;;  %v9398_v2 = vld [vmem:[#allocation5 + $0x204] ss:$16 sps:$4 sm:$0xff]   ;;  %v9401_v3 = vld [vmem:[#allocation5 + $0x20c] ss:$16 sps:$4 sm:$0xff]   ;;  %v9396_v5 = vld [vmem:[#allocation5 + $0x200] ss:$16 sps:$4 sm:$0xff]  }
  0x97   : > { %6588 = vmatprep.subr.bf16.mxu0 %v9334_v24  ;;  %7244 = vmatprep.subr.bf16.mxu1 %v9336_v25  ;;  %v9399_v6 = vld [vmem:[#allocation5 + $0x208] ss:$16 sps:$4 sm:$0xff]   ;;  %v9404_v7 = vld [vmem:[#allocation5 + $0x224] ss:$16 sps:$4 sm:$0xff]   ;;  %v9407_v8 = vld [vmem:[#allocation5 + $0x22c] ss:$16 sps:$4 sm:$0xff]  }
  0x98   : > { %v9402_v9 = vld [vmem:[#allocation5 + $0x220] ss:$16 sps:$4 sm:$0xff]   ;;  %v9405_v10 = vld [vmem:[#allocation5 + $0x228] ss:$16 sps:$4 sm:$0xff]   ;;  %v9410_v11 = vld [vmem:[#allocation5 + $0x244] ss:$16 sps:$4 sm:$0xff]  }
  0x99   : > { %v9413_v12 = vld [vmem:[#allocation5 + $0x24c] ss:$16 sps:$4 sm:$0xff]   ;;  %v9408_v13 = vld [vmem:[#allocation5 + $0x240] ss:$16 sps:$4 sm:$0xff]   ;;  %v9411_v14 = vld [vmem:[#allocation5 + $0x248] ss:$16 sps:$4 sm:$0xff]  }
  0x9a   : > { %6589 = vmatpush1.bf16.msra.mxu0 %v9338_v26  ;;  %7245 = vmatpush1.bf16.msra.mxu1 %v9339_v27  ;;  %v9416_v15 = vld [vmem:[#allocation5 + $0x264] ss:$16 sps:$4 sm:$0xff]   ;;  %v9419_v16 = vld [vmem:[#allocation5 + $0x26c] ss:$16 sps:$4 sm:$0xff]   ;;  %v9414_v17 = vld [vmem:[#allocation5 + $0x260] ss:$16 sps:$4 sm:$0xff]  }
  0x9b   : > { %6590 = vmatprep.subr.bf16.mxu0 %v9340_v28  ;;  %7246 = vmatprep.subr.bf16.mxu1 %v9342_v29  ;;  %v9417_v18 = vld [vmem:[#allocation5 + $0x268] ss:$16 sps:$4 sm:$0xff]   ;;  %v9422_v19 = vld [vmem:[#allocation5 + $0x284] ss:$16 sps:$4 sm:$0xff]   ;;  %v9425_v20 = vld [vmem:[#allocation5 + $0x28c] ss:$16 sps:$4 sm:$0xff]  }
  0x9c   : > { %v9420_v21 = vld [vmem:[#allocation5 + $0x280] ss:$16 sps:$4 sm:$0xff]   ;;  %v9423_v22 = vld [vmem:[#allocation5 + $0x288] ss:$16 sps:$4 sm:$0xff]   ;;  %v9428_v23 = vld [vmem:[#allocation5 + $0x2a4] ss:$16 sps:$4 sm:$0xff]  }
  0x9d   : > { %v9431_v24 = vld [vmem:[#allocation5 + $0x2ac] ss:$16 sps:$4 sm:$0xff]   ;;  %v9426_v25 = vld [vmem:[#allocation5 + $0x2a0] ss:$16 sps:$4 sm:$0xff]   ;;  %v9429_v26 = vld [vmem:[#allocation5 + $0x2a8] ss:$16 sps:$4 sm:$0xff]  }
  0x9e   : > { %6591 = vmatpush1.bf16.msra.mxu0 %v9344_v30  ;;  %7247 = vmatpush1.bf16.msra.mxu1 %v9345_v31  ;;  %v9434_v27 = vld [vmem:[#allocation5 + $0x2c4] ss:$16 sps:$4 sm:$0xff]   ;;  %v9437_v28 = vld [vmem:[#allocation5 + $0x2cc] ss:$16 sps:$4 sm:$0xff]   ;;  %v9432_v31 = vld [vmem:[#allocation5 + $0x2c0] ss:$16 sps:$4 sm:$0xff]  }
  0x9f   : > { %6592 = vmatprep.subr.bf16.mxu0 %v9346_v32  ;;  %7248 = vmatprep.subr.bf16.mxu1 %v9348_v33  ;;  %v11257_v29 = vld [vmem:[%s11241_s14 + $0x8] sm:$0xff]  ;;  %v9440_v33 = vld [vmem:[#allocation5 + $0x2e4] ss:$16 sps:$4 sm:$0xff]   ;;  %p278_p5 = scmp.lt.s32.totalorder %s11086_s4, 2  ;;  %vm7932_vm0 = vcmask 7168  }
  0xa0   : > { %v8046_v30 = vcombine.high %v11257_v29, %v11257_v29  ;;  %v9435_v32 = vld [vmem:[#allocation5 + $0x2c8] ss:$16 sps:$4 sm:$0xff]   ;;  %v9461_v46 = vld [vmem:[#allocation5 + $0x34c] ss:$16 sps:$4 sm:$0xff]  }
  0xa1   : > { %v9459_v48 = vld [vmem:[#allocation5 + $0x348] ss:$16 sps:$4 sm:$0xff]   ;;  %s11404_s4 = smov (!%p278_p5, %s11086_s4), 2 }
  0xa2   : > { %6593 = vmatpush1.bf16.msra.mxu0 %v9350_v34  ;;  %7249 = vmatpush1.bf16.msra.mxu1 %v9351_v35  ;;  %v9443_v34 = vld [vmem:[#allocation5 + $0x2ec] ss:$16 sps:$4 sm:$0xff]   ;;  %v9438_v35 = vld [vmem:[#allocation5 + $0x2e0] ss:$16 sps:$4 sm:$0xff]   ;;  %s8042_s25 = sshll.u32 %s11404_s4, 3 }
  0xa3   : > { %6594 = vmatprep.subr.bf16.mxu0 %v9352_v36  ;;  %7250 = vmatprep.subr.bf16.mxu1 %v9354_v37  ;;  %v9441_v36 = vld [vmem:[#allocation5 + $0x2e8] ss:$16 sps:$4 sm:$0xff]   ;;  %v9446_v37 = vld [vmem:[#allocation5 + $0x304] ss:$16 sps:$4 sm:$0xff]   ;;  %s281_s16 = scalar_lea.vmem %s11384_s5, %s8042_s25 }
  0xa6   : > { %6595 = vmatpush1.bf16.msra.mxu0 %v9356_v38  ;;  %7251 = vmatpush1.bf16.msra.mxu1 %v9357_v39  ;;  %v9449_v38 = vld [vmem:[#allocation5 + $0x30c] ss:$16 sps:$4 sm:$0xff]   ;;  %v9444_v39 = vld [vmem:[#allocation5 + $0x300] ss:$16 sps:$4 sm:$0xff]  }
  0xa7   : > { %6596 = vmatprep.subr.bf16.mxu0 %v9358_v40  ;;  %7252 = vmatprep.subr.bf16.mxu1 %v9360_v41  ;;  %v9447_v40 = vld [vmem:[#allocation5 + $0x308] ss:$16 sps:$4 sm:$0xff]   ;;  %v9452_v41 = vld [vmem:[#allocation5 + $0x324] ss:$16 sps:$4 sm:$0xff]  }
  0xaa   : > { %6597 = vmatpush1.bf16.msra.mxu0 %v9362_v42  ;;  %7253 = vmatpush1.bf16.msra.mxu1 %v9363_v43  ;;  %v9455_v42 = vld [vmem:[#allocation5 + $0x32c] ss:$16 sps:$4 sm:$0xff]   ;;  %v9450_v43 = vld [vmem:[#allocation5 + $0x320] ss:$16 sps:$4 sm:$0xff]  }
  0xab   : > { %6598 = vmatprep.subr.bf16.mxu0 %v9364_v44  ;;  %7254 = vmatprep.subr.bf16.mxu1 %v9366_v45  ;;  %v9453_v44 = vld [vmem:[#allocation5 + $0x328] ss:$16 sps:$4 sm:$0xff]   ;;  %v9458_v45 = vld [vmem:[#allocation5 + $0x344] ss:$16 sps:$4 sm:$0xff]  }
  0xae   : > { %6599 = vmatpush1.bf16.msra.mxu0 %v9368_v47  ;;  %7255 = vmatpush1.bf16.msra.mxu1 %v9369_v49  ;;  %v9456_v47 = vld [vmem:[#allocation5 + $0x340] ss:$16 sps:$4 sm:$0xff]   ;;  %v9464_v49 = vld [vmem:[#allocation5 + $0x364] ss:$16 sps:$4 sm:$0xff]  }
  0xaf   : > { %6600 = vmatprep.subr.bf16.mxu0 %v9370_v50  ;;  %7256 = vmatprep.subr.bf16.mxu1 %v9372_v51  ;;  %v9467_v50 = vld [vmem:[#allocation5 + $0x36c] ss:$16 sps:$4 sm:$0xff]   ;;  %v9462_v51 = vld [vmem:[#allocation5 + $0x360] ss:$16 sps:$4 sm:$0xff]  }
  0xb2   : > { %6601 = vmatpush1.bf16.msra.mxu0 %v9374_v52  ;;  %7257 = vmatpush1.bf16.msra.mxu1 %v9375_v53  ;;  %v9465_v52 = vld [vmem:[#allocation5 + $0x368] ss:$16 sps:$4 sm:$0xff]   ;;  %v9470_v53 = vld [vmem:[#allocation5 + $0x384] ss:$16 sps:$4 sm:$0xff]  }
  0xb3   : > { %6602 = vmatprep.subr.bf16.mxu0 %v9376_v54  ;;  %7258 = vmatprep.subr.bf16.mxu1 %v9378_v55  ;;  %v9473_v54 = vld [vmem:[#allocation5 + $0x38c] ss:$16 sps:$4 sm:$0xff]   ;;  %v9468_v55 = vld [vmem:[#allocation5 + $0x380] ss:$16 sps:$4 sm:$0xff]  }
  0xb6   : > { %6603 = vmatpush1.bf16.msra.mxu0 %v9380_v56  ;;  %7259 = vmatpush1.bf16.msra.mxu1 %v9381_v57  ;;  %v9471_v56 = vld [vmem:[#allocation5 + $0x388] ss:$16 sps:$4 sm:$0xff]   ;;  %v9476_v57 = vld [vmem:[#allocation5 + $0x3a4] ss:$16 sps:$4 sm:$0xff]  }
  0xb7   : > { %6604 = vmatprep.subr.bf16.mxu0 %v9382_v58  ;;  %7260 = vmatprep.subr.bf16.mxu1 %v9384_v59  ;;  %v9479_v58 = vld [vmem:[#allocation5 + $0x3ac] ss:$16 sps:$4 sm:$0xff]   ;;  %v9474_v59 = vld [vmem:[#allocation5 + $0x3a0] ss:$16 sps:$4 sm:$0xff]  }
  0xba   : > { %6605 = vmatpush1.bf16.msra.mxu0 %v9386_v60  ;;  %7261 = vmatpush1.bf16.msra.mxu1 %v9387_v61  ;;  %v9477_v60 = vld [vmem:[#allocation5 + $0x3a8] ss:$16 sps:$4 sm:$0xff]   ;;  %v9482_v61 = vld [vmem:[#allocation5 + $0x3c4] ss:$16 sps:$4 sm:$0xff]  }
  0xbb   : > { %6606 = vmatprep.subr.bf16.mxu0 %v9388_v62  ;;  %7262 = vmatprep.subr.bf16.mxu1 %v9390_v63  ;;  %v9485_v62 = vld [vmem:[#allocation5 + $0x3cc] ss:$16 sps:$4 sm:$0xff]   ;;  %v9480_v63 = vld [vmem:[#allocation5 + $0x3c0] ss:$16 sps:$4 sm:$0xff]  }
  0xbe   : > { %6607 = vmatpush1.bf16.msra.mxu0 %v9392_v0  ;;  %7263 = vmatpush1.bf16.msra.mxu1 %v9393_v1  ;;  %v9483_v0 = vld [vmem:[#allocation5 + $0x3c8] ss:$16 sps:$4 sm:$0xff]   ;;  %v9488_v1 = vld [vmem:[#allocation5 + $0x3e4] ss:$16 sps:$4 sm:$0xff]  }
  0xbf   : > { %6617 = vmatprep.subr.bf16.mxu0 %v9398_v2  ;;  %7273 = vmatprep.subr.bf16.mxu1 %v9401_v3  ;;  %v9491_v2 = vld [vmem:[#allocation5 + $0x3ec] ss:$16 sps:$4 sm:$0xff]   ;;  %v9486_v3 = vld [vmem:[#allocation5 + $0x3e0] ss:$16 sps:$4 sm:$0xff]  }
  0xc1   : > { %6609 = vmatmul.mubr.bf16.vlgmr.msra.gmra.mrb[0].mxu0 %v8043_v4  ;;  %7265 = vmatmul.mubr.bf16.vlgmr.msra.gmra.mrb[0].mxu1 %v8043_v4  ;;  %v9489_v4 = vld [vmem:[#allocation5 + $0x3e8] ss:$16 sps:$4 sm:$0xff]  }
  0xc2   : > { %6618 = vmatpush1.bf16.msra.mxu0 %v9396_v5  ;;  %7274 = vmatpush1.bf16.msra.mxu1 %v9399_v6  ;;  %v9496_v5 = vld [vmem:[#allocation5 + $0x404] ss:$16 sps:$4 sm:$0xff]   ;;  %v9499_v6 = vld [vmem:[#allocation5 + $0x40c] ss:$16 sps:$4 sm:$0xff]  }
  0xc3   : > { %6619 = vmatprep.subr.bf16.mxu0 %v9404_v7  ;;  %7275 = vmatprep.subr.bf16.mxu1 %v9407_v8  ;;  %v8045_v7 = vcombine.low %v11257_v29, %v11257_v29  ;;  %v9494_v8 = vld [vmem:[#allocation5 + $0x400] ss:$16 sps:$4 sm:$0xff]   ;;  %v9529_v29 = vld [vmem:[#allocation5 + $0x4ac] ss:$16 sps:$4 sm:$0xff]  }
  0xc4   : > { %6649 = vmatprep.mubr.bf16.mxu0 %v8046_v30  ;;  %7305 = vmatprep.mubr.bf16.mxu1 %v8046_v30  ;;  %v9524_v30 = vld [vmem:[#allocation5 + $0x4a0] ss:$16 sps:$4 sm:$0xff]  }
  0xc6   : > { %6620 = vmatpush1.bf16.msra.mxu0 %v9402_v9  ;;  %7276 = vmatpush1.bf16.msra.mxu1 %v9405_v10  ;;  %v9497_v9 = vld [vmem:[#allocation5 + $0x408] ss:$16 sps:$4 sm:$0xff]   ;;  %v9502_v10 = vld [vmem:[#allocation5 + $0x424] ss:$16 sps:$4 sm:$0xff]  }
  0xc7   : > { %6621 = vmatprep.subr.bf16.mxu0 %v9410_v11  ;;  %7277 = vmatprep.subr.bf16.mxu1 %v9413_v12  ;;  %v11264_v11 = vld [vmem:[%s11241_s14 + $0x10] sm:$0xff]  ;;  %v9505_v12 = vld [vmem:[#allocation5 + $0x42c] ss:$16 sps:$4 sm:$0xff]  }
  0xca   : > { %6622 = vmatpush1.bf16.msra.mxu0 %v9408_v13  ;;  %7278 = vmatpush1.bf16.msra.mxu1 %v9411_v14  ;;  %v8048_v13 = vcombine.high %v11264_v11, %v11264_v11  ;;  %v9500_v14 = vld [vmem:[#allocation5 + $0x420] ss:$16 sps:$4 sm:$0xff]  }
  0xcb   : > { %6623 = vmatprep.subr.bf16.mxu0 %v9416_v15  ;;  %7279 = vmatprep.subr.bf16.mxu1 %v9419_v16  ;;  %v9503_v15 = vld [vmem:[#allocation5 + $0x428] ss:$16 sps:$4 sm:$0xff]   ;;  %v9508_v16 = vld [vmem:[#allocation5 + $0x444] ss:$16 sps:$4 sm:$0xff]  }
  0xce   : > { %6624 = vmatpush1.bf16.msra.mxu0 %v9414_v17  ;;  %7280 = vmatpush1.bf16.msra.mxu1 %v9417_v18  ;;  %v9511_v17 = vld [vmem:[#allocation5 + $0x44c] ss:$16 sps:$4 sm:$0xff]   ;;  %v9506_v18 = vld [vmem:[#allocation5 + $0x440] ss:$16 sps:$4 sm:$0xff]  }
  0xcf   : > { %6625 = vmatprep.subr.bf16.mxu0 %v9422_v19  ;;  %7281 = vmatprep.subr.bf16.mxu1 %v9425_v20  ;;  %v9509_v19 = vld [vmem:[#allocation5 + $0x448] ss:$16 sps:$4 sm:$0xff]   ;;  %v9514_v20 = vld [vmem:[#allocation5 + $0x464] ss:$16 sps:$4 sm:$0xff]  }
  0xd2   : > { %6626 = vmatpush1.bf16.msra.mxu0 %v9420_v21  ;;  %7282 = vmatpush1.bf16.msra.mxu1 %v9423_v22  ;;  %v9517_v21 = vld [vmem:[#allocation5 + $0x46c] ss:$16 sps:$4 sm:$0xff]   ;;  %v9512_v22 = vld [vmem:[#allocation5 + $0x460] ss:$16 sps:$4 sm:$0xff]  }
  0xd3   : > { %6627 = vmatprep.subr.bf16.mxu0 %v9428_v23  ;;  %7283 = vmatprep.subr.bf16.mxu1 %v9431_v24  ;;  %v9515_v23 = vld [vmem:[#allocation5 + $0x468] ss:$16 sps:$4 sm:$0xff]   ;;  %v9520_v24 = vld [vmem:[#allocation5 + $0x484] ss:$16 sps:$4 sm:$0xff]  }
  0xd6   : > { %6628 = vmatpush1.bf16.msra.mxu0 %v9426_v25  ;;  %7284 = vmatpush1.bf16.msra.mxu1 %v9429_v26  ;;  %v9523_v25 = vld [vmem:[#allocation5 + $0x48c] ss:$16 sps:$4 sm:$0xff]   ;;  %v9518_v26 = vld [vmem:[#allocation5 + $0x480] ss:$16 sps:$4 sm:$0xff]  }
  0xd7   : > { %6629 = vmatprep.subr.bf16.mxu0 %v9434_v27  ;;  %7285 = vmatprep.subr.bf16.mxu1 %v9437_v28  ;;  %v9521_v27 = vld [vmem:[#allocation5 + $0x488] ss:$16 sps:$4 sm:$0xff]   ;;  %v9526_v28 = vld [vmem:[#allocation5 + $0x4a4] ss:$16 sps:$4 sm:$0xff]  }
  0xda   : > { %6630 = vmatpush1.bf16.msra.mxu0 %v9432_v31  ;;  %7286 = vmatpush1.bf16.msra.mxu1 %v9435_v32  ;;  %v9527_v31 = vld [vmem:[#allocation5 + $0x4a8] ss:$16 sps:$4 sm:$0xff]   ;;  %v9532_v32 = vld [vmem:[#allocation5 + $0x4c4] ss:$16 sps:$4 sm:$0xff]  }
  0xdb   : > { %6631 = vmatprep.subr.bf16.mxu0 %v9440_v33  ;;  %7287 = vmatprep.subr.bf16.mxu1 %v9443_v34  ;;  %v9535_v33 = vld [vmem:[#allocation5 + $0x4cc] ss:$16 sps:$4 sm:$0xff]   ;;  %v9530_v34 = vld [vmem:[#allocation5 + $0x4c0] ss:$16 sps:$4 sm:$0xff]  }
  0xde   : > { %6632 = vmatpush1.bf16.msra.mxu0 %v9438_v35  ;;  %7288 = vmatpush1.bf16.msra.mxu1 %v9441_v36  ;;  %v9533_v35 = vld [vmem:[#allocation5 + $0x4c8] ss:$16 sps:$4 sm:$0xff]   ;;  %v9538_v36 = vld [vmem:[#allocation5 + $0x4e4] ss:$16 sps:$4 sm:$0xff]  }
  0xdf   : > { %6633 = vmatprep.subr.bf16.mxu0 %v9446_v37  ;;  %7289 = vmatprep.subr.bf16.mxu1 %v9449_v38  ;;  %v9541_v37 = vld [vmem:[#allocation5 + $0x4ec] ss:$16 sps:$4 sm:$0xff]   ;;  %v9536_v38 = vld [vmem:[#allocation5 + $0x4e0] ss:$16 sps:$4 sm:$0xff]  }
  0xe2   : > { %6634 = vmatpush1.bf16.msra.mxu0 %v9444_v39  ;;  %7290 = vmatpush1.bf16.msra.mxu1 %v9447_v40  ;;  %v9539_v39 = vld [vmem:[#allocation5 + $0x4e8] ss:$16 sps:$4 sm:$0xff]   ;;  %v9544_v40 = vld [vmem:[#allocation5 + $0x504] ss:$16 sps:$4 sm:$0xff]  }
  0xe3   : > { %6635 = vmatprep.subr.bf16.mxu0 %v9452_v41  ;;  %7291 = vmatprep.subr.bf16.mxu1 %v9455_v42  ;;  %v9547_v41 = vld [vmem:[#allocation5 + $0x50c] ss:$16 sps:$4 sm:$0xff]   ;;  %v9542_v42 = vld [vmem:[#allocation5 + $0x500] ss:$16 sps:$4 sm:$0xff]  }
  0xe6   : > { %6636 = vmatpush1.bf16.msra.mxu0 %v9450_v43  ;;  %7292 = vmatpush1.bf16.msra.mxu1 %v9453_v44  ;;  %v9545_v43 = vld [vmem:[#allocation5 + $0x508] ss:$16 sps:$4 sm:$0xff]   ;;  %v9550_v44 = vld [vmem:[#allocation5 + $0x524] ss:$16 sps:$4 sm:$0xff]  }
  0xe7   : > { %6637 = vmatprep.subr.bf16.mxu0 %v9458_v45  ;;  %7293 = vmatprep.subr.bf16.mxu1 %v9461_v46  ;;  %v9553_v45 = vld [vmem:[#allocation5 + $0x52c] ss:$16 sps:$4 sm:$0xff]   ;;  %v9548_v46 = vld [vmem:[#allocation5 + $0x520] ss:$16 sps:$4 sm:$0xff]  }
  0xea   : > { %6638 = vmatpush1.bf16.msra.mxu0 %v9456_v47  ;;  %7294 = vmatpush1.bf16.msra.mxu1 %v9459_v48  ;;  %v9551_v47 = vld [vmem:[#allocation5 + $0x528] ss:$16 sps:$4 sm:$0xff]   ;;  %v9556_v48 = vld [vmem:[#allocation5 + $0x544] ss:$16 sps:$4 sm:$0xff]  }
  0xeb   : > { %6639 = vmatprep.subr.bf16.mxu0 %v9464_v49  ;;  %7295 = vmatprep.subr.bf16.mxu1 %v9467_v50  ;;  %v9559_v49 = vld [vmem:[#allocation5 + $0x54c] ss:$16 sps:$4 sm:$0xff]   ;;  %v9554_v50 = vld [vmem:[#allocation5 + $0x540] ss:$16 sps:$4 sm:$0xff]  }
  0xee   : > { %6640 = vmatpush1.bf16.msra.mxu0 %v9462_v51  ;;  %7296 = vmatpush1.bf16.msra.mxu1 %v9465_v52  ;;  %v9557_v51 = vld [vmem:[#allocation5 + $0x548] ss:$16 sps:$4 sm:$0xff]   ;;  %v9562_v52 = vld [vmem:[#allocation5 + $0x564] ss:$16 sps:$4 sm:$0xff]  }
  0xef   : > { %6641 = vmatprep.subr.bf16.mxu0 %v9470_v53  ;;  %7297 = vmatprep.subr.bf16.mxu1 %v9473_v54  ;;  %v9565_v53 = vld [vmem:[#allocation5 + $0x56c] ss:$16 sps:$4 sm:$0xff]   ;;  %v9560_v54 = vld [vmem:[#allocation5 + $0x560] ss:$16 sps:$4 sm:$0xff]  }
  0xf2   : > { %6642 = vmatpush1.bf16.msra.mxu0 %v9468_v55  ;;  %7298 = vmatpush1.bf16.msra.mxu1 %v9471_v56  ;;  %v9563_v55 = vld [vmem:[#allocation5 + $0x568] ss:$16 sps:$4 sm:$0xff]   ;;  %v9568_v56 = vld [vmem:[#allocation5 + $0x584] ss:$16 sps:$4 sm:$0xff]  }
  0xf3   : > { %6643 = vmatprep.subr.bf16.mxu0 %v9476_v57  ;;  %7299 = vmatprep.subr.bf16.mxu1 %v9479_v58  ;;  %v9571_v57 = vld [vmem:[#allocation5 + $0x58c] ss:$16 sps:$4 sm:$0xff]   ;;  %v9566_v58 = vld [vmem:[#allocation5 + $0x580] ss:$16 sps:$4 sm:$0xff]  }
  0xf6   : > { %6644 = vmatpush1.bf16.msra.mxu0 %v9474_v59  ;;  %7300 = vmatpush1.bf16.msra.mxu1 %v9477_v60  ;;  %v9569_v59 = vld [vmem:[#allocation5 + $0x588] ss:$16 sps:$4 sm:$0xff]   ;;  %v9574_v60 = vld [vmem:[#allocation5 + $0x5a4] ss:$16 sps:$4 sm:$0xff]  }
  0xf7   : > { %6645 = vmatprep.subr.bf16.mxu0 %v9482_v61  ;;  %7301 = vmatprep.subr.bf16.mxu1 %v9485_v62  ;;  %v9577_v61 = vld [vmem:[#allocation5 + $0x5ac] ss:$16 sps:$4 sm:$0xff]   ;;  %v9572_v62 = vld [vmem:[#allocation5 + $0x5a0] ss:$16 sps:$4 sm:$0xff]  }
  0xfa   : > { %6646 = vmatpush1.bf16.msra.mxu0 %v9480_v63  ;;  %7302 = vmatpush1.bf16.msra.mxu1 %v9483_v0  ;;  %v9575_v63 = vld [vmem:[#allocation5 + $0x5a8] ss:$16 sps:$4 sm:$0xff]   ;;  %v9580_v0 = vld [vmem:[#allocation5 + $0x5c4] ss:$16 sps:$4 sm:$0xff]  }
  0xfb   : > { %6647 = vmatprep.subr.bf16.mxu0 %v9488_v1  ;;  %7303 = vmatprep.subr.bf16.mxu1 %v9491_v2  ;;  %v9583_v1 = vld [vmem:[#allocation5 + $0x5cc] ss:$16 sps:$4 sm:$0xff]   ;;  %v9578_v2 = vld [vmem:[#allocation5 + $0x5c0] ss:$16 sps:$4 sm:$0xff]  }
  0xfe   : > { %6648 = vmatpush1.bf16.msra.mxu0 %v9486_v3  ;;  %7304 = vmatpush1.bf16.msra.mxu1 %v9489_v4  ;;  %v9581_v3 = vld [vmem:[#allocation5 + $0x5c8] ss:$16 sps:$4 sm:$0xff]   ;;  %v9586_v4 = vld [vmem:[#allocation5 + $0x5e4] ss:$16 sps:$4 sm:$0xff]  }
  0xff   : > { %6658 = vmatprep.subr.bf16.mxu0 %v9496_v5  ;;  %7314 = vmatprep.subr.bf16.mxu1 %v9499_v6  ;;  %v9589_v5 = vld [vmem:[#allocation5 + $0x5ec] ss:$16 sps:$4 sm:$0xff]   ;;  %v9584_v6 = vld [vmem:[#allocation5 + $0x5e0] ss:$16 sps:$4 sm:$0xff]  }
 0x101   : > { %6650 = vmatmul.mubr.bf16.vlgmr.msra.gmra.mrb[0].mxu0 %v8045_v7  ;;  %7306 = vmatmul.mubr.bf16.vlgmr.msra.gmra.mrb[0].mxu1 %v8045_v7  ;;  %v9587_v7 = vld [vmem:[#allocation5 + $0x5e8] ss:$16 sps:$4 sm:$0xff]  }
 0x102   : > { %6659 = vmatpush1.bf16.msra.mxu0 %v9494_v8  ;;  %7315 = vmatpush1.bf16.msra.mxu1 %v9497_v9  ;;  %v9594_v8 = vld [vmem:[#allocation5 + $0x604] ss:$16 sps:$4 sm:$0xff]   ;;  %v9597_v9 = vld [vmem:[#allocation5 + $0x60c] ss:$16 sps:$4 sm:$0xff]  }
 0x103   : > { %6660 = vmatprep.subr.bf16.mxu0 %v9502_v10  ;;  %7316 = vmatprep.subr.bf16.mxu1 %v9505_v12  ;;  %v9592_v10 = vld [vmem:[#allocation5 + $0x600] ss:$16 sps:$4 sm:$0xff]   ;;  %v8047_v12 = vcombine.low %v11264_v11, %v11264_v11  ;;  %v9609_v11 = vld [vmem:[#allocation5 + $0x64c] ss:$16 sps:$4 sm:$0xff]  }
 0x104   : > { %6690 = vmatprep.mubr.bf16.mxu0 %v8048_v13  ;;  %7346 = vmatprep.mubr.bf16.mxu1 %v8048_v13  ;;  %v9595_v13 = vld [vmem:[#allocation5 + $0x608] ss:$16 sps:$4 sm:$0xff]  }
 0x106   : > { %6661 = vmatpush1.bf16.msra.mxu0 %v9500_v14  ;;  %7317 = vmatpush1.bf16.msra.mxu1 %v9503_v15  ;;  %v11271_v14 = vld [vmem:[%s11241_s14 + $0x18] sm:$0xff]  ;;  %v9600_v15 = vld [vmem:[#allocation5 + $0x624] ss:$16 sps:$4 sm:$0xff]  }
 0x107   : > { %6662 = vmatprep.subr.bf16.mxu0 %v9508_v16  ;;  %7318 = vmatprep.subr.bf16.mxu1 %v9511_v17  ;;  %v9603_v16 = vld [vmem:[#allocation5 + $0x62c] ss:$16 sps:$4 sm:$0xff]   ;;  %v8050_v17 = vcombine.high %v11271_v14, %v11271_v14 }
 0x10a   : > { %6663 = vmatpush1.bf16.msra.mxu0 %v9506_v18  ;;  %7319 = vmatpush1.bf16.msra.mxu1 %v9509_v19  ;;  %v9598_v18 = vld [vmem:[#allocation5 + $0x620] ss:$16 sps:$4 sm:$0xff]   ;;  %v9601_v19 = vld [vmem:[#allocation5 + $0x628] ss:$16 sps:$4 sm:$0xff]  }
 0x10b   : > { %6664 = vmatprep.subr.bf16.mxu0 %v9514_v20  ;;  %7320 = vmatprep.subr.bf16.mxu1 %v9517_v21  ;;  %v9606_v20 = vld [vmem:[#allocation5 + $0x644] ss:$16 sps:$4 sm:$0xff]   ;;  %v9604_v21 = vld [vmem:[#allocation5 + $0x640] ss:$16 sps:$4 sm:$0xff]  }
 0x10e   : > { %6665 = vmatpush1.bf16.msra.mxu0 %v9512_v22  ;;  %7321 = vmatpush1.bf16.msra.mxu1 %v9515_v23  ;;  %v9607_v22 = vld [vmem:[#allocation5 + $0x648] ss:$16 sps:$4 sm:$0xff]   ;;  %v9612_v23 = vld [vmem:[#allocation5 + $0x664] ss:$16 sps:$4 sm:$0xff]  }
 0x10f   : > { %6666 = vmatprep.subr.bf16.mxu0 %v9520_v24  ;;  %7322 = vmatprep.subr.bf16.mxu1 %v9523_v25  ;;  %v9615_v24 = vld [vmem:[#allocation5 + $0x66c] ss:$16 sps:$4 sm:$0xff]   ;;  %v9610_v25 = vld [vmem:[#allocation5 + $0x660] ss:$16 sps:$4 sm:$0xff]  }
 0x112   : > { %6667 = vmatpush1.bf16.msra.mxu0 %v9518_v26  ;;  %7323 = vmatpush1.bf16.msra.mxu1 %v9521_v27  ;;  %v9613_v26 = vld [vmem:[#allocation5 + $0x668] ss:$16 sps:$4 sm:$0xff]   ;;  %v9618_v27 = vld [vmem:[#allocation5 + $0x684] ss:$16 sps:$4 sm:$0xff]  }
 0x113   : > { %6668 = vmatprep.subr.bf16.mxu0 %v9526_v28  ;;  %7324 = vmatprep.subr.bf16.mxu1 %v9529_v29  ;;  %v9621_v28 = vld [vmem:[#allocation5 + $0x68c] ss:$16 sps:$4 sm:$0xff]   ;;  %v9616_v29 = vld [vmem:[#allocation5 + $0x680] ss:$16 sps:$4 sm:$0xff]  }
 0x116   : > { %6669 = vmatpush1.bf16.msra.mxu0 %v9524_v30  ;;  %7325 = vmatpush1.bf16.msra.mxu1 %v9527_v31  ;;  %v9619_v30 = vld [vmem:[#allocation5 + $0x688] ss:$16 sps:$4 sm:$0xff]   ;;  %v9624_v31 = vld [vmem:[#allocation5 + $0x6a4] ss:$16 sps:$4 sm:$0xff]  }
 0x117   : > { %6670 = vmatprep.subr.bf16.mxu0 %v9532_v32  ;;  %7326 = vmatprep.subr.bf16.mxu1 %v9535_v33  ;;  %v9627_v32 = vld [vmem:[#allocation5 + $0x6ac] ss:$16 sps:$4 sm:$0xff]   ;;  %v9622_v33 = vld [vmem:[#allocation5 + $0x6a0] ss:$16 sps:$4 sm:$0xff]  }
 0x11a   : > { %6671 = vmatpush1.bf16.msra.mxu0 %v9530_v34  ;;  %7327 = vmatpush1.bf16.msra.mxu1 %v9533_v35  ;;  %v9625_v34 = vld [vmem:[#allocation5 + $0x6a8] ss:$16 sps:$4 sm:$0xff]   ;;  %v9630_v35 = vld [vmem:[#allocation5 + $0x6c4] ss:$16 sps:$4 sm:$0xff]  }
 0x11b   : > { %6672 = vmatprep.subr.bf16.mxu0 %v9538_v36  ;;  %7328 = vmatprep.subr.bf16.mxu1 %v9541_v37  ;;  %v9633_v36 = vld [vmem:[#allocation5 + $0x6cc] ss:$16 sps:$4 sm:$0xff]   ;;  %v9628_v37 = vld [vmem:[#allocation5 + $0x6c0] ss:$16 sps:$4 sm:$0xff]  }
 0x11e   : > { %6673 = vmatpush1.bf16.msra.mxu0 %v9536_v38  ;;  %7329 = vmatpush1.bf16.msra.mxu1 %v9539_v39  ;;  %v9631_v38 = vld [vmem:[#allocation5 + $0x6c8] ss:$16 sps:$4 sm:$0xff]   ;;  %v9636_v39 = vld [vmem:[#allocation5 + $0x6e4] ss:$16 sps:$4 sm:$0xff]  }
 0x11f   : > { %6674 = vmatprep.subr.bf16.mxu0 %v9544_v40  ;;  %7330 = vmatprep.subr.bf16.mxu1 %v9547_v41  ;;  %v9639_v40 = vld [vmem:[#allocation5 + $0x6ec] ss:$16 sps:$4 sm:$0xff]   ;;  %v9634_v41 = vld [vmem:[#allocation5 + $0x6e0] ss:$16 sps:$4 sm:$0xff]  }
 0x122   : > { %6675 = vmatpush1.bf16.msra.mxu0 %v9542_v42  ;;  %7331 = vmatpush1.bf16.msra.mxu1 %v9545_v43  ;;  %v9637_v42 = vld [vmem:[#allocation5 + $0x6e8] ss:$16 sps:$4 sm:$0xff]   ;;  %v9642_v43 = vld [vmem:[#allocation5 + $0x704] ss:$16 sps:$4 sm:$0xff]  }
 0x123   : > { %6676 = vmatprep.subr.bf16.mxu0 %v9550_v44  ;;  %7332 = vmatprep.subr.bf16.mxu1 %v9553_v45  ;;  %v9645_v44 = vld [vmem:[#allocation5 + $0x70c] ss:$16 sps:$4 sm:$0xff]   ;;  %v9640_v45 = vld [vmem:[#allocation5 + $0x700] ss:$16 sps:$4 sm:$0xff]  }
 0x126   : > { %6677 = vmatpush1.bf16.msra.mxu0 %v9548_v46  ;;  %7333 = vmatpush1.bf16.msra.mxu1 %v9551_v47  ;;  %v9643_v46 = vld [vmem:[#allocation5 + $0x708] ss:$16 sps:$4 sm:$0xff]   ;;  %v9648_v47 = vld [vmem:[#allocation5 + $0x724] ss:$16 sps:$4 sm:$0xff]  }
 0x127   : > { %6678 = vmatprep.subr.bf16.mxu0 %v9556_v48  ;;  %7334 = vmatprep.subr.bf16.mxu1 %v9559_v49  ;;  %v9651_v48 = vld [vmem:[#allocation5 + $0x72c] ss:$16 sps:$4 sm:$0xff]   ;;  %v9646_v49 = vld [vmem:[#allocation5 + $0x720] ss:$16 sps:$4 sm:$0xff]  }
 0x12a   : > { %6679 = vmatpush1.bf16.msra.mxu0 %v9554_v50  ;;  %7335 = vmatpush1.bf16.msra.mxu1 %v9557_v51  ;;  %v9649_v50 = vld [vmem:[#allocation5 + $0x728] ss:$16 sps:$4 sm:$0xff]   ;;  %v9654_v51 = vld [vmem:[#allocation5 + $0x744] ss:$16 sps:$4 sm:$0xff]  }
 0x12b   : > { %6680 = vmatprep.subr.bf16.mxu0 %v9562_v52  ;;  %7336 = vmatprep.subr.bf16.mxu1 %v9565_v53  ;;  %v9657_v52 = vld [vmem:[#allocation5 + $0x74c] ss:$16 sps:$4 sm:$0xff]   ;;  %v9652_v53 = vld [vmem:[#allocation5 + $0x740] ss:$16 sps:$4 sm:$0xff]  }
 0x12e   : > { %6681 = vmatpush1.bf16.msra.mxu0 %v9560_v54  ;;  %7337 = vmatpush1.bf16.msra.mxu1 %v9563_v55  ;;  %v9655_v54 = vld [vmem:[#allocation5 + $0x748] ss:$16 sps:$4 sm:$0xff]   ;;  %v9660_v55 = vld [vmem:[#allocation5 + $0x764] ss:$16 sps:$4 sm:$0xff]  }
 0x12f   : > { %6682 = vmatprep.subr.bf16.mxu0 %v9568_v56  ;;  %7338 = vmatprep.subr.bf16.mxu1 %v9571_v57  ;;  %v9663_v56 = vld [vmem:[#allocation5 + $0x76c] ss:$16 sps:$4 sm:$0xff]   ;;  %v9658_v57 = vld [vmem:[#allocation5 + $0x760] ss:$16 sps:$4 sm:$0xff]  }
 0x132   : > { %6683 = vmatpush1.bf16.msra.mxu0 %v9566_v58  ;;  %7339 = vmatpush1.bf16.msra.mxu1 %v9569_v59  ;;  %v9661_v58 = vld [vmem:[#allocation5 + $0x768] ss:$16 sps:$4 sm:$0xff]   ;;  %v9666_v59 = vld [vmem:[#allocation5 + $0x784] ss:$16 sps:$4 sm:$0xff]  }
 0x133   : > { %6684 = vmatprep.subr.bf16.mxu0 %v9574_v60  ;;  %7340 = vmatprep.subr.bf16.mxu1 %v9577_v61  ;;  %v9669_v60 = vld [vmem:[#allocation5 + $0x78c] ss:$16 sps:$4 sm:$0xff]   ;;  %v9664_v61 = vld [vmem:[#allocation5 + $0x780] ss:$16 sps:$4 sm:$0xff]  }
 0x136   : > { %6685 = vmatpush1.bf16.msra.mxu0 %v9572_v62  ;;  %7341 = vmatpush1.bf16.msra.mxu1 %v9575_v63  ;;  %v9667_v62 = vld [vmem:[#allocation5 + $0x788] ss:$16 sps:$4 sm:$0xff]   ;;  %v9672_v63 = vld [vmem:[#allocation5 + $0x7a4] ss:$16 sps:$4 sm:$0xff]  }
 0x137   : > { %6686 = vmatprep.subr.bf16.mxu0 %v9580_v0  ;;  %7342 = vmatprep.subr.bf16.mxu1 %v9583_v1  ;;  %v9675_v0 = vld [vmem:[#allocation5 + $0x7ac] ss:$16 sps:$4 sm:$0xff]   ;;  %v9670_v1 = vld [vmem:[#allocation5 + $0x7a0] ss:$16 sps:$4 sm:$0xff]  }
 0x13a   : > { %6687 = vmatpush1.bf16.msra.mxu0 %v9578_v2  ;;  %7343 = vmatpush1.bf16.msra.mxu1 %v9581_v3  ;;  %v9673_v2 = vld [vmem:[#allocation5 + $0x7a8] ss:$16 sps:$4 sm:$0xff]   ;;  %v9678_v3 = vld [vmem:[#allocation5 + $0x7c4] ss:$16 sps:$4 sm:$0xff]  }
 0x13b   : > { %6688 = vmatprep.subr.bf16.mxu0 %v9586_v4  ;;  %7344 = vmatprep.subr.bf16.mxu1 %v9589_v5  ;;  %v9681_v4 = vld [vmem:[#allocation5 + $0x7cc] ss:$16 sps:$4 sm:$0xff]   ;;  %v9676_v5 = vld [vmem:[#allocation5 + $0x7c0] ss:$16 sps:$4 sm:$0xff]  }
 0x13e   : > { %6689 = vmatpush1.bf16.msra.mxu0 %v9584_v6  ;;  %7345 = vmatpush1.bf16.msra.mxu1 %v9587_v7  ;;  %v9679_v6 = vld [vmem:[#allocation5 + $0x7c8] ss:$16 sps:$4 sm:$0xff]   ;;  %v9684_v7 = vld [vmem:[#allocation5 + $0x7e4] ss:$16 sps:$4 sm:$0xff]  }
 0x13f   : > { %6699 = vmatprep.subr.bf16.mxu0 %v9594_v8  ;;  %7355 = vmatprep.subr.bf16.mxu1 %v9597_v9  ;;  %v9687_v8 = vld [vmem:[#allocation5 + $0x7ec] ss:$16 sps:$4 sm:$0xff]   ;;  %v9682_v9 = vld [vmem:[#allocation5 + $0x7e0] ss:$16 sps:$4 sm:$0xff]  }
 0x141   : > { %6691 = vmatmul.mubr.bf16.vlgmr.msra.gmra.mrb[0].mxu0 %v8047_v12  ;;  %7347 = vmatmul.mubr.bf16.vlgmr.msra.gmra.mrb[0].mxu1 %v8047_v12  ;;  %v9692_v12 = vld [vmem:[#allocation5 + $0x804] ss:$16 sps:$4 sm:$0xff]  }
 0x142   : > { %6700 = vmatpush1.bf16.msra.mxu0 %v9592_v10  ;;  %7356 = vmatpush1.bf16.msra.mxu1 %v9595_v13  ;;  %v9685_v10 = vld [vmem:[#allocation5 + $0x7e8] ss:$16 sps:$4 sm:$0xff]   ;;  %v9695_v13 = vld [vmem:[#allocation5 + $0x80c] ss:$16 sps:$4 sm:$0xff]  }
 0x143   : > { %6701 = vmatprep.subr.bf16.mxu0 %v9600_v15  ;;  %7357 = vmatprep.subr.bf16.mxu1 %v9603_v16  ;;  %v9690_v15 = vld [vmem:[#allocation5 + $0x800] ss:$16 sps:$4 sm:$0xff]   ;;  %v8049_v16 = vcombine.low %v11271_v14, %v11271_v14  ;;  %v9704_v14 = vld [vmem:[#allocation5 + $0x844] ss:$16 sps:$4 sm:$0xff]  }
 0x144   : > { %6731 = vmatprep.mubr.bf16.mxu0 %v8050_v17  ;;  %7387 = vmatprep.mubr.bf16.mxu1 %v8050_v17  ;;  %v11278_v17 = vld [vmem:[%s11241_s14 + $0x20] sm:$0xff] }
 0x146   : > { %6702 = vmatpush1.bf16.msra.mxu0 %v9598_v18  ;;  %7358 = vmatpush1.bf16.msra.mxu1 %v9601_v19  ;;  %v9693_v18 = vld [vmem:[#allocation5 + $0x808] ss:$16 sps:$4 sm:$0xff]   ;;  %v9698_v19 = vld [vmem:[#allocation5 + $0x824] ss:$16 sps:$4 sm:$0xff]  }
 0x147   : > { %6703 = vmatprep.subr.bf16.mxu0 %v9606_v20  ;;  %7359 = vmatprep.subr.bf16.mxu1 %v9609_v11  ;;  %v9701_v20 = vld [vmem:[#allocation5 + $0x82c] ss:$16 sps:$4 sm:$0xff]   ;;  %v8052_v11 = vcombine.high %v11278_v17, %v11278_v17 }
 0x14a   : > { %6704 = vmatpush1.bf16.msra.mxu0 %v9604_v21  ;;  %7360 = vmatpush1.bf16.msra.mxu1 %v9607_v22  ;;  %v9696_v21 = vld [vmem:[#allocation5 + $0x820] ss:$16 sps:$4 sm:$0xff]   ;;  %v9699_v22 = vld [vmem:[#allocation5 + $0x828] ss:$16 sps:$4 sm:$0xff]  }
 0x14b   : > { %6705 = vmatprep.subr.bf16.mxu0 %v9612_v23  ;;  %7361 = vmatprep.subr.bf16.mxu1 %v9615_v24  ;;  %v9707_v23 = vld [vmem:[#allocation5 + $0x84c] ss:$16 sps:$4 sm:$0xff]   ;;  %v9702_v24 = vld [vmem:[#allocation5 + $0x840] ss:$16 sps:$4 sm:$0xff]  }
 0x14e   : > { %6706 = vmatpush1.bf16.msra.mxu0 %v9610_v25  ;;  %7362 = vmatpush1.bf16.msra.mxu1 %v9613_v26  ;;  %v9705_v25 = vld [vmem:[#allocation5 + $0x848] ss:$16 sps:$4 sm:$0xff]   ;;  %v9710_v26 = vld [vmem:[#allocation5 + $0x864] ss:$16 sps:$4 sm:$0xff]  }
 0x14f   : > { %6707 = vmatprep.subr.bf16.mxu0 %v9618_v27  ;;  %7363 = vmatprep.subr.bf16.mxu1 %v9621_v28  ;;  %v9713_v27 = vld [vmem:[#allocation5 + $0x86c] ss:$16 sps:$4 sm:$0xff]   ;;  %v9708_v28 = vld [vmem:[#allocation5 + $0x860] ss:$16 sps:$4 sm:$0xff]  }
 0x152   : > { %6708 = vmatpush1.bf16.msra.mxu0 %v9616_v29  ;;  %7364 = vmatpush1.bf16.msra.mxu1 %v9619_v30  ;;  %v9711_v29 = vld [vmem:[#allocation5 + $0x868] ss:$16 sps:$4 sm:$0xff]   ;;  %v9716_v30 = vld [vmem:[#allocation5 + $0x884] ss:$16 sps:$4 sm:$0xff]  }
 0x153   : > { %6709 = vmatprep.subr.bf16.mxu0 %v9624_v31  ;;  %7365 = vmatprep.subr.bf16.mxu1 %v9627_v32  ;;  %v9719_v31 = vld [vmem:[#allocation5 + $0x88c] ss:$16 sps:$4 sm:$0xff]   ;;  %v9714_v32 = vld [vmem:[#allocation5 + $0x880] ss:$16 sps:$4 sm:$0xff]  }
 0x156   : > { %6710 = vmatpush1.bf16.msra.mxu0 %v9622_v33  ;;  %7366 = vmatpush1.bf16.msra.mxu1 %v9625_v34  ;;  %v9717_v33 = vld [vmem:[#allocation5 + $0x888] ss:$16 sps:$4 sm:$0xff]   ;;  %v9722_v34 = vld [vmem:[#allocation5 + $0x8a4] ss:$16 sps:$4 sm:$0xff]  }
 0x157   : > { %6711 = vmatprep.subr.bf16.mxu0 %v9630_v35  ;;  %7367 = vmatprep.subr.bf16.mxu1 %v9633_v36  ;;  %v9725_v35 = vld [vmem:[#allocation5 + $0x8ac] ss:$16 sps:$4 sm:$0xff]   ;;  %v9720_v36 = vld [vmem:[#allocation5 + $0x8a0] ss:$16 sps:$4 sm:$0xff]  }
 0x15a   : > { %6712 = vmatpush1.bf16.msra.mxu0 %v9628_v37  ;;  %7368 = vmatpush1.bf16.msra.mxu1 %v9631_v38  ;;  %v9723_v37 = vld [vmem:[#allocation5 + $0x8a8] ss:$16 sps:$4 sm:$0xff]   ;;  %v9728_v38 = vld [vmem:[#allocation5 + $0x8c4] ss:$16 sps:$4 sm:$0xff]  }
 0x15b   : > { %6713 = vmatprep.subr.bf16.mxu0 %v9636_v39  ;;  %7369 = vmatprep.subr.bf16.mxu1 %v9639_v40  ;;  %v9731_v39 = vld [vmem:[#allocation5 + $0x8cc] ss:$16 sps:$4 sm:$0xff]   ;;  %v9726_v40 = vld [vmem:[#allocation5 + $0x8c0] ss:$16 sps:$4 sm:$0xff]  }
 0x15e   : > { %6714 = vmatpush1.bf16.msra.mxu0 %v9634_v41  ;;  %7370 = vmatpush1.bf16.msra.mxu1 %v9637_v42  ;;  %v9729_v41 = vld [vmem:[#allocation5 + $0x8c8] ss:$16 sps:$4 sm:$0xff]   ;;  %v9734_v42 = vld [vmem:[#allocation5 + $0x8e4] ss:$16 sps:$4 sm:$0xff]  }
 0x15f   : > { %6715 = vmatprep.subr.bf16.mxu0 %v9642_v43  ;;  %7371 = vmatprep.subr.bf16.mxu1 %v9645_v44  ;;  %v9737_v43 = vld [vmem:[#allocation5 + $0x8ec] ss:$16 sps:$4 sm:$0xff]   ;;  %v9732_v44 = vld [vmem:[#allocation5 + $0x8e0] ss:$16 sps:$4 sm:$0xff]  }
 0x162   : > { %6716 = vmatpush1.bf16.msra.mxu0 %v9640_v45  ;;  %7372 = vmatpush1.bf16.msra.mxu1 %v9643_v46  ;;  %v9735_v45 = vld [vmem:[#allocation5 + $0x8e8] ss:$16 sps:$4 sm:$0xff]   ;;  %v9740_v46 = vld [vmem:[#allocation5 + $0x904] ss:$16 sps:$4 sm:$0xff]  }
 0x163   : > { %6717 = vmatprep.subr.bf16.mxu0 %v9648_v47  ;;  %7373 = vmatprep.subr.bf16.mxu1 %v9651_v48  ;;  %v9743_v47 = vld [vmem:[#allocation5 + $0x90c] ss:$16 sps:$4 sm:$0xff]   ;;  %v9738_v48 = vld [vmem:[#allocation5 + $0x900] ss:$16 sps:$4 sm:$0xff]  }
 0x166   : > { %6718 = vmatpush1.bf16.msra.mxu0 %v9646_v49  ;;  %7374 = vmatpush1.bf16.msra.mxu1 %v9649_v50  ;;  %v9741_v49 = vld [vmem:[#allocation5 + $0x908] ss:$16 sps:$4 sm:$0xff]   ;;  %v9746_v50 = vld [vmem:[#allocation5 + $0x924] ss:$16 sps:$4 sm:$0xff]  }
 0x167   : > { %6719 = vmatprep.subr.bf16.mxu0 %v9654_v51  ;;  %7375 = vmatprep.subr.bf16.mxu1 %v9657_v52  ;;  %v9749_v51 = vld [vmem:[#allocation5 + $0x92c] ss:$16 sps:$4 sm:$0xff]   ;;  %v9744_v52 = vld [vmem:[#allocation5 + $0x920] ss:$16 sps:$4 sm:$0xff]  }
 0x16a   : > { %6720 = vmatpush1.bf16.msra.mxu0 %v9652_v53  ;;  %7376 = vmatpush1.bf16.msra.mxu1 %v9655_v54  ;;  %v9747_v53 = vld [vmem:[#allocation5 + $0x928] ss:$16 sps:$4 sm:$0xff]   ;;  %v9752_v54 = vld [vmem:[#allocation5 + $0x944] ss:$16 sps:$4 sm:$0xff]  }
 0x16b   : > { %6721 = vmatprep.subr.bf16.mxu0 %v9660_v55  ;;  %7377 = vmatprep.subr.bf16.mxu1 %v9663_v56  ;;  %v9755_v55 = vld [vmem:[#allocation5 + $0x94c] ss:$16 sps:$4 sm:$0xff]   ;;  %v9750_v56 = vld [vmem:[#allocation5 + $0x940] ss:$16 sps:$4 sm:$0xff]  }
 0x16e   : > { %6722 = vmatpush1.bf16.msra.mxu0 %v9658_v57  ;;  %7378 = vmatpush1.bf16.msra.mxu1 %v9661_v58  ;;  %v9753_v57 = vld [vmem:[#allocation5 + $0x948] ss:$16 sps:$4 sm:$0xff]   ;;  %v9758_v58 = vld [vmem:[#allocation5 + $0x964] ss:$16 sps:$4 sm:$0xff]  }
 0x16f   : > { %6723 = vmatprep.subr.bf16.mxu0 %v9666_v59  ;;  %7379 = vmatprep.subr.bf16.mxu1 %v9669_v60  ;;  %v9761_v59 = vld [vmem:[#allocation5 + $0x96c] ss:$16 sps:$4 sm:$0xff]   ;;  %v9756_v60 = vld [vmem:[#allocation5 + $0x960] ss:$16 sps:$4 sm:$0xff]  }
 0x172   : > { %6724 = vmatpush1.bf16.msra.mxu0 %v9664_v61  ;;  %7380 = vmatpush1.bf16.msra.mxu1 %v9667_v62  ;;  %v9759_v61 = vld [vmem:[#allocation5 + $0x968] ss:$16 sps:$4 sm:$0xff]   ;;  %v9764_v62 = vld [vmem:[#allocation5 + $0x984] ss:$16 sps:$4 sm:$0xff]  }
 0x173   : > { %6725 = vmatprep.subr.bf16.mxu0 %v9672_v63  ;;  %7381 = vmatprep.subr.bf16.mxu1 %v9675_v0  ;;  %v9767_v63 = vld [vmem:[#allocation5 + $0x98c] ss:$16 sps:$4 sm:$0xff]   ;;  %v9762_v0 = vld [vmem:[#allocation5 + $0x980] ss:$16 sps:$4 sm:$0xff]  }
 0x176   : > { %6726 = vmatpush1.bf16.msra.mxu0 %v9670_v1  ;;  %7382 = vmatpush1.bf16.msra.mxu1 %v9673_v2  ;;  %v9765_v1 = vld [vmem:[#allocation5 + $0x988] ss:$16 sps:$4 sm:$0xff]   ;;  %v9770_v2 = vld [vmem:[#allocation5 + $0x9a4] ss:$16 sps:$4 sm:$0xff]  }
 0x177   : > { %6727 = vmatprep.subr.bf16.mxu0 %v9678_v3  ;;  %7383 = vmatprep.subr.bf16.mxu1 %v9681_v4  ;;  %v9773_v3 = vld [vmem:[#allocation5 + $0x9ac] ss:$16 sps:$4 sm:$0xff]   ;;  %v9768_v4 = vld [vmem:[#allocation5 + $0x9a0] ss:$16 sps:$4 sm:$0xff]  }
 0x17a   : > { %6728 = vmatpush1.bf16.msra.mxu0 %v9676_v5  ;;  %7384 = vmatpush1.bf16.msra.mxu1 %v9679_v6  ;;  %v9771_v5 = vld [vmem:[#allocation5 + $0x9a8] ss:$16 sps:$4 sm:$0xff]   ;;  %v9776_v6 = vld [vmem:[#allocation5 + $0x9c4] ss:$16 sps:$4 sm:$0xff]  }
 0x17b   : > { %6729 = vmatprep.subr.bf16.mxu0 %v9684_v7  ;;  %7385 = vmatprep.subr.bf16.mxu1 %v9687_v8  ;;  %v9779_v7 = vld [vmem:[#allocation5 + $0x9cc] ss:$16 sps:$4 sm:$0xff]   ;;  %v9774_v8 = vld [vmem:[#allocation5 + $0x9c0] ss:$16 sps:$4 sm:$0xff]  }
 0x17e   : > { %6730 = vmatpush1.bf16.msra.mxu0 %v9682_v9  ;;  %7386 = vmatpush1.bf16.msra.mxu1 %v9685_v10  ;;  %v9777_v9 = vld [vmem:[#allocation5 + $0x9c8] ss:$16 sps:$4 sm:$0xff]   ;;  %v9782_v10 = vld [vmem:[#allocation5 + $0x9e4] ss:$16 sps:$4 sm:$0xff]  }
 0x17f   : > { %6740 = vmatprep.subr.bf16.mxu0 %v9692_v12  ;;  %7396 = vmatprep.subr.bf16.mxu1 %v9695_v13  ;;  %v9785_v12 = vld [vmem:[#allocation5 + $0x9ec] ss:$16 sps:$4 sm:$0xff]   ;;  %v9780_v13 = vld [vmem:[#allocation5 + $0x9e0] ss:$16 sps:$4 sm:$0xff]  }
 0x181   : > { %6732 = vmatmul.mubr.bf16.vlgmr.msra.gmra.mrb[0].mxu0 %v8049_v16  ;;  %7388 = vmatmul.mubr.bf16.vlgmr.msra.gmra.mrb[0].mxu1 %v8049_v16  ;;  %v9790_v16 = vld [vmem:[#allocation5 + $0xa04] ss:$16 sps:$4 sm:$0xff]  }
 0x182   : > { %6741 = vmatpush1.bf16.msra.mxu0 %v9690_v15  ;;  %7397 = vmatpush1.bf16.msra.mxu1 %v9693_v18  ;;  %v9783_v15 = vld [vmem:[#allocation5 + $0x9e8] ss:$16 sps:$4 sm:$0xff]   ;;  %v9793_v18 = vld [vmem:[#allocation5 + $0xa0c] ss:$16 sps:$4 sm:$0xff]  }
 0x183   : > { %6742 = vmatprep.subr.bf16.mxu0 %v9698_v19  ;;  %7398 = vmatprep.subr.bf16.mxu1 %v9701_v20  ;;  %v11283_v19 = vld [vmem:[%s11241_s14 + $0x28] sm:$0xff]  ;;  %v8051_v20 = vcombine.low %v11278_v17, %v11278_v17  ;;  %v9802_v17 = vld [vmem:[#allocation5 + $0xa44] ss:$16 sps:$4 sm:$0xff]  }
 0x184   : > { %6772 = vmatprep.mubr.bf16.mxu0 %v8052_v11  ;;  %7428 = vmatprep.mubr.bf16.mxu1 %v8052_v11  ;;  %v9788_v11 = vld [vmem:[#allocation5 + $0xa00] ss:$16 sps:$4 sm:$0xff]  }
 0x186   : > { %6743 = vmatpush1.bf16.msra.mxu0 %v9696_v21  ;;  %7399 = vmatpush1.bf16.msra.mxu1 %v9699_v22  ;;  %v9791_v21 = vld [vmem:[#allocation5 + $0xa08] ss:$16 sps:$4 sm:$0xff]   ;;  %v9796_v22 = vld [vmem:[#allocation5 + $0xa24] ss:$16 sps:$4 sm:$0xff]  }
 0x187   : > { %6744 = vmatprep.subr.bf16.mxu0 %v9704_v14  ;;  %7400 = vmatprep.subr.bf16.mxu1 %v9707_v23  ;;  %v9799_v14 = vld [vmem:[#allocation5 + $0xa2c] ss:$16 sps:$4 sm:$0xff]   ;;  %v8054_v23 = vcombine.high %v11283_v19, %v11283_v19 }
 0x18a   : > { %6745 = vmatpush1.bf16.msra.mxu0 %v9702_v24  ;;  %7401 = vmatpush1.bf16.msra.mxu1 %v9705_v25  ;;  %v9794_v24 = vld [vmem:[#allocation5 + $0xa20] ss:$16 sps:$4 sm:$0xff]   ;;  %v9797_v25 = vld [vmem:[#allocation5 + $0xa28] ss:$16 sps:$4 sm:$0xff]  }
 0x18b   : > { %6746 = vmatprep.subr.bf16.mxu0 %v9710_v26  ;;  %7402 = vmatprep.subr.bf16.mxu1 %v9713_v27  ;;  %v9805_v26 = vld [vmem:[#allocation5 + $0xa4c] ss:$16 sps:$4 sm:$0xff]   ;;  %v9800_v27 = vld [vmem:[#allocation5 + $0xa40] ss:$16 sps:$4 sm:$0xff]  }
 0x18e   : > { %6747 = vmatpush1.bf16.msra.mxu0 %v9708_v28  ;;  %7403 = vmatpush1.bf16.msra.mxu1 %v9711_v29  ;;  %v9803_v28 = vld [vmem:[#allocation5 + $0xa48] ss:$16 sps:$4 sm:$0xff]   ;;  %v9808_v29 = vld [vmem:[#allocation5 + $0xa64] ss:$16 sps:$4 sm:$0xff]  }
 0x18f   : > { %6748 = vmatprep.subr.bf16.mxu0 %v9716_v30  ;;  %7404 = vmatprep.subr.bf16.mxu1 %v9719_v31  ;;  %v9811_v30 = vld [vmem:[#allocation5 + $0xa6c] ss:$16 sps:$4 sm:$0xff]   ;;  %v9806_v31 = vld [vmem:[#allocation5 + $0xa60] ss:$16 sps:$4 sm:$0xff]  }
 0x192   : > { %6749 = vmatpush1.bf16.msra.mxu0 %v9714_v32  ;;  %7405 = vmatpush1.bf16.msra.mxu1 %v9717_v33  ;;  %v9809_v32 = vld [vmem:[#allocation5 + $0xa68] ss:$16 sps:$4 sm:$0xff]   ;;  %v9814_v33 = vld [vmem:[#allocation5 + $0xa84] ss:$16 sps:$4 sm:$0xff]  }
 0x193   : > { %6750 = vmatprep.subr.bf16.mxu0 %v9722_v34  ;;  %7406 = vmatprep.subr.bf16.mxu1 %v9725_v35  ;;  %v9817_v34 = vld [vmem:[#allocation5 + $0xa8c] ss:$16 sps:$4 sm:$0xff]   ;;  %v9812_v35 = vld [vmem:[#allocation5 + $0xa80] ss:$16 sps:$4 sm:$0xff]  }
 0x196   : > { %6751 = vmatpush1.bf16.msra.mxu0 %v9720_v36  ;;  %7407 = vmatpush1.bf16.msra.mxu1 %v9723_v37  ;;  %v9815_v36 = vld [vmem:[#allocation5 + $0xa88] ss:$16 sps:$4 sm:$0xff]   ;;  %v9820_v37 = vld [vmem:[#allocation5 + $0xaa4] ss:$16 sps:$4 sm:$0xff]  }
 0x197   : > { %6752 = vmatprep.subr.bf16.mxu0 %v9728_v38  ;;  %7408 = vmatprep.subr.bf16.mxu1 %v9731_v39  ;;  %v9823_v38 = vld [vmem:[#allocation5 + $0xaac] ss:$16 sps:$4 sm:$0xff]   ;;  %v9818_v39 = vld [vmem:[#allocation5 + $0xaa0] ss:$16 sps:$4 sm:$0xff]  }
 0x19a   : > { %6753 = vmatpush1.bf16.msra.mxu0 %v9726_v40  ;;  %7409 = vmatpush1.bf16.msra.mxu1 %v9729_v41  ;;  %v9821_v40 = vld [vmem:[#allocation5 + $0xaa8] ss:$16 sps:$4 sm:$0xff]   ;;  %v9826_v41 = vld [vmem:[#allocation5 + $0xac4] ss:$16 sps:$4 sm:$0xff]  }
 0x19b   : > { %6754 = vmatprep.subr.bf16.mxu0 %v9734_v42  ;;  %7410 = vmatprep.subr.bf16.mxu1 %v9737_v43  ;;  %v9829_v42 = vld [vmem:[#allocation5 + $0xacc] ss:$16 sps:$4 sm:$0xff]   ;;  %v9824_v43 = vld [vmem:[#allocation5 + $0xac0] ss:$16 sps:$4 sm:$0xff]  }
 0x19e   : > { %6755 = vmatpush1.bf16.msra.mxu0 %v9732_v44  ;;  %7411 = vmatpush1.bf16.msra.mxu1 %v9735_v45  ;;  %v9827_v44 = vld [vmem:[#allocation5 + $0xac8] ss:$16 sps:$4 sm:$0xff]   ;;  %v9832_v45 = vld [vmem:[#allocation5 + $0xae4] ss:$16 sps:$4 sm:$0xff]  }
 0x19f   : > { %6756 = vmatprep.subr.bf16.mxu0 %v9740_v46  ;;  %7412 = vmatprep.subr.bf16.mxu1 %v9743_v47  ;;  %v9835_v46 = vld [vmem:[#allocation5 + $0xaec] ss:$16 sps:$4 sm:$0xff]   ;;  %v9830_v47 = vld [vmem:[#allocation5 + $0xae0] ss:$16 sps:$4 sm:$0xff]  }
 0x1a2   : > { %6757 = vmatpush1.bf16.msra.mxu0 %v9738_v48  ;;  %7413 = vmatpush1.bf16.msra.mxu1 %v9741_v49  ;;  %v9833_v48 = vld [vmem:[#allocation5 + $0xae8] ss:$16 sps:$4 sm:$0xff]   ;;  %v9838_v49 = vld [vmem:[#allocation5 + $0xb04] ss:$16 sps:$4 sm:$0xff]  }
 0x1a3   : > { %6758 = vmatprep.subr.bf16.mxu0 %v9746_v50  ;;  %7414 = vmatprep.subr.bf16.mxu1 %v9749_v51  ;;  %v9841_v50 = vld [vmem:[#allocation5 + $0xb0c] ss:$16 sps:$4 sm:$0xff]   ;;  %v9836_v51 = vld [vmem:[#allocation5 + $0xb00] ss:$16 sps:$4 sm:$0xff]  }
 0x1a6   : > { %6759 = vmatpush1.bf16.msra.mxu0 %v9744_v52  ;;  %7415 = vmatpush1.bf16.msra.mxu1 %v9747_v53  ;;  %v9839_v52 = vld [vmem:[#allocation5 + $0xb08] ss:$16 sps:$4 sm:$0xff]   ;;  %v9844_v53 = vld [vmem:[#allocation5 + $0xb24] ss:$16 sps:$4 sm:$0xff]  }
 0x1a7   : > { %6760 = vmatprep.subr.bf16.mxu0 %v9752_v54  ;;  %7416 = vmatprep.subr.bf16.mxu1 %v9755_v55  ;;  %v9847_v54 = vld [vmem:[#allocation5 + $0xb2c] ss:$16 sps:$4 sm:$0xff]   ;;  %v9842_v55 = vld [vmem:[#allocation5 + $0xb20] ss:$16 sps:$4 sm:$0xff]  }
 0x1aa   : > { %6761 = vmatpush1.bf16.msra.mxu0 %v9750_v56  ;;  %7417 = vmatpush1.bf16.msra.mxu1 %v9753_v57  ;;  %v9845_v56 = vld [vmem:[#allocation5 + $0xb28] ss:$16 sps:$4 sm:$0xff]   ;;  %v9850_v57 = vld [vmem:[#allocation5 + $0xb44] ss:$16 sps:$4 sm:$0xff]  }
 0x1ab   : > { %6762 = vmatprep.subr.bf16.mxu0 %v9758_v58  ;;  %7418 = vmatprep.subr.bf16.mxu1 %v9761_v59  ;;  %v9853_v58 = vld [vmem:[#allocation5 + $0xb4c] ss:$16 sps:$4 sm:$0xff]   ;;  %v9848_v59 = vld [vmem:[#allocation5 + $0xb40] ss:$16 sps:$4 sm:$0xff]  }
 0x1ae   : > { %6763 = vmatpush1.bf16.msra.mxu0 %v9756_v60  ;;  %7419 = vmatpush1.bf16.msra.mxu1 %v9759_v61  ;;  %v9851_v60 = vld [vmem:[#allocation5 + $0xb48] ss:$16 sps:$4 sm:$0xff]   ;;  %v9856_v61 = vld [vmem:[#allocation5 + $0xb64] ss:$16 sps:$4 sm:$0xff]  }
 0x1af   : > { %6764 = vmatprep.subr.bf16.mxu0 %v9764_v62  ;;  %7420 = vmatprep.subr.bf16.mxu1 %v9767_v63  ;;  %v9859_v62 = vld [vmem:[#allocation5 + $0xb6c] ss:$16 sps:$4 sm:$0xff]   ;;  %v9854_v63 = vld [vmem:[#allocation5 + $0xb60] ss:$16 sps:$4 sm:$0xff]  }
 0x1b2   : > { %6765 = vmatpush1.bf16.msra.mxu0 %v9762_v0  ;;  %7421 = vmatpush1.bf16.msra.mxu1 %v9765_v1  ;;  %v9857_v0 = vld [vmem:[#allocation5 + $0xb68] ss:$16 sps:$4 sm:$0xff]   ;;  %v9862_v1 = vld [vmem:[#allocation5 + $0xb84] ss:$16 sps:$4 sm:$0xff]  }
 0x1b3   : > { %6766 = vmatprep.subr.bf16.mxu0 %v9770_v2  ;;  %7422 = vmatprep.subr.bf16.mxu1 %v9773_v3  ;;  %v9865_v2 = vld [vmem:[#allocation5 + $0xb8c] ss:$16 sps:$4 sm:$0xff]   ;;  %v9860_v3 = vld [vmem:[#allocation5 + $0xb80] ss:$16 sps:$4 sm:$0xff]  }
 0x1b6   : > { %6767 = vmatpush1.bf16.msra.mxu0 %v9768_v4  ;;  %7423 = vmatpush1.bf16.msra.mxu1 %v9771_v5  ;;  %v9863_v4 = vld [vmem:[#allocation5 + $0xb88] ss:$16 sps:$4 sm:$0xff]   ;;  %v9868_v5 = vld [vmem:[#allocation5 + $0xba4] ss:$16 sps:$4 sm:$0xff]  }
 0x1b7   : > { %6768 = vmatprep.subr.bf16.mxu0 %v9776_v6  ;;  %7424 = vmatprep.subr.bf16.mxu1 %v9779_v7  ;;  %v9871_v6 = vld [vmem:[#allocation5 + $0xbac] ss:$16 sps:$4 sm:$0xff]   ;;  %v9866_v7 = vld [vmem:[#allocation5 + $0xba0] ss:$16 sps:$4 sm:$0xff]  }
 0x1ba   : > { %6769 = vmatpush1.bf16.msra.mxu0 %v9774_v8  ;;  %7425 = vmatpush1.bf16.msra.mxu1 %v9777_v9  ;;  %v9869_v8 = vld [vmem:[#allocation5 + $0xba8] ss:$16 sps:$4 sm:$0xff]   ;;  %v9874_v9 = vld [vmem:[#allocation5 + $0xbc4] ss:$16 sps:$4 sm:$0xff]  }
 0x1bb   : > { %6770 = vmatprep.subr.bf16.mxu0 %v9782_v10  ;;  %7426 = vmatprep.subr.bf16.mxu1 %v9785_v12  ;;  %v9877_v10 = vld [vmem:[#allocation5 + $0xbcc] ss:$16 sps:$4 sm:$0xff]   ;;  %v9872_v12 = vld [vmem:[#allocation5 + $0xbc0] ss:$16 sps:$4 sm:$0xff]  }
 0x1be   : > { %6771 = vmatpush1.bf16.msra.mxu0 %v9780_v13  ;;  %7427 = vmatpush1.bf16.msra.mxu1 %v9783_v15  ;;  %v9875_v13 = vld [vmem:[#allocation5 + $0xbc8] ss:$16 sps:$4 sm:$0xff]   ;;  %v9880_v15 = vld [vmem:[#allocation5 + $0xbe4] ss:$16 sps:$4 sm:$0xff]  }
 0x1bf   : > { %6781 = vmatprep.subr.bf16.mxu0 %v9790_v16  ;;  %7437 = vmatprep.subr.bf16.mxu1 %v9793_v18  ;;  %v9883_v16 = vld [vmem:[#allocation5 + $0xbec] ss:$16 sps:$4 sm:$0xff]   ;;  %v9878_v18 = vld [vmem:[#allocation5 + $0xbe0] ss:$16 sps:$4 sm:$0xff]  }
 0x1c1   : > { %6773 = vmatmul.mubr.bf16.vlgmr.msra.gmra.mrb[0].mxu0 %v8051_v20  ;;  %7429 = vmatmul.mubr.bf16.vlgmr.msra.gmra.mrb[0].mxu1 %v8051_v20  ;;  %v9881_v20 = vld [vmem:[#allocation5 + $0xbe8] ss:$16 sps:$4 sm:$0xff]  }
 0x1c2   : > { %6782 = vmatpush1.bf16.msra.mxu0 %v9788_v11  ;;  %7438 = vmatpush1.bf16.msra.mxu1 %v9791_v21  ;;  %v9888_v11 = vld [vmem:[#allocation5 + $0xc04] ss:$16 sps:$4 sm:$0xff]   ;;  %v9891_v21 = vld [vmem:[#allocation5 + $0xc0c] ss:$16 sps:$4 sm:$0xff]  }
 0x1c3   : > { %6783 = vmatprep.subr.bf16.mxu0 %v9796_v22  ;;  %7439 = vmatprep.subr.bf16.mxu1 %v9799_v14  ;;  %v11290_v22 = vld [vmem:[%s11241_s14 + $0x30] sm:$0xff]  ;;  %v8053_v14 = vcombine.low %v11283_v19, %v11283_v19 }
 0x1c4   : > { %6813 = vmatprep.mubr.bf16.mxu0 %v8054_v23  ;;  %7469 = vmatprep.mubr.bf16.mxu1 %v8054_v23  ;;  %v9886_v23 = vld [vmem:[#allocation5 + $0xc00] ss:$16 sps:$4 sm:$0xff]   ;;  %v9900_v19 = vld [vmem:[#allocation5 + $0xc44] ss:$16 sps:$4 sm:$0xff]  }
 0x1c6   : > { %6784 = vmatpush1.bf16.msra.mxu0 %v9794_v24  ;;  %7440 = vmatpush1.bf16.msra.mxu1 %v9797_v25  ;;  %v9889_v24 = vld [vmem:[#allocation5 + $0xc08] ss:$16 sps:$4 sm:$0xff]   ;;  %v9894_v25 = vld [vmem:[#allocation5 + $0xc24] ss:$16 sps:$4 sm:$0xff]  }
 0x1c7   : > { %6785 = vmatprep.subr.bf16.mxu0 %v9802_v17  ;;  %7441 = vmatprep.subr.bf16.mxu1 %v9805_v26  ;;  %v9897_v17 = vld [vmem:[#allocation5 + $0xc2c] ss:$16 sps:$4 sm:$0xff]   ;;  %v8056_v26 = vcombine.high %v11290_v22, %v11290_v22 }
 0x1ca   : > { %6786 = vmatpush1.bf16.msra.mxu0 %v9800_v27  ;;  %7442 = vmatpush1.bf16.msra.mxu1 %v9803_v28  ;;  %v9892_v27 = vld [vmem:[#allocation5 + $0xc20] ss:$16 sps:$4 sm:$0xff]   ;;  %v9895_v28 = vld [vmem:[#allocation5 + $0xc28] ss:$16 sps:$4 sm:$0xff]  }
 0x1cb   : > { %6787 = vmatprep.subr.bf16.mxu0 %v9808_v29  ;;  %7443 = vmatprep.subr.bf16.mxu1 %v9811_v30  ;;  %v9903_v29 = vld [vmem:[#allocation5 + $0xc4c] ss:$16 sps:$4 sm:$0xff]   ;;  %v9898_v30 = vld [vmem:[#allocation5 + $0xc40] ss:$16 sps:$4 sm:$0xff]  }
 0x1ce   : > { %6788 = vmatpush1.bf16.msra.mxu0 %v9806_v31  ;;  %7444 = vmatpush1.bf16.msra.mxu1 %v9809_v32  ;;  %v9901_v31 = vld [vmem:[#allocation5 + $0xc48] ss:$16 sps:$4 sm:$0xff]   ;;  %v9906_v32 = vld [vmem:[#allocation5 + $0xc64] ss:$16 sps:$4 sm:$0xff]  }
 0x1cf   : > { %6789 = vmatprep.subr.bf16.mxu0 %v9814_v33  ;;  %7445 = vmatprep.subr.bf16.mxu1 %v9817_v34  ;;  %v9909_v33 = vld [vmem:[#allocation5 + $0xc6c] ss:$16 sps:$4 sm:$0xff]   ;;  %v9904_v34 = vld [vmem:[#allocation5 + $0xc60] ss:$16 sps:$4 sm:$0xff]  }
 0x1d2   : > { %6790 = vmatpush1.bf16.msra.mxu0 %v9812_v35  ;;  %7446 = vmatpush1.bf16.msra.mxu1 %v9815_v36  ;;  %v9907_v35 = vld [vmem:[#allocation5 + $0xc68] ss:$16 sps:$4 sm:$0xff]   ;;  %v9912_v36 = vld [vmem:[#allocation5 + $0xc84] ss:$16 sps:$4 sm:$0xff]  }
 0x1d3   : > { %6791 = vmatprep.subr.bf16.mxu0 %v9820_v37  ;;  %7447 = vmatprep.subr.bf16.mxu1 %v9823_v38  ;;  %v9915_v37 = vld [vmem:[#allocation5 + $0xc8c] ss:$16 sps:$4 sm:$0xff]   ;;  %v9910_v38 = vld [vmem:[#allocation5 + $0xc80] ss:$16 sps:$4 sm:$0xff]  }
 0x1d6   : > { %6792 = vmatpush1.bf16.msra.mxu0 %v9818_v39  ;;  %7448 = vmatpush1.bf16.msra.mxu1 %v9821_v40  ;;  %v9913_v39 = vld [vmem:[#allocation5 + $0xc88] ss:$16 sps:$4 sm:$0xff]   ;;  %v9918_v40 = vld [vmem:[#allocation5 + $0xca4] ss:$16 sps:$4 sm:$0xff]  }
 0x1d7   : > { %6793 = vmatprep.subr.bf16.mxu0 %v9826_v41  ;;  %7449 = vmatprep.subr.bf16.mxu1 %v9829_v42  ;;  %v9921_v41 = vld [vmem:[#allocation5 + $0xcac] ss:$16 sps:$4 sm:$0xff]   ;;  %v9916_v42 = vld [vmem:[#allocation5 + $0xca0] ss:$16 sps:$4 sm:$0xff]  }
 0x1da   : > { %6794 = vmatpush1.bf16.msra.mxu0 %v9824_v43  ;;  %7450 = vmatpush1.bf16.msra.mxu1 %v9827_v44  ;;  %v9919_v43 = vld [vmem:[#allocation5 + $0xca8] ss:$16 sps:$4 sm:$0xff]   ;;  %v9924_v44 = vld [vmem:[#allocation5 + $0xcc4] ss:$16 sps:$4 sm:$0xff]  }
 0x1db   : > { %6795 = vmatprep.subr.bf16.mxu0 %v9832_v45  ;;  %7451 = vmatprep.subr.bf16.mxu1 %v9835_v46  ;;  %v9927_v45 = vld [vmem:[#allocation5 + $0xccc] ss:$16 sps:$4 sm:$0xff]   ;;  %v9922_v46 = vld [vmem:[#allocation5 + $0xcc0] ss:$16 sps:$4 sm:$0xff]  }
 0x1de   : > { %6796 = vmatpush1.bf16.msra.mxu0 %v9830_v47  ;;  %7452 = vmatpush1.bf16.msra.mxu1 %v9833_v48  ;;  %v9925_v47 = vld [vmem:[#allocation5 + $0xcc8] ss:$16 sps:$4 sm:$0xff]   ;;  %v9930_v48 = vld [vmem:[#allocation5 + $0xce4] ss:$16 sps:$4 sm:$0xff]  }
 0x1df   : > { %6797 = vmatprep.subr.bf16.mxu0 %v9838_v49  ;;  %7453 = vmatprep.subr.bf16.mxu1 %v9841_v50  ;;  %v9933_v49 = vld [vmem:[#allocation5 + $0xcec] ss:$16 sps:$4 sm:$0xff]   ;;  %v9928_v50 = vld [vmem:[#allocation5 + $0xce0] ss:$16 sps:$4 sm:$0xff]  }
 0x1e2   : > { %6798 = vmatpush1.bf16.msra.mxu0 %v9836_v51  ;;  %7454 = vmatpush1.bf16.msra.mxu1 %v9839_v52  ;;  %v9931_v51 = vld [vmem:[#allocation5 + $0xce8] ss:$16 sps:$4 sm:$0xff]   ;;  %v9936_v52 = vld [vmem:[#allocation5 + $0xd04] ss:$16 sps:$4 sm:$0xff]  }
 0x1e3   : > { %6799 = vmatprep.subr.bf16.mxu0 %v9844_v53  ;;  %7455 = vmatprep.subr.bf16.mxu1 %v9847_v54  ;;  %v9939_v53 = vld [vmem:[#allocation5 + $0xd0c] ss:$16 sps:$4 sm:$0xff]   ;;  %v9934_v54 = vld [vmem:[#allocation5 + $0xd00] ss:$16 sps:$4 sm:$0xff]  }
 0x1e6   : > { %6800 = vmatpush1.bf16.msra.mxu0 %v9842_v55  ;;  %7456 = vmatpush1.bf16.msra.mxu1 %v9845_v56  ;;  %v9937_v55 = vld [vmem:[#allocation5 + $0xd08] ss:$16 sps:$4 sm:$0xff]   ;;  %v9942_v56 = vld [vmem:[#allocation5 + $0xd24] ss:$16 sps:$4 sm:$0xff]  }
 0x1e7   : > { %6801 = vmatprep.subr.bf16.mxu0 %v9850_v57  ;;  %7457 = vmatprep.subr.bf16.mxu1 %v9853_v58  ;;  %v9945_v57 = vld [vmem:[#allocation5 + $0xd2c] ss:$16 sps:$4 sm:$0xff]   ;;  %v9940_v58 = vld [vmem:[#allocation5 + $0xd20] ss:$16 sps:$4 sm:$0xff]  }
 0x1ea   : > { %6802 = vmatpush1.bf16.msra.mxu0 %v9848_v59  ;;  %7458 = vmatpush1.bf16.msra.mxu1 %v9851_v60  ;;  %v9943_v59 = vld [vmem:[#allocation5 + $0xd28] ss:$16 sps:$4 sm:$0xff]   ;;  %v9948_v60 = vld [vmem:[#allocation5 + $0xd44] ss:$16 sps:$4 sm:$0xff]  }
 0x1eb   : > { %6803 = vmatprep.subr.bf16.mxu0 %v9856_v61  ;;  %7459 = vmatprep.subr.bf16.mxu1 %v9859_v62  ;;  %v9951_v61 = vld [vmem:[#allocation5 + $0xd4c] ss:$16 sps:$4 sm:$0xff]   ;;  %v9946_v62 = vld [vmem:[#allocation5 + $0xd40] ss:$16 sps:$4 sm:$0xff]  }
 0x1ee   : > { %6804 = vmatpush1.bf16.msra.mxu0 %v9854_v63  ;;  %7460 = vmatpush1.bf16.msra.mxu1 %v9857_v0  ;;  %v9949_v63 = vld [vmem:[#allocation5 + $0xd48] ss:$16 sps:$4 sm:$0xff]   ;;  %v9954_v0 = vld [vmem:[#allocation5 + $0xd64] ss:$16 sps:$4 sm:$0xff]  }
 0x1ef   : > { %6805 = vmatprep.subr.bf16.mxu0 %v9862_v1  ;;  %7461 = vmatprep.subr.bf16.mxu1 %v9865_v2  ;;  %v9957_v1 = vld [vmem:[#allocation5 + $0xd6c] ss:$16 sps:$4 sm:$0xff]   ;;  %v9952_v2 = vld [vmem:[#allocation5 + $0xd60] ss:$16 sps:$4 sm:$0xff]  }
 0x1f2   : > { %6806 = vmatpush1.bf16.msra.mxu0 %v9860_v3  ;;  %7462 = vmatpush1.bf16.msra.mxu1 %v9863_v4  ;;  %v9955_v3 = vld [vmem:[#allocation5 + $0xd68] ss:$16 sps:$4 sm:$0xff]   ;;  %v9960_v4 = vld [vmem:[#allocation5 + $0xd84] ss:$16 sps:$4 sm:$0xff]  }
 0x1f3   : > { %6807 = vmatprep.subr.bf16.mxu0 %v9868_v5  ;;  %7463 = vmatprep.subr.bf16.mxu1 %v9871_v6  ;;  %v9963_v5 = vld [vmem:[#allocation5 + $0xd8c] ss:$16 sps:$4 sm:$0xff]   ;;  %v9958_v6 = vld [vmem:[#allocation5 + $0xd80] ss:$16 sps:$4 sm:$0xff]  }
 0x1f6   : > { %6808 = vmatpush1.bf16.msra.mxu0 %v9866_v7  ;;  %7464 = vmatpush1.bf16.msra.mxu1 %v9869_v8  ;;  %v9961_v7 = vld [vmem:[#allocation5 + $0xd88] ss:$16 sps:$4 sm:$0xff]   ;;  %v9966_v8 = vld [vmem:[#allocation5 + $0xda4] ss:$16 sps:$4 sm:$0xff]  }
 0x1f7   : > { %6809 = vmatprep.subr.bf16.mxu0 %v9874_v9  ;;  %7465 = vmatprep.subr.bf16.mxu1 %v9877_v10  ;;  %v9969_v9 = vld [vmem:[#allocation5 + $0xdac] ss:$16 sps:$4 sm:$0xff]   ;;  %v9964_v10 = vld [vmem:[#allocation5 + $0xda0] ss:$16 sps:$4 sm:$0xff]  }
 0x1fa   : > { %6810 = vmatpush1.bf16.msra.mxu0 %v9872_v12  ;;  %7466 = vmatpush1.bf16.msra.mxu1 %v9875_v13  ;;  %v9967_v12 = vld [vmem:[#allocation5 + $0xda8] ss:$16 sps:$4 sm:$0xff]   ;;  %v9972_v13 = vld [vmem:[#allocation5 + $0xdc4] ss:$16 sps:$4 sm:$0xff]  }
 0x1fb   : > { %6811 = vmatprep.subr.bf16.mxu0 %v9880_v15  ;;  %7467 = vmatprep.subr.bf16.mxu1 %v9883_v16  ;;  %v9975_v15 = vld [vmem:[#allocation5 + $0xdcc] ss:$16 sps:$4 sm:$0xff]   ;;  %v9970_v16 = vld [vmem:[#allocation5 + $0xdc0] ss:$16 sps:$4 sm:$0xff]  }
 0x1fe   : > { %6812 = vmatpush1.bf16.msra.mxu0 %v9878_v18  ;;  %7468 = vmatpush1.bf16.msra.mxu1 %v9881_v20  ;;  %v9973_v18 = vld [vmem:[#allocation5 + $0xdc8] ss:$16 sps:$4 sm:$0xff]   ;;  %v9978_v20 = vld [vmem:[#allocation5 + $0xde4] ss:$16 sps:$4 sm:$0xff]  }
 0x1ff   : > { %6822 = vmatprep.subr.bf16.mxu0 %v9888_v11  ;;  %7478 = vmatprep.subr.bf16.mxu1 %v9891_v21  ;;  %v9981_v11 = vld [vmem:[#allocation5 + $0xdec] ss:$16 sps:$4 sm:$0xff]   ;;  %v9976_v21 = vld [vmem:[#allocation5 + $0xde0] ss:$16 sps:$4 sm:$0xff]  }
 0x201   : > { %6814 = vmatmul.mubr.bf16.vlgmr.msra.gmra.mrb[0].mxu0 %v8053_v14  ;;  %7470 = vmatmul.mubr.bf16.vlgmr.msra.gmra.mrb[0].mxu1 %v8053_v14  ;;  %v9979_v14 = vld [vmem:[#allocation5 + $0xde8] ss:$16 sps:$4 sm:$0xff]  }
 0x202   : > { %6823 = vmatpush1.bf16.msra.mxu0 %v9886_v23  ;;  %7479 = vmatpush1.bf16.msra.mxu1 %v9889_v24  ;;  %v9986_v23 = vld [vmem:[#allocation5 + $0xe04] ss:$16 sps:$4 sm:$0xff]   ;;  %v9989_v24 = vld [vmem:[#allocation5 + $0xe0c] ss:$16 sps:$4 sm:$0xff]  }
 0x203   : > { %6824 = vmatprep.subr.bf16.mxu0 %v9894_v25  ;;  %7480 = vmatprep.subr.bf16.mxu1 %v9897_v17  ;;  %v11297_v25 = vld [vmem:[%s11241_s14 + $0x38] sm:$0xff]  ;;  %v8055_v17 = vcombine.low %v11290_v22, %v11290_v22  ;;  %v9998_v22 = vld [vmem:[#allocation5 + $0xe44] ss:$16 sps:$4 sm:$0xff]  }
 0x204   : > { %6854 = vmatprep.mubr.bf16.mxu0 %v8056_v26  ;;  %7510 = vmatprep.mubr.bf16.mxu1 %v8056_v26  ;;  %v9984_v26 = vld [vmem:[#allocation5 + $0xe00] ss:$16 sps:$4 sm:$0xff]  }
 0x206   : > { %6825 = vmatpush1.bf16.msra.mxu0 %v9892_v27  ;;  %7481 = vmatpush1.bf16.msra.mxu1 %v9895_v28  ;;  %v9987_v27 = vld [vmem:[#allocation5 + $0xe08] ss:$16 sps:$4 sm:$0xff]   ;;  %v9992_v28 = vld [vmem:[#allocation5 + $0xe24] ss:$16 sps:$4 sm:$0xff]  }
 0x207   : > { %6826 = vmatprep.subr.bf16.mxu0 %v9900_v19  ;;  %7482 = vmatprep.subr.bf16.mxu1 %v9903_v29  ;;  %v9995_v19 = vld [vmem:[#allocation5 + $0xe2c] ss:$16 sps:$4 sm:$0xff]   ;;  %v8058_v29 = vcombine.high %v11297_v25, %v11297_v25 }
 0x20a   : > { %6827 = vmatpush1.bf16.msra.mxu0 %v9898_v30  ;;  %7483 = vmatpush1.bf16.msra.mxu1 %v9901_v31  ;;  %v9990_v30 = vld [vmem:[#allocation5 + $0xe20] ss:$16 sps:$4 sm:$0xff]   ;;  %v9993_v31 = vld [vmem:[#allocation5 + $0xe28] ss:$16 sps:$4 sm:$0xff]  }
 0x20b   : > { %6828 = vmatprep.subr.bf16.mxu0 %v9906_v32  ;;  %7484 = vmatprep.subr.bf16.mxu1 %v9909_v33  ;;  %v10001_v32 = vld [vmem:[#allocation5 + $0xe4c] ss:$16 sps:$4 sm:$0xff]   ;;  %v9996_v33 = vld [vmem:[#allocation5 + $0xe40] ss:$16 sps:$4 sm:$0xff]  }
 0x20e   : > { %6829 = vmatpush1.bf16.msra.mxu0 %v9904_v34  ;;  %7485 = vmatpush1.bf16.msra.mxu1 %v9907_v35  ;;  %v9999_v34 = vld [vmem:[#allocation5 + $0xe48] ss:$16 sps:$4 sm:$0xff]   ;;  %v10004_v35 = vld [vmem:[#allocation5 + $0xe64] ss:$16 sps:$4 sm:$0xff]  }
 0x20f   : > { %6830 = vmatprep.subr.bf16.mxu0 %v9912_v36  ;;  %7486 = vmatprep.subr.bf16.mxu1 %v9915_v37  ;;  %v10007_v36 = vld [vmem:[#allocation5 + $0xe6c] ss:$16 sps:$4 sm:$0xff]   ;;  %v10002_v37 = vld [vmem:[#allocation5 + $0xe60] ss:$16 sps:$4 sm:$0xff]  }
 0x212   : > { %6831 = vmatpush1.bf16.msra.mxu0 %v9910_v38  ;;  %7487 = vmatpush1.bf16.msra.mxu1 %v9913_v39  ;;  %v10005_v38 = vld [vmem:[#allocation5 + $0xe68] ss:$16 sps:$4 sm:$0xff]   ;;  %v10010_v39 = vld [vmem:[#allocation5 + $0xe84] ss:$16 sps:$4 sm:$0xff]  }
 0x213   : > { %6832 = vmatprep.subr.bf16.mxu0 %v9918_v40  ;;  %7488 = vmatprep.subr.bf16.mxu1 %v9921_v41  ;;  %v10013_v40 = vld [vmem:[#allocation5 + $0xe8c] ss:$16 sps:$4 sm:$0xff]   ;;  %v10008_v41 = vld [vmem:[#allocation5 + $0xe80] ss:$16 sps:$4 sm:$0xff]  }
 0x216   : > { %6833 = vmatpush1.bf16.msra.mxu0 %v9916_v42  ;;  %7489 = vmatpush1.bf16.msra.mxu1 %v9919_v43  ;;  %v10011_v42 = vld [vmem:[#allocation5 + $0xe88] ss:$16 sps:$4 sm:$0xff]   ;;  %v10016_v43 = vld [vmem:[#allocation5 + $0xea4] ss:$16 sps:$4 sm:$0xff]  }
 0x217   : > { %6834 = vmatprep.subr.bf16.mxu0 %v9924_v44  ;;  %7490 = vmatprep.subr.bf16.mxu1 %v9927_v45  ;;  %v10019_v44 = vld [vmem:[#allocation5 + $0xeac] ss:$16 sps:$4 sm:$0xff]   ;;  %v10014_v45 = vld [vmem:[#allocation5 + $0xea0] ss:$16 sps:$4 sm:$0xff]  }
 0x21a   : > { %6835 = vmatpush1.bf16.msra.mxu0 %v9922_v46  ;;  %7491 = vmatpush1.bf16.msra.mxu1 %v9925_v47  ;;  %v10017_v46 = vld [vmem:[#allocation5 + $0xea8] ss:$16 sps:$4 sm:$0xff]   ;;  %v10022_v47 = vld [vmem:[#allocation5 + $0xec4] ss:$16 sps:$4 sm:$0xff]  }
 0x21b   : > { %6836 = vmatprep.subr.bf16.mxu0 %v9930_v48  ;;  %7492 = vmatprep.subr.bf16.mxu1 %v9933_v49  ;;  %v10025_v48 = vld [vmem:[#allocation5 + $0xecc] ss:$16 sps:$4 sm:$0xff]   ;;  %v10020_v49 = vld [vmem:[#allocation5 + $0xec0] ss:$16 sps:$4 sm:$0xff]  }
 0x21e   : > { %6837 = vmatpush1.bf16.msra.mxu0 %v9928_v50  ;;  %7493 = vmatpush1.bf16.msra.mxu1 %v9931_v51  ;;  %v10023_v50 = vld [vmem:[#allocation5 + $0xec8] ss:$16 sps:$4 sm:$0xff]   ;;  %v10028_v51 = vld [vmem:[#allocation5 + $0xee4] ss:$16 sps:$4 sm:$0xff]  }
 0x21f   : > { %6838 = vmatprep.subr.bf16.mxu0 %v9936_v52  ;;  %7494 = vmatprep.subr.bf16.mxu1 %v9939_v53  ;;  %v10031_v52 = vld [vmem:[#allocation5 + $0xeec] ss:$16 sps:$4 sm:$0xff]   ;;  %v10026_v53 = vld [vmem:[#allocation5 + $0xee0] ss:$16 sps:$4 sm:$0xff]  }
 0x222   : > { %6839 = vmatpush1.bf16.msra.mxu0 %v9934_v54  ;;  %7495 = vmatpush1.bf16.msra.mxu1 %v9937_v55  ;;  %v10029_v54 = vld [vmem:[#allocation5 + $0xee8] ss:$16 sps:$4 sm:$0xff]   ;;  %v10034_v55 = vld [vmem:[#allocation5 + $0xf04] ss:$16 sps:$4 sm:$0xff]  }
 0x223   : > { %6840 = vmatprep.subr.bf16.mxu0 %v9942_v56  ;;  %7496 = vmatprep.subr.bf16.mxu1 %v9945_v57  ;;  %v10037_v56 = vld [vmem:[#allocation5 + $0xf0c] ss:$16 sps:$4 sm:$0xff]   ;;  %v10032_v57 = vld [vmem:[#allocation5 + $0xf00] ss:$16 sps:$4 sm:$0xff]  }
 0x226   : > { %6841 = vmatpush1.bf16.msra.mxu0 %v9940_v58  ;;  %7497 = vmatpush1.bf16.msra.mxu1 %v9943_v59  ;;  %v10035_v58 = vld [vmem:[#allocation5 + $0xf08] ss:$16 sps:$4 sm:$0xff]   ;;  %v10040_v59 = vld [vmem:[#allocation5 + $0xf24] ss:$16 sps:$4 sm:$0xff]  }
 0x227   : > { %6842 = vmatprep.subr.bf16.mxu0 %v9948_v60  ;;  %7498 = vmatprep.subr.bf16.mxu1 %v9951_v61  ;;  %v10043_v60 = vld [vmem:[#allocation5 + $0xf2c] ss:$16 sps:$4 sm:$0xff]   ;;  %v10038_v61 = vld [vmem:[#allocation5 + $0xf20] ss:$16 sps:$4 sm:$0xff]  }
 0x22a   : > { %6843 = vmatpush1.bf16.msra.mxu0 %v9946_v62  ;;  %7499 = vmatpush1.bf16.msra.mxu1 %v9949_v63  ;;  %v10041_v62 = vld [vmem:[#allocation5 + $0xf28] ss:$16 sps:$4 sm:$0xff]   ;;  %v10046_v63 = vld [vmem:[#allocation5 + $0xf44] ss:$16 sps:$4 sm:$0xff]  }
 0x22b   : > { %6844 = vmatprep.subr.bf16.mxu0 %v9954_v0  ;;  %7500 = vmatprep.subr.bf16.mxu1 %v9957_v1  ;;  %v10049_v0 = vld [vmem:[#allocation5 + $0xf4c] ss:$16 sps:$4 sm:$0xff]   ;;  %v10044_v1 = vld [vmem:[#allocation5 + $0xf40] ss:$16 sps:$4 sm:$0xff]  }
 0x22e   : > { %6845 = vmatpush1.bf16.msra.mxu0 %v9952_v2  ;;  %7501 = vmatpush1.bf16.msra.mxu1 %v9955_v3  ;;  %v10047_v2 = vld [vmem:[#allocation5 + $0xf48] ss:$16 sps:$4 sm:$0xff]   ;;  %v10052_v3 = vld [vmem:[#allocation5 + $0xf64] ss:$16 sps:$4 sm:$0xff]  }
 0x22f   : > { %6846 = vmatprep.subr.bf16.mxu0 %v9960_v4  ;;  %7502 = vmatprep.subr.bf16.mxu1 %v9963_v5  ;;  %v10055_v4 = vld [vmem:[#allocation5 + $0xf6c] ss:$16 sps:$4 sm:$0xff]   ;;  %v10050_v5 = vld [vmem:[#allocation5 + $0xf60] ss:$16 sps:$4 sm:$0xff]  }
 0x232   : > { %6847 = vmatpush1.bf16.msra.mxu0 %v9958_v6  ;;  %7503 = vmatpush1.bf16.msra.mxu1 %v9961_v7  ;;  %v10053_v6 = vld [vmem:[#allocation5 + $0xf68] ss:$16 sps:$4 sm:$0xff]   ;;  %v10058_v7 = vld [vmem:[#allocation5 + $0xf84] ss:$16 sps:$4 sm:$0xff]  }
 0x233   : > { %6848 = vmatprep.subr.bf16.mxu0 %v9966_v8  ;;  %7504 = vmatprep.subr.bf16.mxu1 %v9969_v9  ;;  %v10061_v8 = vld [vmem:[#allocation5 + $0xf8c] ss:$16 sps:$4 sm:$0xff]   ;;  %v10056_v9 = vld [vmem:[#allocation5 + $0xf80] ss:$16 sps:$4 sm:$0xff]  }
 0x236   : > { %6849 = vmatpush1.bf16.msra.mxu0 %v9964_v10  ;;  %7505 = vmatpush1.bf16.msra.mxu1 %v9967_v12  ;;  %v10059_v10 = vld [vmem:[#allocation5 + $0xf88] ss:$16 sps:$4 sm:$0xff]   ;;  %v10064_v12 = vld [vmem:[#allocation5 + $0xfa4] ss:$16 sps:$4 sm:$0xff]  }
 0x237   : > { %6850 = vmatprep.subr.bf16.mxu0 %v9972_v13  ;;  %7506 = vmatprep.subr.bf16.mxu1 %v9975_v15  ;;  %v10067_v13 = vld [vmem:[#allocation5 + $0xfac] ss:$16 sps:$4 sm:$0xff]   ;;  %v10062_v15 = vld [vmem:[#allocation5 + $0xfa0] ss:$16 sps:$4 sm:$0xff]  }
 0x23a   : > { %6851 = vmatpush1.bf16.msra.mxu0 %v9970_v16  ;;  %7507 = vmatpush1.bf16.msra.mxu1 %v9973_v18  ;;  %v10065_v16 = vld [vmem:[#allocation5 + $0xfa8] ss:$16 sps:$4 sm:$0xff]   ;;  %v10070_v18 = vld [vmem:[#allocation5 + $0xfc4] ss:$16 sps:$4 sm:$0xff]  }
 0x23b   : > { %6852 = vmatprep.subr.bf16.mxu0 %v9978_v20  ;;  %7508 = vmatprep.subr.bf16.mxu1 %v9981_v11  ;;  %v10073_v20 = vld [vmem:[#allocation5 + $0xfcc] ss:$16 sps:$4 sm:$0xff]   ;;  %v10068_v11 = vld [vmem:[#allocation5 + $0xfc0] ss:$16 sps:$4 sm:$0xff]  }
 0x23e   : > { %6853 = vmatpush1.bf16.msra.mxu0 %v9976_v21  ;;  %7509 = vmatpush1.bf16.msra.mxu1 %v9979_v14  ;;  %v10071_v21 = vld [vmem:[#allocation5 + $0xfc8] ss:$16 sps:$4 sm:$0xff]   ;;  %v10076_v14 = vld [vmem:[#allocation5 + $0xfe4] ss:$16 sps:$4 sm:$0xff]  }
 0x23f   : > { %6863 = vmatprep.subr.bf16.mxu0 %v9986_v23  ;;  %7519 = vmatprep.subr.bf16.mxu1 %v9989_v24  ;;  %v10079_v23 = vld [vmem:[#allocation5 + $0xfec] ss:$16 sps:$4 sm:$0xff]   ;;  %v10074_v24 = vld [vmem:[#allocation5 + $0xfe0] ss:$16 sps:$4 sm:$0xff]  }
 0x241   : > { %6855 = vmatmul.mubr.bf16.vlgmr.msra.gmra.mrb[0].mxu0 %v8055_v17  ;;  %7511 = vmatmul.mubr.bf16.vlgmr.msra.gmra.mrb[0].mxu1 %v8055_v17  ;;  %v10077_v17 = vld [vmem:[#allocation5 + $0xfe8] ss:$16 sps:$4 sm:$0xff]  }
 0x242   : > { %6864 = vmatpush1.bf16.msra.mxu0 %v9984_v26  ;;  %7520 = vmatpush1.bf16.msra.mxu1 %v9987_v27  ;;  %v10084_v26 = vld [vmem:[#allocation5 + $0x1004] ss:$16 sps:$4 sm:$0xff]   ;;  %v10087_v27 = vld [vmem:[#allocation5 + $0x100c] ss:$16 sps:$4 sm:$0xff]  }
 0x243   : > { %6865 = vmatprep.subr.bf16.mxu0 %v9992_v28  ;;  %7521 = vmatprep.subr.bf16.mxu1 %v9995_v19  ;;  %v11304_v28 = vld [vmem:[%s11241_s14 + $0x40] sm:$0xff]  ;;  %v8057_v19 = vcombine.low %v11297_v25, %v11297_v25 }
 0x244   : > { %6895 = vmatprep.mubr.bf16.mxu0 %v8058_v29  ;;  %7551 = vmatprep.mubr.bf16.mxu1 %v8058_v29  ;;  %v10082_v29 = vld [vmem:[#allocation5 + $0x1000] ss:$16 sps:$4 sm:$0xff]   ;;  %v10096_v25 = vld [vmem:[#allocation5 + $0x1044] ss:$16 sps:$4 sm:$0xff]  }
 0x246   : > { %6866 = vmatpush1.bf16.msra.mxu0 %v9990_v30  ;;  %7522 = vmatpush1.bf16.msra.mxu1 %v9993_v31  ;;  %v10085_v30 = vld [vmem:[#allocation5 + $0x1008] ss:$16 sps:$4 sm:$0xff]   ;;  %v10090_v31 = vld [vmem:[#allocation5 + $0x1024] ss:$16 sps:$4 sm:$0xff]  }
 0x247   : > { %6867 = vmatprep.subr.bf16.mxu0 %v9998_v22  ;;  %7523 = vmatprep.subr.bf16.mxu1 %v10001_v32  ;;  %v10093_v22 = vld [vmem:[#allocation5 + $0x102c] ss:$16 sps:$4 sm:$0xff]   ;;  %v8060_v32 = vcombine.high %v11304_v28, %v11304_v28 }
 0x24a   : > { %6868 = vmatpush1.bf16.msra.mxu0 %v9996_v33  ;;  %7524 = vmatpush1.bf16.msra.mxu1 %v9999_v34  ;;  %v10088_v33 = vld [vmem:[#allocation5 + $0x1020] ss:$16 sps:$4 sm:$0xff]   ;;  %v10091_v34 = vld [vmem:[#allocation5 + $0x1028] ss:$16 sps:$4 sm:$0xff]  }
 0x24b   : > { %6869 = vmatprep.subr.bf16.mxu0 %v10004_v35  ;;  %7525 = vmatprep.subr.bf16.mxu1 %v10007_v36  ;;  %v10099_v35 = vld [vmem:[#allocation5 + $0x104c] ss:$16 sps:$4 sm:$0xff]   ;;  %v10094_v36 = vld [vmem:[#allocation5 + $0x1040] ss:$16 sps:$4 sm:$0xff]  }
 0x24e   : > { %6870 = vmatpush1.bf16.msra.mxu0 %v10002_v37  ;;  %7526 = vmatpush1.bf16.msra.mxu1 %v10005_v38  ;;  %v10097_v37 = vld [vmem:[#allocation5 + $0x1048] ss:$16 sps:$4 sm:$0xff]   ;;  %v10102_v38 = vld [vmem:[#allocation5 + $0x1064] ss:$16 sps:$4 sm:$0xff]  }
 0x24f   : > { %6871 = vmatprep.subr.bf16.mxu0 %v10010_v39  ;;  %7527 = vmatprep.subr.bf16.mxu1 %v10013_v40  ;;  %v10105_v39 = vld [vmem:[#allocation5 + $0x106c] ss:$16 sps:$4 sm:$0xff]   ;;  %v10100_v40 = vld [vmem:[#allocation5 + $0x1060] ss:$16 sps:$4 sm:$0xff]  }
 0x252   : > { %6872 = vmatpush1.bf16.msra.mxu0 %v10008_v41  ;;  %7528 = vmatpush1.bf16.msra.mxu1 %v10011_v42  ;;  %v10103_v41 = vld [vmem:[#allocation5 + $0x1068] ss:$16 sps:$4 sm:$0xff]   ;;  %v10108_v42 = vld [vmem:[#allocation5 + $0x1084] ss:$16 sps:$4 sm:$0xff]  }
 0x253   : > { %6873 = vmatprep.subr.bf16.mxu0 %v10016_v43  ;;  %7529 = vmatprep.subr.bf16.mxu1 %v10019_v44  ;;  %v10111_v43 = vld [vmem:[#allocation5 + $0x108c] ss:$16 sps:$4 sm:$0xff]   ;;  %v10106_v44 = vld [vmem:[#allocation5 + $0x1080] ss:$16 sps:$4 sm:$0xff]  }
 0x256   : > { %6874 = vmatpush1.bf16.msra.mxu0 %v10014_v45  ;;  %7530 = vmatpush1.bf16.msra.mxu1 %v10017_v46  ;;  %v10109_v45 = vld [vmem:[#allocation5 + $0x1088] ss:$16 sps:$4 sm:$0xff]   ;;  %v10114_v46 = vld [vmem:[#allocation5 + $0x10a4] ss:$16 sps:$4 sm:$0xff]  }
 0x257   : > { %6875 = vmatprep.subr.bf16.mxu0 %v10022_v47  ;;  %7531 = vmatprep.subr.bf16.mxu1 %v10025_v48  ;;  %v10117_v47 = vld [vmem:[#allocation5 + $0x10ac] ss:$16 sps:$4 sm:$0xff]   ;;  %v10112_v48 = vld [vmem:[#allocation5 + $0x10a0] ss:$16 sps:$4 sm:$0xff]  }
 0x25a   : > { %6876 = vmatpush1.bf16.msra.mxu0 %v10020_v49  ;;  %7532 = vmatpush1.bf16.msra.mxu1 %v10023_v50  ;;  %v10115_v49 = vld [vmem:[#allocation5 + $0x10a8] ss:$16 sps:$4 sm:$0xff]   ;;  %v10120_v50 = vld [vmem:[#allocation5 + $0x10c4] ss:$16 sps:$4 sm:$0xff]  }
 0x25b   : > { %6877 = vmatprep.subr.bf16.mxu0 %v10028_v51  ;;  %7533 = vmatprep.subr.bf16.mxu1 %v10031_v52  ;;  %v10123_v51 = vld [vmem:[#allocation5 + $0x10cc] ss:$16 sps:$4 sm:$0xff]   ;;  %v10118_v52 = vld [vmem:[#allocation5 + $0x10c0] ss:$16 sps:$4 sm:$0xff]  }
 0x25e   : > { %6878 = vmatpush1.bf16.msra.mxu0 %v10026_v53  ;;  %7534 = vmatpush1.bf16.msra.mxu1 %v10029_v54  ;;  %v10121_v53 = vld [vmem:[#allocation5 + $0x10c8] ss:$16 sps:$4 sm:$0xff]   ;;  %v10126_v54 = vld [vmem:[#allocation5 + $0x10e4] ss:$16 sps:$4 sm:$0xff]  }
 0x25f   : > { %6879 = vmatprep.subr.bf16.mxu0 %v10034_v55  ;;  %7535 = vmatprep.subr.bf16.mxu1 %v10037_v56  ;;  %v10129_v55 = vld [vmem:[#allocation5 + $0x10ec] ss:$16 sps:$4 sm:$0xff]   ;;  %v10124_v56 = vld [vmem:[#allocation5 + $0x10e0] ss:$16 sps:$4 sm:$0xff]  }
 0x262   : > { %6880 = vmatpush1.bf16.msra.mxu0 %v10032_v57  ;;  %7536 = vmatpush1.bf16.msra.mxu1 %v10035_v58  ;;  %v10127_v57 = vld [vmem:[#allocation5 + $0x10e8] ss:$16 sps:$4 sm:$0xff]   ;;  %v10132_v58 = vld [vmem:[#allocation5 + $0x1104] ss:$16 sps:$4 sm:$0xff]  }
 0x263   : > { %6881 = vmatprep.subr.bf16.mxu0 %v10040_v59  ;;  %7537 = vmatprep.subr.bf16.mxu1 %v10043_v60  ;;  %v10135_v59 = vld [vmem:[#allocation5 + $0x110c] ss:$16 sps:$4 sm:$0xff]   ;;  %v10130_v60 = vld [vmem:[#allocation5 + $0x1100] ss:$16 sps:$4 sm:$0xff]  }
 0x266   : > { %6882 = vmatpush1.bf16.msra.mxu0 %v10038_v61  ;;  %7538 = vmatpush1.bf16.msra.mxu1 %v10041_v62  ;;  %v10133_v61 = vld [vmem:[#allocation5 + $0x1108] ss:$16 sps:$4 sm:$0xff]   ;;  %v10138_v62 = vld [vmem:[#allocation5 + $0x1124] ss:$16 sps:$4 sm:$0xff]  }
 0x267   : > { %6883 = vmatprep.subr.bf16.mxu0 %v10046_v63  ;;  %7539 = vmatprep.subr.bf16.mxu1 %v10049_v0  ;;  %v10141_v63 = vld [vmem:[#allocation5 + $0x112c] ss:$16 sps:$4 sm:$0xff]   ;;  %v10136_v0 = vld [vmem:[#allocation5 + $0x1120] ss:$16 sps:$4 sm:$0xff]  }
 0x26a   : > { %6884 = vmatpush1.bf16.msra.mxu0 %v10044_v1  ;;  %7540 = vmatpush1.bf16.msra.mxu1 %v10047_v2  ;;  %v10139_v1 = vld [vmem:[#allocation5 + $0x1128] ss:$16 sps:$4 sm:$0xff]   ;;  %v10144_v2 = vld [vmem:[#allocation5 + $0x1144] ss:$16 sps:$4 sm:$0xff]  }
 0x26b   : > { %6885 = vmatprep.subr.bf16.mxu0 %v10052_v3  ;;  %7541 = vmatprep.subr.bf16.mxu1 %v10055_v4  ;;  %v10147_v3 = vld [vmem:[#allocation5 + $0x114c] ss:$16 sps:$4 sm:$0xff]   ;;  %v10142_v4 = vld [vmem:[#allocation5 + $0x1140] ss:$16 sps:$4 sm:$0xff]  }
 0x26e   : > { %6886 = vmatpush1.bf16.msra.mxu0 %v10050_v5  ;;  %7542 = vmatpush1.bf16.msra.mxu1 %v10053_v6  ;;  %v10145_v5 = vld [vmem:[#allocation5 + $0x1148] ss:$16 sps:$4 sm:$0xff]   ;;  %v10150_v6 = vld [vmem:[#allocation5 + $0x1164] ss:$16 sps:$4 sm:$0xff]  }
 0x26f   : > { %6887 = vmatprep.subr.bf16.mxu0 %v10058_v7  ;;  %7543 = vmatprep.subr.bf16.mxu1 %v10061_v8  ;;  %v10153_v7 = vld [vmem:[#allocation5 + $0x116c] ss:$16 sps:$4 sm:$0xff]   ;;  %v10148_v8 = vld [vmem:[#allocation5 + $0x1160] ss:$16 sps:$4 sm:$0xff]  }
 0x272   : > { %6888 = vmatpush1.bf16.msra.mxu0 %v10056_v9  ;;  %7544 = vmatpush1.bf16.msra.mxu1 %v10059_v10  ;;  %v10151_v9 = vld [vmem:[#allocation5 + $0x1168] ss:$16 sps:$4 sm:$0xff]   ;;  %v10156_v10 = vld [vmem:[#allocation5 + $0x1184] ss:$16 sps:$4 sm:$0xff]  }
 0x273   : > { %6889 = vmatprep.subr.bf16.mxu0 %v10064_v12  ;;  %7545 = vmatprep.subr.bf16.mxu1 %v10067_v13  ;;  %v10159_v12 = vld [vmem:[#allocation5 + $0x118c] ss:$16 sps:$4 sm:$0xff]   ;;  %v10154_v13 = vld [vmem:[#allocation5 + $0x1180] ss:$16 sps:$4 sm:$0xff]  }
 0x276   : > { %6890 = vmatpush1.bf16.msra.mxu0 %v10062_v15  ;;  %7546 = vmatpush1.bf16.msra.mxu1 %v10065_v16  ;;  %v10157_v15 = vld [vmem:[#allocation5 + $0x1188] ss:$16 sps:$4 sm:$0xff]   ;;  %v10162_v16 = vld [vmem:[#allocation5 + $0x11a4] ss:$16 sps:$4 sm:$0xff]  }
 0x277   : > { %6891 = vmatprep.subr.bf16.mxu0 %v10070_v18  ;;  %7547 = vmatprep.subr.bf16.mxu1 %v10073_v20  ;;  %v10165_v18 = vld [vmem:[#allocation5 + $0x11ac] ss:$16 sps:$4 sm:$0xff]   ;;  %v10160_v20 = vld [vmem:[#allocation5 + $0x11a0] ss:$16 sps:$4 sm:$0xff]  }
 0x27a   : > { %6892 = vmatpush1.bf16.msra.mxu0 %v10068_v11  ;;  %7548 = vmatpush1.bf16.msra.mxu1 %v10071_v21  ;;  %v10163_v11 = vld [vmem:[#allocation5 + $0x11a8] ss:$16 sps:$4 sm:$0xff]   ;;  %v10168_v21 = vld [vmem:[#allocation5 + $0x11c4] ss:$16 sps:$4 sm:$0xff]  }
 0x27b   : > { %6893 = vmatprep.subr.bf16.mxu0 %v10076_v14  ;;  %7549 = vmatprep.subr.bf16.mxu1 %v10079_v23  ;;  %v10171_v14 = vld [vmem:[#allocation5 + $0x11cc] ss:$16 sps:$4 sm:$0xff]   ;;  %v10166_v23 = vld [vmem:[#allocation5 + $0x11c0] ss:$16 sps:$4 sm:$0xff]  }
 0x27e   : > { %6894 = vmatpush1.bf16.msra.mxu0 %v10074_v24  ;;  %7550 = vmatpush1.bf16.msra.mxu1 %v10077_v17  ;;  %v10169_v24 = vld [vmem:[#allocation5 + $0x11c8] ss:$16 sps:$4 sm:$0xff]   ;;  %v10174_v17 = vld [vmem:[#allocation5 + $0x11e4] ss:$16 sps:$4 sm:$0xff]  }
 0x27f   : > { %6904 = vmatprep.subr.bf16.mxu0 %v10084_v26  ;;  %7560 = vmatprep.subr.bf16.mxu1 %v10087_v27  ;;  %v10177_v26 = vld [vmem:[#allocation5 + $0x11ec] ss:$16 sps:$4 sm:$0xff]   ;;  %v10172_v27 = vld [vmem:[#allocation5 + $0x11e0] ss:$16 sps:$4 sm:$0xff]  }
 0x281   : > { %6896 = vmatmul.mubr.bf16.vlgmr.msra.gmra.mrb[0].mxu0 %v8057_v19  ;;  %7552 = vmatmul.mubr.bf16.vlgmr.msra.gmra.mrb[0].mxu1 %v8057_v19  ;;  %v10175_v19 = vld [vmem:[#allocation5 + $0x11e8] ss:$16 sps:$4 sm:$0xff]  }
 0x282   : > { %6905 = vmatpush1.bf16.msra.mxu0 %v10082_v29  ;;  %7561 = vmatpush1.bf16.msra.mxu1 %v10085_v30  ;;  %v10182_v29 = vld [vmem:[#allocation5 + $0x1204] ss:$16 sps:$4 sm:$0xff]   ;;  %v10185_v30 = vld [vmem:[#allocation5 + $0x120c] ss:$16 sps:$4 sm:$0xff]  }
 0x283   : > { %6906 = vmatprep.subr.bf16.mxu0 %v10090_v31  ;;  %7562 = vmatprep.subr.bf16.mxu1 %v10093_v22  ;;  %v11311_v31 = vld [vmem:[%s11241_s14 + $0x48] sm:$0xff]  ;;  %v8059_v22 = vcombine.low %v11304_v28, %v11304_v28  ;;  %v10194_v28 = vld [vmem:[#allocation5 + $0x1244] ss:$16 sps:$4 sm:$0xff]  }
 0x284   : > { %6936 = vmatprep.mubr.bf16.mxu0 %v8060_v32  ;;  %7592 = vmatprep.mubr.bf16.mxu1 %v8060_v32  ;;  %v10180_v32 = vld [vmem:[#allocation5 + $0x1200] ss:$16 sps:$4 sm:$0xff]  }
 0x286   : > { %6907 = vmatpush1.bf16.msra.mxu0 %v10088_v33  ;;  %7563 = vmatpush1.bf16.msra.mxu1 %v10091_v34  ;;  %v10183_v33 = vld [vmem:[#allocation5 + $0x1208] ss:$16 sps:$4 sm:$0xff]   ;;  %v10188_v34 = vld [vmem:[#allocation5 + $0x1224] ss:$16 sps:$4 sm:$0xff]  }
 0x287   : > { %6908 = vmatprep.subr.bf16.mxu0 %v10096_v25  ;;  %7564 = vmatprep.subr.bf16.mxu1 %v10099_v35  ;;  %v10191_v25 = vld [vmem:[#allocation5 + $0x122c] ss:$16 sps:$4 sm:$0xff]   ;;  %v8062_v35 = vcombine.high %v11311_v31, %v11311_v31 }
 0x28a   : > { %6909 = vmatpush1.bf16.msra.mxu0 %v10094_v36  ;;  %7565 = vmatpush1.bf16.msra.mxu1 %v10097_v37  ;;  %v10186_v36 = vld [vmem:[#allocation5 + $0x1220] ss:$16 sps:$4 sm:$0xff]   ;;  %v10189_v37 = vld [vmem:[#allocation5 + $0x1228] ss:$16 sps:$4 sm:$0xff]  }
 0x28b   : > { %6910 = vmatprep.subr.bf16.mxu0 %v10102_v38  ;;  %7566 = vmatprep.subr.bf16.mxu1 %v10105_v39  ;;  %v10197_v38 = vld [vmem:[#allocation5 + $0x124c] ss:$16 sps:$4 sm:$0xff]   ;;  %v10192_v39 = vld [vmem:[#allocation5 + $0x1240] ss:$16 sps:$4 sm:$0xff]  }
 0x28e   : > { %6911 = vmatpush1.bf16.msra.mxu0 %v10100_v40  ;;  %7567 = vmatpush1.bf16.msra.mxu1 %v10103_v41  ;;  %v10195_v40 = vld [vmem:[#allocation5 + $0x1248] ss:$16 sps:$4 sm:$0xff]   ;;  %v10200_v41 = vld [vmem:[#allocation5 + $0x1264] ss:$16 sps:$4 sm:$0xff]  }
 0x28f   : > { %6912 = vmatprep.subr.bf16.mxu0 %v10108_v42  ;;  %7568 = vmatprep.subr.bf16.mxu1 %v10111_v43  ;;  %v10203_v42 = vld [vmem:[#allocation5 + $0x126c] ss:$16 sps:$4 sm:$0xff]   ;;  %v10198_v43 = vld [vmem:[#allocation5 + $0x1260] ss:$16 sps:$4 sm:$0xff]  }
 0x292   : > { %6913 = vmatpush1.bf16.msra.mxu0 %v10106_v44  ;;  %7569 = vmatpush1.bf16.msra.mxu1 %v10109_v45  ;;  %v10201_v44 = vld [vmem:[#allocation5 + $0x1268] ss:$16 sps:$4 sm:$0xff]   ;;  %v10206_v45 = vld [vmem:[#allocation5 + $0x1284] ss:$16 sps:$4 sm:$0xff]  }
 0x293   : > { %6914 = vmatprep.subr.bf16.mxu0 %v10114_v46  ;;  %7570 = vmatprep.subr.bf16.mxu1 %v10117_v47  ;;  %v10209_v46 = vld [vmem:[#allocation5 + $0x128c] ss:$16 sps:$4 sm:$0xff]   ;;  %v10204_v47 = vld [vmem:[#allocation5 + $0x1280] ss:$16 sps:$4 sm:$0xff]  }
 0x296   : > { %6915 = vmatpush1.bf16.msra.mxu0 %v10112_v48  ;;  %7571 = vmatpush1.bf16.msra.mxu1 %v10115_v49  ;;  %v10207_v48 = vld [vmem:[#allocation5 + $0x1288] ss:$16 sps:$4 sm:$0xff]   ;;  %v10212_v49 = vld [vmem:[#allocation5 + $0x12a4] ss:$16 sps:$4 sm:$0xff]  }
 0x297   : > { %6916 = vmatprep.subr.bf16.mxu0 %v10120_v50  ;;  %7572 = vmatprep.subr.bf16.mxu1 %v10123_v51  ;;  %v10215_v50 = vld [vmem:[#allocation5 + $0x12ac] ss:$16 sps:$4 sm:$0xff]   ;;  %v10210_v51 = vld [vmem:[#allocation5 + $0x12a0] ss:$16 sps:$4 sm:$0xff]  }
 0x29a   : > { %6917 = vmatpush1.bf16.msra.mxu0 %v10118_v52  ;;  %7573 = vmatpush1.bf16.msra.mxu1 %v10121_v53  ;;  %v10213_v52 = vld [vmem:[#allocation5 + $0x12a8] ss:$16 sps:$4 sm:$0xff]   ;;  %v10218_v53 = vld [vmem:[#allocation5 + $0x12c4] ss:$16 sps:$4 sm:$0xff]  }
 0x29b   : > { %6918 = vmatprep.subr.bf16.mxu0 %v10126_v54  ;;  %7574 = vmatprep.subr.bf16.mxu1 %v10129_v55  ;;  %v10221_v54 = vld [vmem:[#allocation5 + $0x12cc] ss:$16 sps:$4 sm:$0xff]   ;;  %v10216_v55 = vld [vmem:[#allocation5 + $0x12c0] ss:$16 sps:$4 sm:$0xff]  }
 0x29e   : > { %6919 = vmatpush1.bf16.msra.mxu0 %v10124_v56  ;;  %7575 = vmatpush1.bf16.msra.mxu1 %v10127_v57  ;;  %v10219_v56 = vld [vmem:[#allocation5 + $0x12c8] ss:$16 sps:$4 sm:$0xff]   ;;  %v10224_v57 = vld [vmem:[#allocation5 + $0x12e4] ss:$16 sps:$4 sm:$0xff]  }
 0x29f   : > { %6920 = vmatprep.subr.bf16.mxu0 %v10132_v58  ;;  %7576 = vmatprep.subr.bf16.mxu1 %v10135_v59  ;;  %v10227_v58 = vld [vmem:[#allocation5 + $0x12ec] ss:$16 sps:$4 sm:$0xff]   ;;  %v10222_v59 = vld [vmem:[#allocation5 + $0x12e0] ss:$16 sps:$4 sm:$0xff]  }
 0x2a2   : > { %6921 = vmatpush1.bf16.msra.mxu0 %v10130_v60  ;;  %7577 = vmatpush1.bf16.msra.mxu1 %v10133_v61  ;;  %v10225_v60 = vld [vmem:[#allocation5 + $0x12e8] ss:$16 sps:$4 sm:$0xff]   ;;  %v10230_v61 = vld [vmem:[#allocation5 + $0x1304] ss:$16 sps:$4 sm:$0xff]  }
 0x2a3   : > { %6922 = vmatprep.subr.bf16.mxu0 %v10138_v62  ;;  %7578 = vmatprep.subr.bf16.mxu1 %v10141_v63  ;;  %v10233_v62 = vld [vmem:[#allocation5 + $0x130c] ss:$16 sps:$4 sm:$0xff]   ;;  %v10228_v63 = vld [vmem:[#allocation5 + $0x1300] ss:$16 sps:$4 sm:$0xff]  }
 0x2a6   : > { %6923 = vmatpush1.bf16.msra.mxu0 %v10136_v0  ;;  %7579 = vmatpush1.bf16.msra.mxu1 %v10139_v1  ;;  %v10231_v0 = vld [vmem:[#allocation5 + $0x1308] ss:$16 sps:$4 sm:$0xff]   ;;  %v10236_v1 = vld [vmem:[#allocation5 + $0x1324] ss:$16 sps:$4 sm:$0xff]  }
 0x2a7   : > { %6924 = vmatprep.subr.bf16.mxu0 %v10144_v2  ;;  %7580 = vmatprep.subr.bf16.mxu1 %v10147_v3  ;;  %v10239_v2 = vld [vmem:[#allocation5 + $0x132c] ss:$16 sps:$4 sm:$0xff]   ;;  %v10234_v3 = vld [vmem:[#allocation5 + $0x1320] ss:$16 sps:$4 sm:$0xff]  }
 0x2aa   : > { %6925 = vmatpush1.bf16.msra.mxu0 %v10142_v4  ;;  %7581 = vmatpush1.bf16.msra.mxu1 %v10145_v5  ;;  %v10237_v4 = vld [vmem:[#allocation5 + $0x1328] ss:$16 sps:$4 sm:$0xff]   ;;  %v10242_v5 = vld [vmem:[#allocation5 + $0x1344] ss:$16 sps:$4 sm:$0xff]  }
 0x2ab   : > { %6926 = vmatprep.subr.bf16.mxu0 %v10150_v6  ;;  %7582 = vmatprep.subr.bf16.mxu1 %v10153_v7  ;;  %v10245_v6 = vld [vmem:[#allocation5 + $0x134c] ss:$16 sps:$4 sm:$0xff]   ;;  %v10240_v7 = vld [vmem:[#allocation5 + $0x1340] ss:$16 sps:$4 sm:$0xff]  }
 0x2ae   : > { %6927 = vmatpush1.bf16.msra.mxu0 %v10148_v8  ;;  %7583 = vmatpush1.bf16.msra.mxu1 %v10151_v9  ;;  %v10243_v8 = vld [vmem:[#allocation5 + $0x1348] ss:$16 sps:$4 sm:$0xff]   ;;  %v10248_v9 = vld [vmem:[#allocation5 + $0x1364] ss:$16 sps:$4 sm:$0xff]  }
 0x2af   : > { %6928 = vmatprep.subr.bf16.mxu0 %v10156_v10  ;;  %7584 = vmatprep.subr.bf16.mxu1 %v10159_v12  ;;  %v10251_v10 = vld [vmem:[#allocation5 + $0x136c] ss:$16 sps:$4 sm:$0xff]   ;;  %v10246_v12 = vld [vmem:[#allocation5 + $0x1360] ss:$16 sps:$4 sm:$0xff]  }
 0x2b2   : > { %6929 = vmatpush1.bf16.msra.mxu0 %v10154_v13  ;;  %7585 = vmatpush1.bf16.msra.mxu1 %v10157_v15  ;;  %v10249_v13 = vld [vmem:[#allocation5 + $0x1368] ss:$16 sps:$4 sm:$0xff]   ;;  %v10254_v15 = vld [vmem:[#allocation5 + $0x1384] ss:$16 sps:$4 sm:$0xff]  }
 0x2b3   : > { %6930 = vmatprep.subr.bf16.mxu0 %v10162_v16  ;;  %7586 = vmatprep.subr.bf16.mxu1 %v10165_v18  ;;  %v10257_v16 = vld [vmem:[#allocation5 + $0x138c] ss:$16 sps:$4 sm:$0xff]   ;;  %v10252_v18 = vld [vmem:[#allocation5 + $0x1380] ss:$16 sps:$4 sm:$0xff]  }
 0x2b6   : > { %6931 = vmatpush1.bf16.msra.mxu0 %v10160_v20  ;;  %7587 = vmatpush1.bf16.msra.mxu1 %v10163_v11  ;;  %v10255_v20 = vld [vmem:[#allocation5 + $0x1388] ss:$16 sps:$4 sm:$0xff]   ;;  %v10260_v11 = vld [vmem:[#allocation5 + $0x13a4] ss:$16 sps:$4 sm:$0xff]  }
 0x2b7   : > { %6932 = vmatprep.subr.bf16.mxu0 %v10168_v21  ;;  %7588 = vmatprep.subr.bf16.mxu1 %v10171_v14  ;;  %v10263_v21 = vld [vmem:[#allocation5 + $0x13ac] ss:$16 sps:$4 sm:$0xff]   ;;  %v10258_v14 = vld [vmem:[#allocation5 + $0x13a0] ss:$16 sps:$4 sm:$0xff]  }
 0x2ba   : > { %6933 = vmatpush1.bf16.msra.mxu0 %v10166_v23  ;;  %7589 = vmatpush1.bf16.msra.mxu1 %v10169_v24  ;;  %v10261_v23 = vld [vmem:[#allocation5 + $0x13a8] ss:$16 sps:$4 sm:$0xff]   ;;  %v10266_v24 = vld [vmem:[#allocation5 + $0x13c4] ss:$16 sps:$4 sm:$0xff]  }
 0x2bb   : > { %6934 = vmatprep.subr.bf16.mxu0 %v10174_v17  ;;  %7590 = vmatprep.subr.bf16.mxu1 %v10177_v26  ;;  %v10269_v17 = vld [vmem:[#allocation5 + $0x13cc] ss:$16 sps:$4 sm:$0xff]   ;;  %v10264_v26 = vld [vmem:[#allocation5 + $0x13c0] ss:$16 sps:$4 sm:$0xff]  }
 0x2be   : > { %6935 = vmatpush1.bf16.msra.mxu0 %v10172_v27  ;;  %7591 = vmatpush1.bf16.msra.mxu1 %v10175_v19  ;;  %v10267_v27 = vld [vmem:[#allocation5 + $0x13c8] ss:$16 sps:$4 sm:$0xff]   ;;  %v10272_v19 = vld [vmem:[#allocation5 + $0x13e4] ss:$16 sps:$4 sm:$0xff]  }
 0x2bf   : > { %6945 = vmatprep.subr.bf16.mxu0 %v10182_v29  ;;  %7601 = vmatprep.subr.bf16.mxu1 %v10185_v30  ;;  %v10275_v29 = vld [vmem:[#allocation5 + $0x13ec] ss:$16 sps:$4 sm:$0xff]   ;;  %v10270_v30 = vld [vmem:[#allocation5 + $0x13e0] ss:$16 sps:$4 sm:$0xff]  }
 0x2c1   : > { %6937 = vmatmul.mubr.bf16.vlgmr.msra.gmra.mrb[0].mxu0 %v8059_v22  ;;  %7593 = vmatmul.mubr.bf16.vlgmr.msra.gmra.mrb[0].mxu1 %v8059_v22  ;;  %v10273_v22 = vld [vmem:[#allocation5 + $0x13e8] ss:$16 sps:$4 sm:$0xff]  }
 0x2c2   : > { %6946 = vmatpush1.bf16.msra.mxu0 %v10180_v32  ;;  %7602 = vmatpush1.bf16.msra.mxu1 %v10183_v33  ;;  %v10280_v32 = vld [vmem:[#allocation5 + $0x1404] ss:$16 sps:$4 sm:$0xff]   ;;  %v10283_v33 = vld [vmem:[#allocation5 + $0x140c] ss:$16 sps:$4 sm:$0xff]  }
 0x2c3   : > { %6947 = vmatprep.subr.bf16.mxu0 %v10188_v34  ;;  %7603 = vmatprep.subr.bf16.mxu1 %v10191_v25  ;;  %v8061_v34 = vcombine.low %v11311_v31, %v11311_v31  ;;  %v11320_v25 = vld [vmem:[%s11241_s14 + $0x50] sm:$0xff] }
 0x2c4   : > { %6977 = vmatprep.mubr.bf16.mxu0 %v8062_v35  ;;  %7633 = vmatprep.mubr.bf16.mxu1 %v8062_v35  ;;  %v10278_v35 = vld [vmem:[#allocation5 + $0x1400] ss:$16 sps:$4 sm:$0xff]   ;;  %v10292_v31 = vld [vmem:[#allocation5 + $0x1444] ss:$16 sps:$4 sm:$0xff]  }
 0x2c6   : > { %6948 = vmatpush1.bf16.msra.mxu0 %v10186_v36  ;;  %7604 = vmatpush1.bf16.msra.mxu1 %v10189_v37  ;;  %v10281_v36 = vld [vmem:[#allocation5 + $0x1408] ss:$16 sps:$4 sm:$0xff]   ;;  %v10286_v37 = vld [vmem:[#allocation5 + $0x1424] ss:$16 sps:$4 sm:$0xff]  }
 0x2c7   : > { %6949 = vmatprep.subr.bf16.mxu0 %v10194_v28  ;;  %7605 = vmatprep.subr.bf16.mxu1 %v10197_v38  ;;  %v10289_v28 = vld [vmem:[#allocation5 + $0x142c] ss:$16 sps:$4 sm:$0xff]   ;;  %v8064_v38 = vcombine.high %v11320_v25, %v11320_v25 }
 0x2ca   : > { %6950 = vmatpush1.bf16.msra.mxu0 %v10192_v39  ;;  %7606 = vmatpush1.bf16.msra.mxu1 %v10195_v40  ;;  %v10284_v39 = vld [vmem:[#allocation5 + $0x1420] ss:$16 sps:$4 sm:$0xff]   ;;  %v10287_v40 = vld [vmem:[#allocation5 + $0x1428] ss:$16 sps:$4 sm:$0xff]  }
 0x2cb   : > { %6951 = vmatprep.subr.bf16.mxu0 %v10200_v41  ;;  %7607 = vmatprep.subr.bf16.mxu1 %v10203_v42  ;;  %v10295_v41 = vld [vmem:[#allocation5 + $0x144c] ss:$16 sps:$4 sm:$0xff]   ;;  %v10290_v42 = vld [vmem:[#allocation5 + $0x1440] ss:$16 sps:$4 sm:$0xff]  }
 0x2ce   : > { %6952 = vmatpush1.bf16.msra.mxu0 %v10198_v43  ;;  %7608 = vmatpush1.bf16.msra.mxu1 %v10201_v44  ;;  %v10293_v43 = vld [vmem:[#allocation5 + $0x1448] ss:$16 sps:$4 sm:$0xff]   ;;  %v10298_v44 = vld [vmem:[#allocation5 + $0x1464] ss:$16 sps:$4 sm:$0xff]  }
 0x2cf   : > { %6953 = vmatprep.subr.bf16.mxu0 %v10206_v45  ;;  %7609 = vmatprep.subr.bf16.mxu1 %v10209_v46  ;;  %v10301_v45 = vld [vmem:[#allocation5 + $0x146c] ss:$16 sps:$4 sm:$0xff]   ;;  %v10296_v46 = vld [vmem:[#allocation5 + $0x1460] ss:$16 sps:$4 sm:$0xff]  }
 0x2d2   : > { %6954 = vmatpush1.bf16.msra.mxu0 %v10204_v47  ;;  %7610 = vmatpush1.bf16.msra.mxu1 %v10207_v48  ;;  %v10299_v47 = vld [vmem:[#allocation5 + $0x1468] ss:$16 sps:$4 sm:$0xff]   ;;  %v10304_v48 = vld [vmem:[#allocation5 + $0x1484] ss:$16 sps:$4 sm:$0xff]  }
 0x2d3   : > { %6955 = vmatprep.subr.bf16.mxu0 %v10212_v49  ;;  %7611 = vmatprep.subr.bf16.mxu1 %v10215_v50  ;;  %v10307_v49 = vld [vmem:[#allocation5 + $0x148c] ss:$16 sps:$4 sm:$0xff]   ;;  %v10302_v50 = vld [vmem:[#allocation5 + $0x1480] ss:$16 sps:$4 sm:$0xff]  }
 0x2d6   : > { %6956 = vmatpush1.bf16.msra.mxu0 %v10210_v51  ;;  %7612 = vmatpush1.bf16.msra.mxu1 %v10213_v52  ;;  %v10305_v51 = vld [vmem:[#allocation5 + $0x1488] ss:$16 sps:$4 sm:$0xff]   ;;  %v10310_v52 = vld [vmem:[#allocation5 + $0x14a4] ss:$16 sps:$4 sm:$0xff]  }
 0x2d7   : > { %6957 = vmatprep.subr.bf16.mxu0 %v10218_v53  ;;  %7613 = vmatprep.subr.bf16.mxu1 %v10221_v54  ;;  %v10313_v53 = vld [vmem:[#allocation5 + $0x14ac] ss:$16 sps:$4 sm:$0xff]   ;;  %v10308_v54 = vld [vmem:[#allocation5 + $0x14a0] ss:$16 sps:$4 sm:$0xff]  }
 0x2da   : > { %6958 = vmatpush1.bf16.msra.mxu0 %v10216_v55  ;;  %7614 = vmatpush1.bf16.msra.mxu1 %v10219_v56  ;;  %v10311_v55 = vld [vmem:[#allocation5 + $0x14a8] ss:$16 sps:$4 sm:$0xff]   ;;  %v10316_v56 = vld [vmem:[#allocation5 + $0x14c4] ss:$16 sps:$4 sm:$0xff]  }
 0x2db   : > { %6959 = vmatprep.subr.bf16.mxu0 %v10224_v57  ;;  %7615 = vmatprep.subr.bf16.mxu1 %v10227_v58  ;;  %v10319_v57 = vld [vmem:[#allocation5 + $0x14cc] ss:$16 sps:$4 sm:$0xff]   ;;  %v10314_v58 = vld [vmem:[#allocation5 + $0x14c0] ss:$16 sps:$4 sm:$0xff]  }
 0x2de   : > { %6960 = vmatpush1.bf16.msra.mxu0 %v10222_v59  ;;  %7616 = vmatpush1.bf16.msra.mxu1 %v10225_v60  ;;  %v10317_v59 = vld [vmem:[#allocation5 + $0x14c8] ss:$16 sps:$4 sm:$0xff]   ;;  %v10322_v60 = vld [vmem:[#allocation5 + $0x14e4] ss:$16 sps:$4 sm:$0xff]  }
 0x2df   : > { %6961 = vmatprep.subr.bf16.mxu0 %v10230_v61  ;;  %7617 = vmatprep.subr.bf16.mxu1 %v10233_v62  ;;  %v10325_v61 = vld [vmem:[#allocation5 + $0x14ec] ss:$16 sps:$4 sm:$0xff]   ;;  %v10320_v62 = vld [vmem:[#allocation5 + $0x14e0] ss:$16 sps:$4 sm:$0xff]  }
 0x2e2   : > { %6962 = vmatpush1.bf16.msra.mxu0 %v10228_v63  ;;  %7618 = vmatpush1.bf16.msra.mxu1 %v10231_v0  ;;  %v10323_v63 = vld [vmem:[#allocation5 + $0x14e8] ss:$16 sps:$4 sm:$0xff]   ;;  %v10328_v0 = vld [vmem:[#allocation5 + $0x1504] ss:$16 sps:$4 sm:$0xff]  }
 0x2e3   : > { %6963 = vmatprep.subr.bf16.mxu0 %v10236_v1  ;;  %7619 = vmatprep.subr.bf16.mxu1 %v10239_v2  ;;  %v10331_v1 = vld [vmem:[#allocation5 + $0x150c] ss:$16 sps:$4 sm:$0xff]   ;;  %v10326_v2 = vld [vmem:[#allocation5 + $0x1500] ss:$16 sps:$4 sm:$0xff]  }
 0x2e6   : > { %6964 = vmatpush1.bf16.msra.mxu0 %v10234_v3  ;;  %7620 = vmatpush1.bf16.msra.mxu1 %v10237_v4  ;;  %v10329_v3 = vld [vmem:[#allocation5 + $0x1508] ss:$16 sps:$4 sm:$0xff]   ;;  %v10334_v4 = vld [vmem:[#allocation5 + $0x1524] ss:$16 sps:$4 sm:$0xff]  }
 0x2e7   : > { %6965 = vmatprep.subr.bf16.mxu0 %v10242_v5  ;;  %7621 = vmatprep.subr.bf16.mxu1 %v10245_v6  ;;  %v10337_v5 = vld [vmem:[#allocation5 + $0x152c] ss:$16 sps:$4 sm:$0xff]   ;;  %v10332_v6 = vld [vmem:[#allocation5 + $0x1520] ss:$16 sps:$4 sm:$0xff]  }
 0x2ea   : > { %6966 = vmatpush1.bf16.msra.mxu0 %v10240_v7  ;;  %7622 = vmatpush1.bf16.msra.mxu1 %v10243_v8  ;;  %v10335_v7 = vld [vmem:[#allocation5 + $0x1528] ss:$16 sps:$4 sm:$0xff]   ;;  %v10340_v8 = vld [vmem:[#allocation5 + $0x1544] ss:$16 sps:$4 sm:$0xff]  }
 0x2eb   : > { %6967 = vmatprep.subr.bf16.mxu0 %v10248_v9  ;;  %7623 = vmatprep.subr.bf16.mxu1 %v10251_v10  ;;  %v10343_v9 = vld [vmem:[#allocation5 + $0x154c] ss:$16 sps:$4 sm:$0xff]   ;;  %v10338_v10 = vld [vmem:[#allocation5 + $0x1540] ss:$16 sps:$4 sm:$0xff]  }
 0x2ee   : > { %6968 = vmatpush1.bf16.msra.mxu0 %v10246_v12  ;;  %7624 = vmatpush1.bf16.msra.mxu1 %v10249_v13  ;;  %v10341_v12 = vld [vmem:[#allocation5 + $0x1548] ss:$16 sps:$4 sm:$0xff]   ;;  %v10346_v13 = vld [vmem:[#allocation5 + $0x1564] ss:$16 sps:$4 sm:$0xff]  }
 0x2ef   : > { %6969 = vmatprep.subr.bf16.mxu0 %v10254_v15  ;;  %7625 = vmatprep.subr.bf16.mxu1 %v10257_v16  ;;  %v10349_v15 = vld [vmem:[#allocation5 + $0x156c] ss:$16 sps:$4 sm:$0xff]   ;;  %v10344_v16 = vld [vmem:[#allocation5 + $0x1560] ss:$16 sps:$4 sm:$0xff]  }
 0x2f2   : > { %6970 = vmatpush1.bf16.msra.mxu0 %v10252_v18  ;;  %7626 = vmatpush1.bf16.msra.mxu1 %v10255_v20  ;;  %v10347_v18 = vld [vmem:[#allocation5 + $0x1568] ss:$16 sps:$4 sm:$0xff]   ;;  %v10352_v20 = vld [vmem:[#allocation5 + $0x1584] ss:$16 sps:$4 sm:$0xff]  }
 0x2f3   : > { %6971 = vmatprep.subr.bf16.mxu0 %v10260_v11  ;;  %7627 = vmatprep.subr.bf16.mxu1 %v10263_v21  ;;  %v10355_v11 = vld [vmem:[#allocation5 + $0x158c] ss:$16 sps:$4 sm:$0xff]   ;;  %v10350_v21 = vld [vmem:[#allocation5 + $0x1580] ss:$16 sps:$4 sm:$0xff]  }
 0x2f6   : > { %6972 = vmatpush1.bf16.msra.mxu0 %v10258_v14  ;;  %7628 = vmatpush1.bf16.msra.mxu1 %v10261_v23  ;;  %v10353_v14 = vld [vmem:[#allocation5 + $0x1588] ss:$16 sps:$4 sm:$0xff]   ;;  %v10358_v23 = vld [vmem:[#allocation5 + $0x15a4] ss:$16 sps:$4 sm:$0xff]  }
 0x2f7   : > { %6973 = vmatprep.subr.bf16.mxu0 %v10266_v24  ;;  %7629 = vmatprep.subr.bf16.mxu1 %v10269_v17  ;;  %v10361_v24 = vld [vmem:[#allocation5 + $0x15ac] ss:$16 sps:$4 sm:$0xff]   ;;  %v10356_v17 = vld [vmem:[#allocation5 + $0x15a0] ss:$16 sps:$4 sm:$0xff]  }
 0x2fa   : > { %6974 = vmatpush1.bf16.msra.mxu0 %v10264_v26  ;;  %7630 = vmatpush1.bf16.msra.mxu1 %v10267_v27  ;;  %v10359_v26 = vld [vmem:[#allocation5 + $0x15a8] ss:$16 sps:$4 sm:$0xff]   ;;  %v10364_v27 = vld [vmem:[#allocation5 + $0x15c4] ss:$16 sps:$4 sm:$0xff]  }
 0x2fb   : > { %6975 = vmatprep.subr.bf16.mxu0 %v10272_v19  ;;  %7631 = vmatprep.subr.bf16.mxu1 %v10275_v29  ;;  %v10367_v19 = vld [vmem:[#allocation5 + $0x15cc] ss:$16 sps:$4 sm:$0xff]   ;;  %v10362_v29 = vld [vmem:[#allocation5 + $0x15c0] ss:$16 sps:$4 sm:$0xff]  }
 0x2fe   : > { %6976 = vmatpush1.bf16.msra.mxu0 %v10270_v30  ;;  %7632 = vmatpush1.bf16.msra.mxu1 %v10273_v22  ;;  %v10365_v30 = vld [vmem:[#allocation5 + $0x15c8] ss:$16 sps:$4 sm:$0xff]   ;;  %v10370_v22 = vld [vmem:[#allocation5 + $0x15e4] ss:$16 sps:$4 sm:$0xff]  }
 0x2ff   : > { %6986 = vmatprep.subr.bf16.mxu0 %v10280_v32  ;;  %7642 = vmatprep.subr.bf16.mxu1 %v10283_v33  ;;  %v10373_v32 = vld [vmem:[#allocation5 + $0x15ec] ss:$16 sps:$4 sm:$0xff]   ;;  %v10368_v33 = vld [vmem:[#allocation5 + $0x15e0] ss:$16 sps:$4 sm:$0xff]  }
 0x301   : > { %6978 = vmatmul.mubr.bf16.vlgmr.msra.gmra.mrb[0].mxu0 %v8061_v34  ;;  %7634 = vmatmul.mubr.bf16.vlgmr.msra.gmra.mrb[0].mxu1 %v8061_v34  ;;  %v10371_v34 = vld [vmem:[#allocation5 + $0x15e8] ss:$16 sps:$4 sm:$0xff]  }
 0x302   : > { %6987 = vmatpush1.bf16.msra.mxu0 %v10278_v35  ;;  %7643 = vmatpush1.bf16.msra.mxu1 %v10281_v36  ;;  %v10378_v35 = vld [vmem:[#allocation5 + $0x1604] ss:$16 sps:$4 sm:$0xff]   ;;  %v10381_v36 = vld [vmem:[#allocation5 + $0x160c] ss:$16 sps:$4 sm:$0xff]  }
 0x303   : > { %6988 = vmatprep.subr.bf16.mxu0 %v10286_v37  ;;  %7644 = vmatprep.subr.bf16.mxu1 %v10289_v28  ;;  %v8063_v37 = vcombine.low %v11320_v25, %v11320_v25  ;;  %v11327_v28 = vld [vmem:[%s11241_s14 + $0x58] sm:$0xff]  ;;  %v10390_v25 = vld [vmem:[#allocation5 + $0x1644] ss:$16 sps:$4 sm:$0xff]  }
 0x304   : > { %7018 = vmatprep.mubr.bf16.mxu0 %v8064_v38  ;;  %7674 = vmatprep.mubr.bf16.mxu1 %v8064_v38  ;;  %v10376_v38 = vld [vmem:[#allocation5 + $0x1600] ss:$16 sps:$4 sm:$0xff]  }
 0x306   : > { %6989 = vmatpush1.bf16.msra.mxu0 %v10284_v39  ;;  %7645 = vmatpush1.bf16.msra.mxu1 %v10287_v40  ;;  %v10379_v39 = vld [vmem:[#allocation5 + $0x1608] ss:$16 sps:$4 sm:$0xff]   ;;  %v10384_v40 = vld [vmem:[#allocation5 + $0x1624] ss:$16 sps:$4 sm:$0xff]  }
 0x307   : > { %6990 = vmatprep.subr.bf16.mxu0 %v10292_v31  ;;  %7646 = vmatprep.subr.bf16.mxu1 %v10295_v41  ;;  %v10387_v31 = vld [vmem:[#allocation5 + $0x162c] ss:$16 sps:$4 sm:$0xff]   ;;  %v8066_v41 = vcombine.high %v11327_v28, %v11327_v28 }
 0x30a   : > { %6991 = vmatpush1.bf16.msra.mxu0 %v10290_v42  ;;  %7647 = vmatpush1.bf16.msra.mxu1 %v10293_v43  ;;  %v10382_v42 = vld [vmem:[#allocation5 + $0x1620] ss:$16 sps:$4 sm:$0xff]   ;;  %v10385_v43 = vld [vmem:[#allocation5 + $0x1628] ss:$16 sps:$4 sm:$0xff]  }
 0x30b   : > { %6992 = vmatprep.subr.bf16.mxu0 %v10298_v44  ;;  %7648 = vmatprep.subr.bf16.mxu1 %v10301_v45  ;;  %v10393_v44 = vld [vmem:[#allocation5 + $0x164c] ss:$16 sps:$4 sm:$0xff]   ;;  %v10388_v45 = vld [vmem:[#allocation5 + $0x1640] ss:$16 sps:$4 sm:$0xff]  }
 0x30e   : > { %6993 = vmatpush1.bf16.msra.mxu0 %v10296_v46  ;;  %7649 = vmatpush1.bf16.msra.mxu1 %v10299_v47  ;;  %v10391_v46 = vld [vmem:[#allocation5 + $0x1648] ss:$16 sps:$4 sm:$0xff]   ;;  %v10396_v47 = vld [vmem:[#allocation5 + $0x1664] ss:$16 sps:$4 sm:$0xff]  }
 0x30f   : > { %6994 = vmatprep.subr.bf16.mxu0 %v10304_v48  ;;  %7650 = vmatprep.subr.bf16.mxu1 %v10307_v49  ;;  %v10399_v48 = vld [vmem:[#allocation5 + $0x166c] ss:$16 sps:$4 sm:$0xff]   ;;  %v10394_v49 = vld [vmem:[#allocation5 + $0x1660] ss:$16 sps:$4 sm:$0xff]  }
 0x312   : > { %6995 = vmatpush1.bf16.msra.mxu0 %v10302_v50  ;;  %7651 = vmatpush1.bf16.msra.mxu1 %v10305_v51  ;;  %v10397_v50 = vld [vmem:[#allocation5 + $0x1668] ss:$16 sps:$4 sm:$0xff]   ;;  %v10402_v51 = vld [vmem:[#allocation5 + $0x1684] ss:$16 sps:$4 sm:$0xff]  }
 0x313   : > { %6996 = vmatprep.subr.bf16.mxu0 %v10310_v52  ;;  %7652 = vmatprep.subr.bf16.mxu1 %v10313_v53  ;;  %v10405_v52 = vld [vmem:[#allocation5 + $0x168c] ss:$16 sps:$4 sm:$0xff]   ;;  %v10400_v53 = vld [vmem:[#allocation5 + $0x1680] ss:$16 sps:$4 sm:$0xff]  }
 0x316   : > { %6997 = vmatpush1.bf16.msra.mxu0 %v10308_v54  ;;  %7653 = vmatpush1.bf16.msra.mxu1 %v10311_v55  ;;  %v10403_v54 = vld [vmem:[#allocation5 + $0x1688] ss:$16 sps:$4 sm:$0xff]   ;;  %v10408_v55 = vld [vmem:[#allocation5 + $0x16a4] ss:$16 sps:$4 sm:$0xff]  }
 0x317   : > { %6998 = vmatprep.subr.bf16.mxu0 %v10316_v56  ;;  %7654 = vmatprep.subr.bf16.mxu1 %v10319_v57  ;;  %v10411_v56 = vld [vmem:[#allocation5 + $0x16ac] ss:$16 sps:$4 sm:$0xff]   ;;  %v10406_v57 = vld [vmem:[#allocation5 + $0x16a0] ss:$16 sps:$4 sm:$0xff]  }
 0x31a   : > { %6999 = vmatpush1.bf16.msra.mxu0 %v10314_v58  ;;  %7655 = vmatpush1.bf16.msra.mxu1 %v10317_v59  ;;  %v10409_v58 = vld [vmem:[#allocation5 + $0x16a8] ss:$16 sps:$4 sm:$0xff]   ;;  %v10414_v59 = vld [vmem:[#allocation5 + $0x16c4] ss:$16 sps:$4 sm:$0xff]  }
 0x31b   : > { %7000 = vmatprep.subr.bf16.mxu0 %v10322_v60  ;;  %7656 = vmatprep.subr.bf16.mxu1 %v10325_v61  ;;  %v10417_v60 = vld [vmem:[#allocation5 + $0x16cc] ss:$16 sps:$4 sm:$0xff]   ;;  %v10412_v61 = vld [vmem:[#allocation5 + $0x16c0] ss:$16 sps:$4 sm:$0xff]  }
 0x31e   : > { %7001 = vmatpush1.bf16.msra.mxu0 %v10320_v62  ;;  %7657 = vmatpush1.bf16.msra.mxu1 %v10323_v63  ;;  %v10415_v62 = vld [vmem:[#allocation5 + $0x16c8] ss:$16 sps:$4 sm:$0xff]   ;;  %v10420_v63 = vld [vmem:[#allocation5 + $0x16e4] ss:$16 sps:$4 sm:$0xff]  }
 0x31f   : > { %7002 = vmatprep.subr.bf16.mxu0 %v10328_v0  ;;  %7658 = vmatprep.subr.bf16.mxu1 %v10331_v1  ;;  %v10423_v0 = vld [vmem:[#allocation5 + $0x16ec] ss:$16 sps:$4 sm:$0xff]   ;;  %v10418_v1 = vld [vmem:[#allocation5 + $0x16e0] ss:$16 sps:$4 sm:$0xff]  }
 0x322   : > { %7003 = vmatpush1.bf16.msra.mxu0 %v10326_v2  ;;  %7659 = vmatpush1.bf16.msra.mxu1 %v10329_v3  ;;  %v10421_v2 = vld [vmem:[#allocation5 + $0x16e8] ss:$16 sps:$4 sm:$0xff]   ;;  %v10426_v3 = vld [vmem:[#allocation5 + $0x1704] ss:$16 sps:$4 sm:$0xff]  }
 0x323   : > { %7004 = vmatprep.subr.bf16.mxu0 %v10334_v4  ;;  %7660 = vmatprep.subr.bf16.mxu1 %v10337_v5  ;;  %v10429_v4 = vld [vmem:[#allocation5 + $0x170c] ss:$16 sps:$4 sm:$0xff]   ;;  %v10424_v5 = vld [vmem:[#allocation5 + $0x1700] ss:$16 sps:$4 sm:$0xff]  }
 0x326   : > { %7005 = vmatpush1.bf16.msra.mxu0 %v10332_v6  ;;  %7661 = vmatpush1.bf16.msra.mxu1 %v10335_v7  ;;  %v10427_v6 = vld [vmem:[#allocation5 + $0x1708] ss:$16 sps:$4 sm:$0xff]   ;;  %v10432_v7 = vld [vmem:[#allocation5 + $0x1724] ss:$16 sps:$4 sm:$0xff]  }
 0x327   : > { %7006 = vmatprep.subr.bf16.mxu0 %v10340_v8  ;;  %7662 = vmatprep.subr.bf16.mxu1 %v10343_v9  ;;  %v10435_v8 = vld [vmem:[#allocation5 + $0x172c] ss:$16 sps:$4 sm:$0xff]   ;;  %v10430_v9 = vld [vmem:[#allocation5 + $0x1720] ss:$16 sps:$4 sm:$0xff]  }
 0x32a   : > { %7007 = vmatpush1.bf16.msra.mxu0 %v10338_v10  ;;  %7663 = vmatpush1.bf16.msra.mxu1 %v10341_v12  ;;  %v10433_v10 = vld [vmem:[#allocation5 + $0x1728] ss:$16 sps:$4 sm:$0xff]   ;;  %v10438_v12 = vld [vmem:[#allocation5 + $0x1744] ss:$16 sps:$4 sm:$0xff]  }
 0x32b   : > { %7008 = vmatprep.subr.bf16.mxu0 %v10346_v13  ;;  %7664 = vmatprep.subr.bf16.mxu1 %v10349_v15  ;;  %v10441_v13 = vld [vmem:[#allocation5 + $0x174c] ss:$16 sps:$4 sm:$0xff]   ;;  %v10436_v15 = vld [vmem:[#allocation5 + $0x1740] ss:$16 sps:$4 sm:$0xff]  }
 0x32e   : > { %7009 = vmatpush1.bf16.msra.mxu0 %v10344_v16  ;;  %7665 = vmatpush1.bf16.msra.mxu1 %v10347_v18  ;;  %v10439_v16 = vld [vmem:[#allocation5 + $0x1748] ss:$16 sps:$4 sm:$0xff]   ;;  %v10444_v18 = vld [vmem:[#allocation5 + $0x1764] ss:$16 sps:$4 sm:$0xff]  }
 0x32f   : > { %7010 = vmatprep.subr.bf16.mxu0 %v10352_v20  ;;  %7666 = vmatprep.subr.bf16.mxu1 %v10355_v11  ;;  %v10447_v20 = vld [vmem:[#allocation5 + $0x176c] ss:$16 sps:$4 sm:$0xff]   ;;  %v10442_v11 = vld [vmem:[#allocation5 + $0x1760] ss:$16 sps:$4 sm:$0xff]  }
 0x332   : > { %7011 = vmatpush1.bf16.msra.mxu0 %v10350_v21  ;;  %7667 = vmatpush1.bf16.msra.mxu1 %v10353_v14  ;;  %v10445_v21 = vld [vmem:[#allocation5 + $0x1768] ss:$16 sps:$4 sm:$0xff]   ;;  %v10450_v14 = vld [vmem:[#allocation5 + $0x1784] ss:$16 sps:$4 sm:$0xff]  }
 0x333   : > { %7012 = vmatprep.subr.bf16.mxu0 %v10358_v23  ;;  %7668 = vmatprep.subr.bf16.mxu1 %v10361_v24  ;;  %v10453_v23 = vld [vmem:[#allocation5 + $0x178c] ss:$16 sps:$4 sm:$0xff]   ;;  %v10448_v24 = vld [vmem:[#allocation5 + $0x1780] ss:$16 sps:$4 sm:$0xff]  }
 0x336   : > { %7013 = vmatpush1.bf16.msra.mxu0 %v10356_v17  ;;  %7669 = vmatpush1.bf16.msra.mxu1 %v10359_v26  ;;  %v10451_v17 = vld [vmem:[#allocation5 + $0x1788] ss:$16 sps:$4 sm:$0xff]   ;;  %v10456_v26 = vld [vmem:[#allocation5 + $0x17a4] ss:$16 sps:$4 sm:$0xff]  }
 0x337   : > { %7014 = vmatprep.subr.bf16.mxu0 %v10364_v27  ;;  %7670 = vmatprep.subr.bf16.mxu1 %v10367_v19  ;;  %v10459_v27 = vld [vmem:[#allocation5 + $0x17ac] ss:$16 sps:$4 sm:$0xff]   ;;  %v10454_v19 = vld [vmem:[#allocation5 + $0x17a0] ss:$16 sps:$4 sm:$0xff]  }
 0x33a   : > { %7015 = vmatpush1.bf16.msra.mxu0 %v10362_v29  ;;  %7671 = vmatpush1.bf16.msra.mxu1 %v10365_v30  ;;  %v10457_v29 = vld [vmem:[#allocation5 + $0x17a8] ss:$16 sps:$4 sm:$0xff]   ;;  %v10462_v30 = vld [vmem:[#allocation5 + $0x17c4] ss:$16 sps:$4 sm:$0xff]  }
 0x33b   : > { %7016 = vmatprep.subr.bf16.mxu0 %v10370_v22  ;;  %7672 = vmatprep.subr.bf16.mxu1 %v10373_v32  ;;  %v10465_v22 = vld [vmem:[#allocation5 + $0x17cc] ss:$16 sps:$4 sm:$0xff]   ;;  %v10460_v32 = vld [vmem:[#allocation5 + $0x17c0] ss:$16 sps:$4 sm:$0xff]  }
 0x33e   : > { %7017 = vmatpush1.bf16.msra.mxu0 %v10368_v33  ;;  %7673 = vmatpush1.bf16.msra.mxu1 %v10371_v34  ;;  %v10463_v33 = vld [vmem:[#allocation5 + $0x17c8] ss:$16 sps:$4 sm:$0xff]   ;;  %v10468_v34 = vld [vmem:[#allocation5 + $0x17e4] ss:$16 sps:$4 sm:$0xff]  }
 0x33f   : > { %7027 = vmatprep.subr.bf16.mxu0 %v10378_v35  ;;  %7683 = vmatprep.subr.bf16.mxu1 %v10381_v36  ;;  %v10471_v35 = vld [vmem:[#allocation5 + $0x17ec] ss:$16 sps:$4 sm:$0xff]   ;;  %v10466_v36 = vld [vmem:[#allocation5 + $0x17e0] ss:$16 sps:$4 sm:$0xff]  }
 0x341   : > { %7019 = vmatmul.mubr.bf16.vlgmr.msra.gmra.mrb[0].mxu0 %v8063_v37  ;;  %7675 = vmatmul.mubr.bf16.vlgmr.msra.gmra.mrb[0].mxu1 %v8063_v37  ;;  %v10469_v37 = vld [vmem:[#allocation5 + $0x17e8] ss:$16 sps:$4 sm:$0xff]  }
 0x342   : > { %7028 = vmatpush1.bf16.msra.mxu0 %v10376_v38  ;;  %7684 = vmatpush1.bf16.msra.mxu1 %v10379_v39  ;;  %v10476_v38 = vld [vmem:[#allocation5 + $0x1804] ss:$16 sps:$4 sm:$0xff]   ;;  %v10479_v39 = vld [vmem:[#allocation5 + $0x180c] ss:$16 sps:$4 sm:$0xff]  }
 0x343   : > { %7029 = vmatprep.subr.bf16.mxu0 %v10384_v40  ;;  %7685 = vmatprep.subr.bf16.mxu1 %v10387_v31  ;;  %v8065_v40 = vcombine.low %v11327_v28, %v11327_v28  ;;  %v11334_v31 = vld [vmem:[%s11241_s14 + $0x60] sm:$0xff] }
 0x344   : > { %7059 = vmatprep.mubr.bf16.mxu0 %v8066_v41  ;;  %7715 = vmatprep.mubr.bf16.mxu1 %v8066_v41  ;;  %v10474_v41 = vld [vmem:[#allocation5 + $0x1800] ss:$16 sps:$4 sm:$0xff]   ;;  %v10488_v28 = vld [vmem:[#allocation5 + $0x1844] ss:$16 sps:$4 sm:$0xff]  }
 0x346   : > { %7030 = vmatpush1.bf16.msra.mxu0 %v10382_v42  ;;  %7686 = vmatpush1.bf16.msra.mxu1 %v10385_v43  ;;  %v10477_v42 = vld [vmem:[#allocation5 + $0x1808] ss:$16 sps:$4 sm:$0xff]   ;;  %v10482_v43 = vld [vmem:[#allocation5 + $0x1824] ss:$16 sps:$4 sm:$0xff]  }
 0x347   : > { %7031 = vmatprep.subr.bf16.mxu0 %v10390_v25  ;;  %7687 = vmatprep.subr.bf16.mxu1 %v10393_v44  ;;  %v10485_v25 = vld [vmem:[#allocation5 + $0x182c] ss:$16 sps:$4 sm:$0xff]   ;;  %v8068_v44 = vcombine.high %v11334_v31, %v11334_v31 }
 0x34a   : > { %7032 = vmatpush1.bf16.msra.mxu0 %v10388_v45  ;;  %7688 = vmatpush1.bf16.msra.mxu1 %v10391_v46  ;;  %v10480_v45 = vld [vmem:[#allocation5 + $0x1820] ss:$16 sps:$4 sm:$0xff]   ;;  %v10483_v46 = vld [vmem:[#allocation5 + $0x1828] ss:$16 sps:$4 sm:$0xff]  }
 0x34b   : > { %7033 = vmatprep.subr.bf16.mxu0 %v10396_v47  ;;  %7689 = vmatprep.subr.bf16.mxu1 %v10399_v48  ;;  %v10491_v47 = vld [vmem:[#allocation5 + $0x184c] ss:$16 sps:$4 sm:$0xff]   ;;  %v10486_v48 = vld [vmem:[#allocation5 + $0x1840] ss:$16 sps:$4 sm:$0xff]  }
 0x34e   : > { %7034 = vmatpush1.bf16.msra.mxu0 %v10394_v49  ;;  %7690 = vmatpush1.bf16.msra.mxu1 %v10397_v50  ;;  %v10489_v49 = vld [vmem:[#allocation5 + $0x1848] ss:$16 sps:$4 sm:$0xff]   ;;  %v10494_v50 = vld [vmem:[#allocation5 + $0x1864] ss:$16 sps:$4 sm:$0xff]  }
 0x34f   : > { %7035 = vmatprep.subr.bf16.mxu0 %v10402_v51  ;;  %7691 = vmatprep.subr.bf16.mxu1 %v10405_v52  ;;  %v10497_v51 = vld [vmem:[#allocation5 + $0x186c] ss:$16 sps:$4 sm:$0xff]   ;;  %v10492_v52 = vld [vmem:[#allocation5 + $0x1860] ss:$16 sps:$4 sm:$0xff]  }
 0x352   : > { %7036 = vmatpush1.bf16.msra.mxu0 %v10400_v53  ;;  %7692 = vmatpush1.bf16.msra.mxu1 %v10403_v54  ;;  %v10495_v53 = vld [vmem:[#allocation5 + $0x1868] ss:$16 sps:$4 sm:$0xff]   ;;  %v10500_v54 = vld [vmem:[#allocation5 + $0x1884] ss:$16 sps:$4 sm:$0xff]  }
 0x353   : > { %7037 = vmatprep.subr.bf16.mxu0 %v10408_v55  ;;  %7693 = vmatprep.subr.bf16.mxu1 %v10411_v56  ;;  %v10503_v55 = vld [vmem:[#allocation5 + $0x188c] ss:$16 sps:$4 sm:$0xff]   ;;  %v10498_v56 = vld [vmem:[#allocation5 + $0x1880] ss:$16 sps:$4 sm:$0xff]  }
 0x356   : > { %7038 = vmatpush1.bf16.msra.mxu0 %v10406_v57  ;;  %7694 = vmatpush1.bf16.msra.mxu1 %v10409_v58  ;;  %v10501_v57 = vld [vmem:[#allocation5 + $0x1888] ss:$16 sps:$4 sm:$0xff]   ;;  %v10506_v58 = vld [vmem:[#allocation5 + $0x18a4] ss:$16 sps:$4 sm:$0xff]  }
 0x357   : > { %7039 = vmatprep.subr.bf16.mxu0 %v10414_v59  ;;  %7695 = vmatprep.subr.bf16.mxu1 %v10417_v60  ;;  %v10509_v59 = vld [vmem:[#allocation5 + $0x18ac] ss:$16 sps:$4 sm:$0xff]   ;;  %v10504_v60 = vld [vmem:[#allocation5 + $0x18a0] ss:$16 sps:$4 sm:$0xff]  }
 0x35a   : > { %7040 = vmatpush1.bf16.msra.mxu0 %v10412_v61  ;;  %7696 = vmatpush1.bf16.msra.mxu1 %v10415_v62  ;;  %v10507_v61 = vld [vmem:[#allocation5 + $0x18a8] ss:$16 sps:$4 sm:$0xff]   ;;  %v10512_v62 = vld [vmem:[#allocation5 + $0x18c4] ss:$16 sps:$4 sm:$0xff]  }
 0x35b   : > { %7041 = vmatprep.subr.bf16.mxu0 %v10420_v63  ;;  %7697 = vmatprep.subr.bf16.mxu1 %v10423_v0  ;;  %v10515_v63 = vld [vmem:[#allocation5 + $0x18cc] ss:$16 sps:$4 sm:$0xff]   ;;  %v10510_v0 = vld [vmem:[#allocation5 + $0x18c0] ss:$16 sps:$4 sm:$0xff]  }
 0x35e   : > { %7042 = vmatpush1.bf16.msra.mxu0 %v10418_v1  ;;  %7698 = vmatpush1.bf16.msra.mxu1 %v10421_v2  ;;  %v10513_v1 = vld [vmem:[#allocation5 + $0x18c8] ss:$16 sps:$4 sm:$0xff]   ;;  %v10518_v2 = vld [vmem:[#allocation5 + $0x18e4] ss:$16 sps:$4 sm:$0xff]  }
 0x35f   : > { %7043 = vmatprep.subr.bf16.mxu0 %v10426_v3  ;;  %7699 = vmatprep.subr.bf16.mxu1 %v10429_v4  ;;  %v10521_v3 = vld [vmem:[#allocation5 + $0x18ec] ss:$16 sps:$4 sm:$0xff]   ;;  %v10516_v4 = vld [vmem:[#allocation5 + $0x18e0] ss:$16 sps:$4 sm:$0xff]  }
 0x362   : > { %7044 = vmatpush1.bf16.msra.mxu0 %v10424_v5  ;;  %7700 = vmatpush1.bf16.msra.mxu1 %v10427_v6  ;;  %v10519_v5 = vld [vmem:[#allocation5 + $0x18e8] ss:$16 sps:$4 sm:$0xff]   ;;  %v10524_v6 = vld [vmem:[#allocation5 + $0x1904] ss:$16 sps:$4 sm:$0xff]  }
 0x363   : > { %7045 = vmatprep.subr.bf16.mxu0 %v10432_v7  ;;  %7701 = vmatprep.subr.bf16.mxu1 %v10435_v8  ;;  %v10527_v7 = vld [vmem:[#allocation5 + $0x190c] ss:$16 sps:$4 sm:$0xff]   ;;  %v10522_v8 = vld [vmem:[#allocation5 + $0x1900] ss:$16 sps:$4 sm:$0xff]  }
 0x366   : > { %7046 = vmatpush1.bf16.msra.mxu0 %v10430_v9  ;;  %7702 = vmatpush1.bf16.msra.mxu1 %v10433_v10  ;;  %v10525_v9 = vld [vmem:[#allocation5 + $0x1908] ss:$16 sps:$4 sm:$0xff]   ;;  %v10530_v10 = vld [vmem:[#allocation5 + $0x1924] ss:$16 sps:$4 sm:$0xff]  }
 0x367   : > { %7047 = vmatprep.subr.bf16.mxu0 %v10438_v12  ;;  %7703 = vmatprep.subr.bf16.mxu1 %v10441_v13  ;;  %v10533_v12 = vld [vmem:[#allocation5 + $0x192c] ss:$16 sps:$4 sm:$0xff]   ;;  %v10528_v13 = vld [vmem:[#allocation5 + $0x1920] ss:$16 sps:$4 sm:$0xff]  }
 0x36a   : > { %7048 = vmatpush1.bf16.msra.mxu0 %v10436_v15  ;;  %7704 = vmatpush1.bf16.msra.mxu1 %v10439_v16  ;;  %v10531_v15 = vld [vmem:[#allocation5 + $0x1928] ss:$16 sps:$4 sm:$0xff]   ;;  %v10536_v16 = vld [vmem:[#allocation5 + $0x1944] ss:$16 sps:$4 sm:$0xff]  }
 0x36b   : > { %7049 = vmatprep.subr.bf16.mxu0 %v10444_v18  ;;  %7705 = vmatprep.subr.bf16.mxu1 %v10447_v20  ;;  %v10539_v18 = vld [vmem:[#allocation5 + $0x194c] ss:$16 sps:$4 sm:$0xff]   ;;  %v10534_v20 = vld [vmem:[#allocation5 + $0x1940] ss:$16 sps:$4 sm:$0xff]  }
 0x36e   : > { %7050 = vmatpush1.bf16.msra.mxu0 %v10442_v11  ;;  %7706 = vmatpush1.bf16.msra.mxu1 %v10445_v21  ;;  %v10537_v11 = vld [vmem:[#allocation5 + $0x1948] ss:$16 sps:$4 sm:$0xff]   ;;  %v10542_v21 = vld [vmem:[#allocation5 + $0x1964] ss:$16 sps:$4 sm:$0xff]  }
 0x36f   : > { %7051 = vmatprep.subr.bf16.mxu0 %v10450_v14  ;;  %7707 = vmatprep.subr.bf16.mxu1 %v10453_v23  ;;  %v10545_v14 = vld [vmem:[#allocation5 + $0x196c] ss:$16 sps:$4 sm:$0xff]   ;;  %v10540_v23 = vld [vmem:[#allocation5 + $0x1960] ss:$16 sps:$4 sm:$0xff]  }
 0x372   : > { %7052 = vmatpush1.bf16.msra.mxu0 %v10448_v24  ;;  %7708 = vmatpush1.bf16.msra.mxu1 %v10451_v17  ;;  %v10543_v24 = vld [vmem:[#allocation5 + $0x1968] ss:$16 sps:$4 sm:$0xff]   ;;  %v10548_v17 = vld [vmem:[#allocation5 + $0x1984] ss:$16 sps:$4 sm:$0xff]  }
 0x373   : > { %7053 = vmatprep.subr.bf16.mxu0 %v10456_v26  ;;  %7709 = vmatprep.subr.bf16.mxu1 %v10459_v27  ;;  %v10551_v26 = vld [vmem:[#allocation5 + $0x198c] ss:$16 sps:$4 sm:$0xff]   ;;  %v10546_v27 = vld [vmem:[#allocation5 + $0x1980] ss:$16 sps:$4 sm:$0xff]  }
 0x376   : > { %7054 = vmatpush1.bf16.msra.mxu0 %v10454_v19  ;;  %7710 = vmatpush1.bf16.msra.mxu1 %v10457_v29  ;;  %v10549_v19 = vld [vmem:[#allocation5 + $0x1988] ss:$16 sps:$4 sm:$0xff]   ;;  %v10554_v29 = vld [vmem:[#allocation5 + $0x19a4] ss:$16 sps:$4 sm:$0xff]  }
 0x377   : > { %7055 = vmatprep.subr.bf16.mxu0 %v10462_v30  ;;  %7711 = vmatprep.subr.bf16.mxu1 %v10465_v22  ;;  %v10557_v30 = vld [vmem:[#allocation5 + $0x19ac] ss:$16 sps:$4 sm:$0xff]   ;;  %v10552_v22 = vld [vmem:[#allocation5 + $0x19a0] ss:$16 sps:$4 sm:$0xff]  }
 0x37a   : > { %7056 = vmatpush1.bf16.msra.mxu0 %v10460_v32  ;;  %7712 = vmatpush1.bf16.msra.mxu1 %v10463_v33  ;;  %v10555_v32 = vld [vmem:[#allocation5 + $0x19a8] ss:$16 sps:$4 sm:$0xff]   ;;  %v10560_v33 = vld [vmem:[#allocation5 + $0x19c4] ss:$16 sps:$4 sm:$0xff]  }
 0x37b   : > { %7057 = vmatprep.subr.bf16.mxu0 %v10468_v34  ;;  %7713 = vmatprep.subr.bf16.mxu1 %v10471_v35  ;;  %v10563_v34 = vld [vmem:[#allocation5 + $0x19cc] ss:$16 sps:$4 sm:$0xff]   ;;  %v10558_v35 = vld [vmem:[#allocation5 + $0x19c0] ss:$16 sps:$4 sm:$0xff]  }
 0x37e   : > { %7058 = vmatpush1.bf16.msra.mxu0 %v10466_v36  ;;  %7714 = vmatpush1.bf16.msra.mxu1 %v10469_v37  ;;  %v10561_v36 = vld [vmem:[#allocation5 + $0x19c8] ss:$16 sps:$4 sm:$0xff]   ;;  %v10566_v37 = vld [vmem:[#allocation5 + $0x19e4] ss:$16 sps:$4 sm:$0xff]  }
 0x37f   : > { %7068 = vmatprep.subr.bf16.mxu0 %v10476_v38  ;;  %7724 = vmatprep.subr.bf16.mxu1 %v10479_v39  ;;  %v10569_v38 = vld [vmem:[#allocation5 + $0x19ec] ss:$16 sps:$4 sm:$0xff]   ;;  %v10564_v39 = vld [vmem:[#allocation5 + $0x19e0] ss:$16 sps:$4 sm:$0xff]  }
 0x381   : > { %7060 = vmatmul.mubr.bf16.vlgmr.msra.gmra.mrb[0].mxu0 %v8065_v40  ;;  %7716 = vmatmul.mubr.bf16.vlgmr.msra.gmra.mrb[0].mxu1 %v8065_v40  ;;  %v10567_v40 = vld [vmem:[#allocation5 + $0x19e8] ss:$16 sps:$4 sm:$0xff]  }
 0x382   : > { %7069 = vmatpush1.bf16.msra.mxu0 %v10474_v41  ;;  %7725 = vmatpush1.bf16.msra.mxu1 %v10477_v42  ;;  %v10574_v41 = vld [vmem:[#allocation5 + $0x1a04] ss:$16 sps:$4 sm:$0xff]   ;;  %v10577_v42 = vld [vmem:[#allocation5 + $0x1a0c] ss:$16 sps:$4 sm:$0xff]  }
 0x383   : > { %7070 = vmatprep.subr.bf16.mxu0 %v10482_v43  ;;  %7726 = vmatprep.subr.bf16.mxu1 %v10485_v25  ;;  %v8067_v43 = vcombine.low %v11334_v31, %v11334_v31  ;;  %v11341_v25 = vld [vmem:[%s11241_s14 + $0x68] sm:$0xff]  ;;  %v10586_v31 = vld [vmem:[#allocation5 + $0x1a44] ss:$16 sps:$4 sm:$0xff]  }
 0x384   : > { %7100 = vmatprep.mubr.bf16.mxu0 %v8068_v44  ;;  %7756 = vmatprep.mubr.bf16.mxu1 %v8068_v44  ;;  %v10572_v44 = vld [vmem:[#allocation5 + $0x1a00] ss:$16 sps:$4 sm:$0xff]  }
 0x386   : > { %7071 = vmatpush1.bf16.msra.mxu0 %v10480_v45  ;;  %7727 = vmatpush1.bf16.msra.mxu1 %v10483_v46  ;;  %v10575_v45 = vld [vmem:[#allocation5 + $0x1a08] ss:$16 sps:$4 sm:$0xff]   ;;  %v10580_v46 = vld [vmem:[#allocation5 + $0x1a24] ss:$16 sps:$4 sm:$0xff]  }
 0x387   : > { %7072 = vmatprep.subr.bf16.mxu0 %v10488_v28  ;;  %7728 = vmatprep.subr.bf16.mxu1 %v10491_v47  ;;  %v10583_v28 = vld [vmem:[#allocation5 + $0x1a2c] ss:$16 sps:$4 sm:$0xff]   ;;  %v8070_v47 = vcombine.high %v11341_v25, %v11341_v25 }
 0x38a   : > { %7073 = vmatpush1.bf16.msra.mxu0 %v10486_v48  ;;  %7729 = vmatpush1.bf16.msra.mxu1 %v10489_v49  ;;  %v10578_v48 = vld [vmem:[#allocation5 + $0x1a20] ss:$16 sps:$4 sm:$0xff]   ;;  %v10581_v49 = vld [vmem:[#allocation5 + $0x1a28] ss:$16 sps:$4 sm:$0xff]  }
 0x38b   : > { %7074 = vmatprep.subr.bf16.mxu0 %v10494_v50  ;;  %7730 = vmatprep.subr.bf16.mxu1 %v10497_v51  ;;  %v10589_v50 = vld [vmem:[#allocation5 + $0x1a4c] ss:$16 sps:$4 sm:$0xff]   ;;  %v10584_v51 = vld [vmem:[#allocation5 + $0x1a40] ss:$16 sps:$4 sm:$0xff]  }
 0x38e   : > { %7075 = vmatpush1.bf16.msra.mxu0 %v10492_v52  ;;  %7731 = vmatpush1.bf16.msra.mxu1 %v10495_v53  ;;  %v10587_v52 = vld [vmem:[#allocation5 + $0x1a48] ss:$16 sps:$4 sm:$0xff]   ;;  %v10592_v53 = vld [vmem:[#allocation5 + $0x1a64] ss:$16 sps:$4 sm:$0xff]  }
 0x38f   : > { %7076 = vmatprep.subr.bf16.mxu0 %v10500_v54  ;;  %7732 = vmatprep.subr.bf16.mxu1 %v10503_v55  ;;  %v10595_v54 = vld [vmem:[#allocation5 + $0x1a6c] ss:$16 sps:$4 sm:$0xff]   ;;  %v10590_v55 = vld [vmem:[#allocation5 + $0x1a60] ss:$16 sps:$4 sm:$0xff]  }
 0x392   : > { %7077 = vmatpush1.bf16.msra.mxu0 %v10498_v56  ;;  %7733 = vmatpush1.bf16.msra.mxu1 %v10501_v57  ;;  %v10593_v56 = vld [vmem:[#allocation5 + $0x1a68] ss:$16 sps:$4 sm:$0xff]   ;;  %v10598_v57 = vld [vmem:[#allocation5 + $0x1a84] ss:$16 sps:$4 sm:$0xff]  }
 0x393   : > { %7078 = vmatprep.subr.bf16.mxu0 %v10506_v58  ;;  %7734 = vmatprep.subr.bf16.mxu1 %v10509_v59  ;;  %v10601_v58 = vld [vmem:[#allocation5 + $0x1a8c] ss:$16 sps:$4 sm:$0xff]   ;;  %v10596_v59 = vld [vmem:[#allocation5 + $0x1a80] ss:$16 sps:$4 sm:$0xff]  }
 0x396   : > { %7079 = vmatpush1.bf16.msra.mxu0 %v10504_v60  ;;  %7735 = vmatpush1.bf16.msra.mxu1 %v10507_v61  ;;  %v10599_v60 = vld [vmem:[#allocation5 + $0x1a88] ss:$16 sps:$4 sm:$0xff]   ;;  %v10604_v61 = vld [vmem:[#allocation5 + $0x1aa4] ss:$16 sps:$4 sm:$0xff]  }
 0x397   : > { %7080 = vmatprep.subr.bf16.mxu0 %v10512_v62  ;;  %7736 = vmatprep.subr.bf16.mxu1 %v10515_v63  ;;  %v10607_v62 = vld [vmem:[#allocation5 + $0x1aac] ss:$16 sps:$4 sm:$0xff]   ;;  %v10602_v63 = vld [vmem:[#allocation5 + $0x1aa0] ss:$16 sps:$4 sm:$0xff]  }
 0x39a   : > { %7081 = vmatpush1.bf16.msra.mxu0 %v10510_v0  ;;  %7737 = vmatpush1.bf16.msra.mxu1 %v10513_v1  ;;  %v10605_v0 = vld [vmem:[#allocation5 + $0x1aa8] ss:$16 sps:$4 sm:$0xff]   ;;  %v10610_v1 = vld [vmem:[#allocation5 + $0x1ac4] ss:$16 sps:$4 sm:$0xff]  }
 0x39b   : > { %7082 = vmatprep.subr.bf16.mxu0 %v10518_v2  ;;  %7738 = vmatprep.subr.bf16.mxu1 %v10521_v3  ;;  %v10613_v2 = vld [vmem:[#allocation5 + $0x1acc] ss:$16 sps:$4 sm:$0xff]   ;;  %v10608_v3 = vld [vmem:[#allocation5 + $0x1ac0] ss:$16 sps:$4 sm:$0xff]  }
 0x39e   : > { %7083 = vmatpush1.bf16.msra.mxu0 %v10516_v4  ;;  %7739 = vmatpush1.bf16.msra.mxu1 %v10519_v5  ;;  %v10611_v4 = vld [vmem:[#allocation5 + $0x1ac8] ss:$16 sps:$4 sm:$0xff]   ;;  %v10616_v5 = vld [vmem:[#allocation5 + $0x1ae4] ss:$16 sps:$4 sm:$0xff]  }
 0x39f   : > { %7084 = vmatprep.subr.bf16.mxu0 %v10524_v6  ;;  %7740 = vmatprep.subr.bf16.mxu1 %v10527_v7  ;;  %v10619_v6 = vld [vmem:[#allocation5 + $0x1aec] ss:$16 sps:$4 sm:$0xff]   ;;  %v10614_v7 = vld [vmem:[#allocation5 + $0x1ae0] ss:$16 sps:$4 sm:$0xff]  }
 0x3a2   : > { %7085 = vmatpush1.bf16.msra.mxu0 %v10522_v8  ;;  %7741 = vmatpush1.bf16.msra.mxu1 %v10525_v9  ;;  %v10617_v8 = vld [vmem:[#allocation5 + $0x1ae8] ss:$16 sps:$4 sm:$0xff]   ;;  %v10622_v9 = vld [vmem:[#allocation5 + $0x1b04] ss:$16 sps:$4 sm:$0xff]  }
 0x3a3   : > { %7086 = vmatprep.subr.bf16.mxu0 %v10530_v10  ;;  %7742 = vmatprep.subr.bf16.mxu1 %v10533_v12  ;;  %v10625_v10 = vld [vmem:[#allocation5 + $0x1b0c] ss:$16 sps:$4 sm:$0xff]   ;;  %v10620_v12 = vld [vmem:[#allocation5 + $0x1b00] ss:$16 sps:$4 sm:$0xff]  }
 0x3a6   : > { %7087 = vmatpush1.bf16.msra.mxu0 %v10528_v13  ;;  %7743 = vmatpush1.bf16.msra.mxu1 %v10531_v15  ;;  %v10623_v13 = vld [vmem:[#allocation5 + $0x1b08] ss:$16 sps:$4 sm:$0xff]   ;;  %v10628_v15 = vld [vmem:[#allocation5 + $0x1b24] ss:$16 sps:$4 sm:$0xff]  }
 0x3a7   : > { %7088 = vmatprep.subr.bf16.mxu0 %v10536_v16  ;;  %7744 = vmatprep.subr.bf16.mxu1 %v10539_v18  ;;  %v10631_v16 = vld [vmem:[#allocation5 + $0x1b2c] ss:$16 sps:$4 sm:$0xff]   ;;  %v10626_v18 = vld [vmem:[#allocation5 + $0x1b20] ss:$16 sps:$4 sm:$0xff]  }
 0x3aa   : > { %7089 = vmatpush1.bf16.msra.mxu0 %v10534_v20  ;;  %7745 = vmatpush1.bf16.msra.mxu1 %v10537_v11  ;;  %v10629_v20 = vld [vmem:[#allocation5 + $0x1b28] ss:$16 sps:$4 sm:$0xff]   ;;  %v10634_v11 = vld [vmem:[#allocation5 + $0x1b44] ss:$16 sps:$4 sm:$0xff]  }
 0x3ab   : > { %7090 = vmatprep.subr.bf16.mxu0 %v10542_v21  ;;  %7746 = vmatprep.subr.bf16.mxu1 %v10545_v14  ;;  %v10637_v21 = vld [vmem:[#allocation5 + $0x1b4c] ss:$16 sps:$4 sm:$0xff]   ;;  %v10632_v14 = vld [vmem:[#allocation5 + $0x1b40] ss:$16 sps:$4 sm:$0xff]  }
 0x3ae   : > { %7091 = vmatpush1.bf16.msra.mxu0 %v10540_v23  ;;  %7747 = vmatpush1.bf16.msra.mxu1 %v10543_v24  ;;  %v10635_v23 = vld [vmem:[#allocation5 + $0x1b48] ss:$16 sps:$4 sm:$0xff]   ;;  %v10640_v24 = vld [vmem:[#allocation5 + $0x1b64] ss:$16 sps:$4 sm:$0xff]  }
 0x3af   : > { %7092 = vmatprep.subr.bf16.mxu0 %v10548_v17  ;;  %7748 = vmatprep.subr.bf16.mxu1 %v10551_v26  ;;  %v10643_v17 = vld [vmem:[#allocation5 + $0x1b6c] ss:$16 sps:$4 sm:$0xff]   ;;  %v10638_v26 = vld [vmem:[#allocation5 + $0x1b60] ss:$16 sps:$4 sm:$0xff]  }
 0x3b2   : > { %7093 = vmatpush1.bf16.msra.mxu0 %v10546_v27  ;;  %7749 = vmatpush1.bf16.msra.mxu1 %v10549_v19  ;;  %v10641_v27 = vld [vmem:[#allocation5 + $0x1b68] ss:$16 sps:$4 sm:$0xff]   ;;  %v10646_v19 = vld [vmem:[#allocation5 + $0x1b84] ss:$16 sps:$4 sm:$0xff]  }
 0x3b3   : > { %7094 = vmatprep.subr.bf16.mxu0 %v10554_v29  ;;  %7750 = vmatprep.subr.bf16.mxu1 %v10557_v30  ;;  %v10649_v29 = vld [vmem:[#allocation5 + $0x1b8c] ss:$16 sps:$4 sm:$0xff]   ;;  %v10644_v30 = vld [vmem:[#allocation5 + $0x1b80] ss:$16 sps:$4 sm:$0xff]  }
 0x3b6   : > { %7095 = vmatpush1.bf16.msra.mxu0 %v10552_v22  ;;  %7751 = vmatpush1.bf16.msra.mxu1 %v10555_v32  ;;  %v10647_v22 = vld [vmem:[#allocation5 + $0x1b88] ss:$16 sps:$4 sm:$0xff]   ;;  %v10652_v32 = vld [vmem:[#allocation5 + $0x1ba4] ss:$16 sps:$4 sm:$0xff]  }
 0x3b7   : > { %7096 = vmatprep.subr.bf16.mxu0 %v10560_v33  ;;  %7752 = vmatprep.subr.bf16.mxu1 %v10563_v34  ;;  %v10655_v33 = vld [vmem:[#allocation5 + $0x1bac] ss:$16 sps:$4 sm:$0xff]   ;;  %v10650_v34 = vld [vmem:[#allocation5 + $0x1ba0] ss:$16 sps:$4 sm:$0xff]  }
 0x3ba   : > { %7097 = vmatpush1.bf16.msra.mxu0 %v10558_v35  ;;  %7753 = vmatpush1.bf16.msra.mxu1 %v10561_v36  ;;  %v10653_v35 = vld [vmem:[#allocation5 + $0x1ba8] ss:$16 sps:$4 sm:$0xff]   ;;  %v10658_v36 = vld [vmem:[#allocation5 + $0x1bc4] ss:$16 sps:$4 sm:$0xff]  }
 0x3bb   : > { %7098 = vmatprep.subr.bf16.mxu0 %v10566_v37  ;;  %7754 = vmatprep.subr.bf16.mxu1 %v10569_v38  ;;  %v10661_v37 = vld [vmem:[#allocation5 + $0x1bcc] ss:$16 sps:$4 sm:$0xff]   ;;  %v10656_v38 = vld [vmem:[#allocation5 + $0x1bc0] ss:$16 sps:$4 sm:$0xff]  }
 0x3be   : > { %7099 = vmatpush1.bf16.msra.mxu0 %v10564_v39  ;;  %7755 = vmatpush1.bf16.msra.mxu1 %v10567_v40  ;;  %v10659_v39 = vld [vmem:[#allocation5 + $0x1bc8] ss:$16 sps:$4 sm:$0xff]   ;;  %v10664_v40 = vld [vmem:[#allocation5 + $0x1be4] ss:$16 sps:$4 sm:$0xff]  }
 0x3bf   : > { %7109 = vmatprep.subr.bf16.mxu0 %v10574_v41  ;;  %7765 = vmatprep.subr.bf16.mxu1 %v10577_v42  ;;  %v10667_v41 = vld [vmem:[#allocation5 + $0x1bec] ss:$16 sps:$4 sm:$0xff]   ;;  %v10662_v42 = vld [vmem:[#allocation5 + $0x1be0] ss:$16 sps:$4 sm:$0xff]  }
 0x3c1   : > { %7101 = vmatmul.mubr.bf16.vlgmr.msra.gmra.mrb[0].mxu0 %v8067_v43  ;;  %7757 = vmatmul.mubr.bf16.vlgmr.msra.gmra.mrb[0].mxu1 %v8067_v43  ;;  %v10665_v43 = vld [vmem:[#allocation5 + $0x1be8] ss:$16 sps:$4 sm:$0xff]  }
 0x3c2   : > { %7110 = vmatpush1.bf16.msra.mxu0 %v10572_v44  ;;  %7766 = vmatpush1.bf16.msra.mxu1 %v10575_v45  ;;  %v10672_v44 = vld [vmem:[#allocation5 + $0x1c04] ss:$16 sps:$4 sm:$0xff]   ;;  %v10675_v45 = vld [vmem:[#allocation5 + $0x1c0c] ss:$16 sps:$4 sm:$0xff]  }
 0x3c3   : > { %7111 = vmatprep.subr.bf16.mxu0 %v10580_v46  ;;  %7767 = vmatprep.subr.bf16.mxu1 %v10583_v28  ;;  %v8069_v46 = vcombine.low %v11341_v25, %v11341_v25  ;;  %v11348_v28 = vld [vmem:[%s11241_s14 + $0x70] sm:$0xff] }
 0x3c4   : > { %7141 = vmatprep.mubr.bf16.mxu0 %v8070_v47  ;;  %7797 = vmatprep.mubr.bf16.mxu1 %v8070_v47  ;;  %v10670_v47 = vld [vmem:[#allocation5 + $0x1c00] ss:$16 sps:$4 sm:$0xff]   ;;  %v10684_v25 = vld [vmem:[#allocation5 + $0x1c44] ss:$16 sps:$4 sm:$0xff]  }
 0x3c6   : > { %7112 = vmatpush1.bf16.msra.mxu0 %v10578_v48  ;;  %7768 = vmatpush1.bf16.msra.mxu1 %v10581_v49  ;;  %v10673_v48 = vld [vmem:[#allocation5 + $0x1c08] ss:$16 sps:$4 sm:$0xff]   ;;  %v10678_v49 = vld [vmem:[#allocation5 + $0x1c24] ss:$16 sps:$4 sm:$0xff]  }
 0x3c7   : > { %7113 = vmatprep.subr.bf16.mxu0 %v10586_v31  ;;  %7769 = vmatprep.subr.bf16.mxu1 %v10589_v50  ;;  %v10681_v31 = vld [vmem:[#allocation5 + $0x1c2c] ss:$16 sps:$4 sm:$0xff]   ;;  %v8072_v50 = vcombine.high %v11348_v28, %v11348_v28 }
 0x3ca   : > { %7114 = vmatpush1.bf16.msra.mxu0 %v10584_v51  ;;  %7770 = vmatpush1.bf16.msra.mxu1 %v10587_v52  ;;  %v10676_v51 = vld [vmem:[#allocation5 + $0x1c20] ss:$16 sps:$4 sm:$0xff]   ;;  %v10679_v52 = vld [vmem:[#allocation5 + $0x1c28] ss:$16 sps:$4 sm:$0xff]  }
 0x3cb   : > { %7115 = vmatprep.subr.bf16.mxu0 %v10592_v53  ;;  %7771 = vmatprep.subr.bf16.mxu1 %v10595_v54  ;;  %v10687_v53 = vld [vmem:[#allocation5 + $0x1c4c] ss:$16 sps:$4 sm:$0xff]   ;;  %v10682_v54 = vld [vmem:[#allocation5 + $0x1c40] ss:$16 sps:$4 sm:$0xff]  }
 0x3ce   : > { %7116 = vmatpush1.bf16.msra.mxu0 %v10590_v55  ;;  %7772 = vmatpush1.bf16.msra.mxu1 %v10593_v56  ;;  %v10685_v55 = vld [vmem:[#allocation5 + $0x1c48] ss:$16 sps:$4 sm:$0xff]   ;;  %v10690_v56 = vld [vmem:[#allocation5 + $0x1c64] ss:$16 sps:$4 sm:$0xff]  }
 0x3cf   : > { %7117 = vmatprep.subr.bf16.mxu0 %v10598_v57  ;;  %7773 = vmatprep.subr.bf16.mxu1 %v10601_v58  ;;  %v10693_v57 = vld [vmem:[#allocation5 + $0x1c6c] ss:$16 sps:$4 sm:$0xff]   ;;  %v10688_v58 = vld [vmem:[#allocation5 + $0x1c60] ss:$16 sps:$4 sm:$0xff]  }
 0x3d2   : > { %7118 = vmatpush1.bf16.msra.mxu0 %v10596_v59  ;;  %7774 = vmatpush1.bf16.msra.mxu1 %v10599_v60  ;;  %v10691_v59 = vld [vmem:[#allocation5 + $0x1c68] ss:$16 sps:$4 sm:$0xff]   ;;  %v10696_v60 = vld [vmem:[#allocation5 + $0x1c84] ss:$16 sps:$4 sm:$0xff]  }
 0x3d3   : > { %7119 = vmatprep.subr.bf16.mxu0 %v10604_v61  ;;  %7775 = vmatprep.subr.bf16.mxu1 %v10607_v62  ;;  %v10699_v61 = vld [vmem:[#allocation5 + $0x1c8c] ss:$16 sps:$4 sm:$0xff]   ;;  %v10694_v62 = vld [vmem:[#allocation5 + $0x1c80] ss:$16 sps:$4 sm:$0xff]  }
 0x3d6   : > { %7120 = vmatpush1.bf16.msra.mxu0 %v10602_v63  ;;  %7776 = vmatpush1.bf16.msra.mxu1 %v10605_v0  ;;  %v10697_v63 = vld [vmem:[#allocation5 + $0x1c88] ss:$16 sps:$4 sm:$0xff]   ;;  %v10702_v0 = vld [vmem:[#allocation5 + $0x1ca4] ss:$16 sps:$4 sm:$0xff]  }
 0x3d7   : > { %7121 = vmatprep.subr.bf16.mxu0 %v10610_v1  ;;  %7777 = vmatprep.subr.bf16.mxu1 %v10613_v2  ;;  %v10705_v1 = vld [vmem:[#allocation5 + $0x1cac] ss:$16 sps:$4 sm:$0xff]   ;;  %v10700_v2 = vld [vmem:[#allocation5 + $0x1ca0] ss:$16 sps:$4 sm:$0xff]  }
 0x3da   : > { %7122 = vmatpush1.bf16.msra.mxu0 %v10608_v3  ;;  %7778 = vmatpush1.bf16.msra.mxu1 %v10611_v4  ;;  %v10703_v3 = vld [vmem:[#allocation5 + $0x1ca8] ss:$16 sps:$4 sm:$0xff]   ;;  %v10708_v4 = vld [vmem:[#allocation5 + $0x1cc4] ss:$16 sps:$4 sm:$0xff]  }
 0x3db   : > { %7123 = vmatprep.subr.bf16.mxu0 %v10616_v5  ;;  %7779 = vmatprep.subr.bf16.mxu1 %v10619_v6  ;;  %v10711_v5 = vld [vmem:[#allocation5 + $0x1ccc] ss:$16 sps:$4 sm:$0xff]   ;;  %v10706_v6 = vld [vmem:[#allocation5 + $0x1cc0] ss:$16 sps:$4 sm:$0xff]  }
 0x3de   : > { %7124 = vmatpush1.bf16.msra.mxu0 %v10614_v7  ;;  %7780 = vmatpush1.bf16.msra.mxu1 %v10617_v8  ;;  %v10709_v7 = vld [vmem:[#allocation5 + $0x1cc8] ss:$16 sps:$4 sm:$0xff]   ;;  %v10714_v8 = vld [vmem:[#allocation5 + $0x1ce4] ss:$16 sps:$4 sm:$0xff]  }
 0x3df   : > { %7125 = vmatprep.subr.bf16.mxu0 %v10622_v9  ;;  %7781 = vmatprep.subr.bf16.mxu1 %v10625_v10  ;;  %v10717_v9 = vld [vmem:[#allocation5 + $0x1cec] ss:$16 sps:$4 sm:$0xff]   ;;  %v10712_v10 = vld [vmem:[#allocation5 + $0x1ce0] ss:$16 sps:$4 sm:$0xff]  }
 0x3e2   : > { %7126 = vmatpush1.bf16.msra.mxu0 %v10620_v12  ;;  %7782 = vmatpush1.bf16.msra.mxu1 %v10623_v13  ;;  %v10715_v12 = vld [vmem:[#allocation5 + $0x1ce8] ss:$16 sps:$4 sm:$0xff]   ;;  %v10720_v13 = vld [vmem:[#allocation5 + $0x1d04] ss:$16 sps:$4 sm:$0xff]  }
 0x3e3   : > { %7127 = vmatprep.subr.bf16.mxu0 %v10628_v15  ;;  %7783 = vmatprep.subr.bf16.mxu1 %v10631_v16  ;;  %v10723_v15 = vld [vmem:[#allocation5 + $0x1d0c] ss:$16 sps:$4 sm:$0xff]   ;;  %v10718_v16 = vld [vmem:[#allocation5 + $0x1d00] ss:$16 sps:$4 sm:$0xff]  }
 0x3e6   : > { %7128 = vmatpush1.bf16.msra.mxu0 %v10626_v18  ;;  %7784 = vmatpush1.bf16.msra.mxu1 %v10629_v20  ;;  %v10721_v18 = vld [vmem:[#allocation5 + $0x1d08] ss:$16 sps:$4 sm:$0xff]   ;;  %v10726_v20 = vld [vmem:[#allocation5 + $0x1d24] ss:$16 sps:$4 sm:$0xff]  }
 0x3e7   : > { %7129 = vmatprep.subr.bf16.mxu0 %v10634_v11  ;;  %7785 = vmatprep.subr.bf16.mxu1 %v10637_v21  ;;  %v10729_v11 = vld [vmem:[#allocation5 + $0x1d2c] ss:$16 sps:$4 sm:$0xff]   ;;  %v10724_v21 = vld [vmem:[#allocation5 + $0x1d20] ss:$16 sps:$4 sm:$0xff]  }
 0x3ea   : > { %7130 = vmatpush1.bf16.msra.mxu0 %v10632_v14  ;;  %7786 = vmatpush1.bf16.msra.mxu1 %v10635_v23  ;;  %v10727_v14 = vld [vmem:[#allocation5 + $0x1d28] ss:$16 sps:$4 sm:$0xff]   ;;  %v10732_v23 = vld [vmem:[#allocation5 + $0x1d44] ss:$16 sps:$4 sm:$0xff]  }
 0x3eb   : > { %7131 = vmatprep.subr.bf16.mxu0 %v10640_v24  ;;  %7787 = vmatprep.subr.bf16.mxu1 %v10643_v17  ;;  %v10735_v24 = vld [vmem:[#allocation5 + $0x1d4c] ss:$16 sps:$4 sm:$0xff]   ;;  %v10730_v17 = vld [vmem:[#allocation5 + $0x1d40] ss:$16 sps:$4 sm:$0xff]  }
 0x3ee   : > { %7132 = vmatpush1.bf16.msra.mxu0 %v10638_v26  ;;  %7788 = vmatpush1.bf16.msra.mxu1 %v10641_v27  ;;  %v10733_v26 = vld [vmem:[#allocation5 + $0x1d48] ss:$16 sps:$4 sm:$0xff]   ;;  %v10738_v27 = vld [vmem:[#allocation5 + $0x1d64] ss:$16 sps:$4 sm:$0xff]  }
 0x3ef   : > { %7133 = vmatprep.subr.bf16.mxu0 %v10646_v19  ;;  %7789 = vmatprep.subr.bf16.mxu1 %v10649_v29  ;;  %v10741_v19 = vld [vmem:[#allocation5 + $0x1d6c] ss:$16 sps:$4 sm:$0xff]   ;;  %v10736_v29 = vld [vmem:[#allocation5 + $0x1d60] ss:$16 sps:$4 sm:$0xff]  }
 0x3f2   : > { %7134 = vmatpush1.bf16.msra.mxu0 %v10644_v30  ;;  %7790 = vmatpush1.bf16.msra.mxu1 %v10647_v22  ;;  %v10739_v30 = vld [vmem:[#allocation5 + $0x1d68] ss:$16 sps:$4 sm:$0xff]   ;;  %v10744_v22 = vld [vmem:[#allocation5 + $0x1d84] ss:$16 sps:$4 sm:$0xff]  }
 0x3f3   : > { %7135 = vmatprep.subr.bf16.mxu0 %v10652_v32  ;;  %7791 = vmatprep.subr.bf16.mxu1 %v10655_v33  ;;  %v10747_v32 = vld [vmem:[#allocation5 + $0x1d8c] ss:$16 sps:$4 sm:$0xff]   ;;  %v10742_v33 = vld [vmem:[#allocation5 + $0x1d80] ss:$16 sps:$4 sm:$0xff]  }
 0x3f6   : > { %7136 = vmatpush1.bf16.msra.mxu0 %v10650_v34  ;;  %7792 = vmatpush1.bf16.msra.mxu1 %v10653_v35  ;;  %v10745_v34 = vld [vmem:[#allocation5 + $0x1d88] ss:$16 sps:$4 sm:$0xff]   ;;  %v10750_v35 = vld [vmem:[#allocation5 + $0x1da4] ss:$16 sps:$4 sm:$0xff]  }
 0x3f7   : > { %7137 = vmatprep.subr.bf16.mxu0 %v10658_v36  ;;  %7793 = vmatprep.subr.bf16.mxu1 %v10661_v37  ;;  %v10753_v36 = vld [vmem:[#allocation5 + $0x1dac] ss:$16 sps:$4 sm:$0xff]   ;;  %v10748_v37 = vld [vmem:[#allocation5 + $0x1da0] ss:$16 sps:$4 sm:$0xff]  }
 0x3fa   : > { %7138 = vmatpush1.bf16.msra.mxu0 %v10656_v38  ;;  %7794 = vmatpush1.bf16.msra.mxu1 %v10659_v39  ;;  %v10751_v38 = vld [vmem:[#allocation5 + $0x1da8] ss:$16 sps:$4 sm:$0xff]   ;;  %v10756_v39 = vld [vmem:[#allocation5 + $0x1dc4] ss:$16 sps:$4 sm:$0xff]  }
 0x3fb   : > { %7139 = vmatprep.subr.bf16.mxu0 %v10664_v40  ;;  %7795 = vmatprep.subr.bf16.mxu1 %v10667_v41  ;;  %v10759_v40 = vld [vmem:[#allocation5 + $0x1dcc] ss:$16 sps:$4 sm:$0xff]   ;;  %v10754_v41 = vld [vmem:[#allocation5 + $0x1dc0] ss:$16 sps:$4 sm:$0xff]  }
 0x3fe   : > { %7140 = vmatpush1.bf16.msra.mxu0 %v10662_v42  ;;  %7796 = vmatpush1.bf16.msra.mxu1 %v10665_v43  ;;  %v10757_v42 = vld [vmem:[#allocation5 + $0x1dc8] ss:$16 sps:$4 sm:$0xff]   ;;  %v10762_v43 = vld [vmem:[#allocation5 + $0x1de4] ss:$16 sps:$4 sm:$0xff]  }
 0x3ff   : > { %7150 = vmatprep.subr.bf16.mxu0 %v10672_v44  ;;  %7806 = vmatprep.subr.bf16.mxu1 %v10675_v45  ;;  %v10765_v44 = vld [vmem:[#allocation5 + $0x1dec] ss:$16 sps:$4 sm:$0xff]   ;;  %v10760_v45 = vld [vmem:[#allocation5 + $0x1de0] ss:$16 sps:$4 sm:$0xff]  }
 0x401   : > { %7142 = vmatmul.mubr.bf16.vlgmr.msra.gmra.mrb[0].mxu0 %v8069_v46  ;;  %7798 = vmatmul.mubr.bf16.vlgmr.msra.gmra.mrb[0].mxu1 %v8069_v46  ;;  %v10763_v46 = vld [vmem:[#allocation5 + $0x1de8] ss:$16 sps:$4 sm:$0xff]  }
 0x402   : > { %7151 = vmatpush1.bf16.msra.mxu0 %v10670_v47  ;;  %7807 = vmatpush1.bf16.msra.mxu1 %v10673_v48  ;;  %v10770_v47 = vld [vmem:[#allocation5 + $0x1e04] ss:$16 sps:$4 sm:$0xff]   ;;  %v10773_v48 = vld [vmem:[#allocation5 + $0x1e0c] ss:$16 sps:$4 sm:$0xff]  }
 0x403   : > { %7152 = vmatprep.subr.bf16.mxu0 %v10678_v49  ;;  %7808 = vmatprep.subr.bf16.mxu1 %v10681_v31  ;;  %v8071_v49 = vcombine.low %v11348_v28, %v11348_v28  ;;  %v11355_v31 = vld [vmem:[%s11241_s14 + $0x78] sm:$0xff]  ;;  %v10782_v28 = vld [vmem:[#allocation5 + $0x1e44] ss:$16 sps:$4 sm:$0xff]  }
 0x404   : > { %7182 = vmatprep.mubr.bf16.mxu0 %v8072_v50  ;;  %7838 = vmatprep.mubr.bf16.mxu1 %v8072_v50  ;;  %v10768_v50 = vld [vmem:[#allocation5 + $0x1e00] ss:$16 sps:$4 sm:$0xff]  }
 0x406   : > { %7153 = vmatpush1.bf16.msra.mxu0 %v10676_v51  ;;  %7809 = vmatpush1.bf16.msra.mxu1 %v10679_v52  ;;  %v10771_v51 = vld [vmem:[#allocation5 + $0x1e08] ss:$16 sps:$4 sm:$0xff]   ;;  %v10776_v52 = vld [vmem:[#allocation5 + $0x1e24] ss:$16 sps:$4 sm:$0xff]  }
 0x407   : > { %7154 = vmatprep.subr.bf16.mxu0 %v10684_v25  ;;  %7810 = vmatprep.subr.bf16.mxu1 %v10687_v53  ;;  %v10779_v25 = vld [vmem:[#allocation5 + $0x1e2c] ss:$16 sps:$4 sm:$0xff]   ;;  %v8074_v53 = vcombine.high %v11355_v31, %v11355_v31 }
 0x40a   : > { %7155 = vmatpush1.bf16.msra.mxu0 %v10682_v54  ;;  %7811 = vmatpush1.bf16.msra.mxu1 %v10685_v55  ;;  %v10774_v54 = vld [vmem:[#allocation5 + $0x1e20] ss:$16 sps:$4 sm:$0xff]   ;;  %v10777_v55 = vld [vmem:[#allocation5 + $0x1e28] ss:$16 sps:$4 sm:$0xff]  }
 0x40b   : > { %7156 = vmatprep.subr.bf16.mxu0 %v10690_v56  ;;  %7812 = vmatprep.subr.bf16.mxu1 %v10693_v57  ;;  %v10785_v56 = vld [vmem:[#allocation5 + $0x1e4c] ss:$16 sps:$4 sm:$0xff]   ;;  %v10780_v57 = vld [vmem:[#allocation5 + $0x1e40] ss:$16 sps:$4 sm:$0xff]  }
 0x40e   : > { %7157 = vmatpush1.bf16.msra.mxu0 %v10688_v58  ;;  %7813 = vmatpush1.bf16.msra.mxu1 %v10691_v59  ;;  %v10783_v58 = vld [vmem:[#allocation5 + $0x1e48] ss:$16 sps:$4 sm:$0xff]   ;;  %v10788_v59 = vld [vmem:[#allocation5 + $0x1e64] ss:$16 sps:$4 sm:$0xff]  }
 0x40f   : > { %7158 = vmatprep.subr.bf16.mxu0 %v10696_v60  ;;  %7814 = vmatprep.subr.bf16.mxu1 %v10699_v61  ;;  %v10791_v60 = vld [vmem:[#allocation5 + $0x1e6c] ss:$16 sps:$4 sm:$0xff]   ;;  %v10786_v61 = vld [vmem:[#allocation5 + $0x1e60] ss:$16 sps:$4 sm:$0xff]  }
 0x412   : > { %7159 = vmatpush1.bf16.msra.mxu0 %v10694_v62  ;;  %7815 = vmatpush1.bf16.msra.mxu1 %v10697_v63  ;;  %v10789_v62 = vld [vmem:[#allocation5 + $0x1e68] ss:$16 sps:$4 sm:$0xff]   ;;  %v10794_v63 = vld [vmem:[#allocation5 + $0x1e84] ss:$16 sps:$4 sm:$0xff]  }
 0x413   : > { %7160 = vmatprep.subr.bf16.mxu0 %v10702_v0  ;;  %7816 = vmatprep.subr.bf16.mxu1 %v10705_v1  ;;  %v10797_v0 = vld [vmem:[#allocation5 + $0x1e8c] ss:$16 sps:$4 sm:$0xff]   ;;  %v10792_v1 = vld [vmem:[#allocation5 + $0x1e80] ss:$16 sps:$4 sm:$0xff]  }
 0x416   : > { %7161 = vmatpush1.bf16.msra.mxu0 %v10700_v2  ;;  %7817 = vmatpush1.bf16.msra.mxu1 %v10703_v3  ;;  %v10795_v2 = vld [vmem:[#allocation5 + $0x1e88] ss:$16 sps:$4 sm:$0xff]   ;;  %v10800_v3 = vld [vmem:[#allocation5 + $0x1ea4] ss:$16 sps:$4 sm:$0xff]  }
 0x417   : > { %7162 = vmatprep.subr.bf16.mxu0 %v10708_v4  ;;  %7818 = vmatprep.subr.bf16.mxu1 %v10711_v5  ;;  %v10803_v4 = vld [vmem:[#allocation5 + $0x1eac] ss:$16 sps:$4 sm:$0xff]   ;;  %v10798_v5 = vld [vmem:[#allocation5 + $0x1ea0] ss:$16 sps:$4 sm:$0xff]  }
 0x41a   : > { %7163 = vmatpush1.bf16.msra.mxu0 %v10706_v6  ;;  %7819 = vmatpush1.bf16.msra.mxu1 %v10709_v7  ;;  %v10801_v6 = vld [vmem:[#allocation5 + $0x1ea8] ss:$16 sps:$4 sm:$0xff]   ;;  %v10806_v7 = vld [vmem:[#allocation5 + $0x1ec4] ss:$16 sps:$4 sm:$0xff]  }
 0x41b   : > { %7164 = vmatprep.subr.bf16.mxu0 %v10714_v8  ;;  %7820 = vmatprep.subr.bf16.mxu1 %v10717_v9  ;;  %v10809_v8 = vld [vmem:[#allocation5 + $0x1ecc] ss:$16 sps:$4 sm:$0xff]   ;;  %v10804_v9 = vld [vmem:[#allocation5 + $0x1ec0] ss:$16 sps:$4 sm:$0xff]  }
 0x41e   : > { %7165 = vmatpush1.bf16.msra.mxu0 %v10712_v10  ;;  %7821 = vmatpush1.bf16.msra.mxu1 %v10715_v12  ;;  %v10807_v10 = vld [vmem:[#allocation5 + $0x1ec8] ss:$16 sps:$4 sm:$0xff]   ;;  %v10812_v12 = vld [vmem:[#allocation5 + $0x1ee4] ss:$16 sps:$4 sm:$0xff]  }
 0x41f   : > { %7166 = vmatprep.subr.bf16.mxu0 %v10720_v13  ;;  %7822 = vmatprep.subr.bf16.mxu1 %v10723_v15  ;;  %v10815_v13 = vld [vmem:[#allocation5 + $0x1eec] ss:$16 sps:$4 sm:$0xff]   ;;  %v10810_v15 = vld [vmem:[#allocation5 + $0x1ee0] ss:$16 sps:$4 sm:$0xff]  }
 0x422   : > { %7167 = vmatpush1.bf16.msra.mxu0 %v10718_v16  ;;  %7823 = vmatpush1.bf16.msra.mxu1 %v10721_v18  ;;  %v10813_v16 = vld [vmem:[#allocation5 + $0x1ee8] ss:$16 sps:$4 sm:$0xff]   ;;  %v10818_v18 = vld [vmem:[#allocation5 + $0x1f04] ss:$16 sps:$4 sm:$0xff]  }
 0x423   : > { %7168 = vmatprep.subr.bf16.mxu0 %v10726_v20  ;;  %7824 = vmatprep.subr.bf16.mxu1 %v10729_v11  ;;  %v10821_v20 = vld [vmem:[#allocation5 + $0x1f0c] ss:$16 sps:$4 sm:$0xff]   ;;  %v10816_v11 = vld [vmem:[#allocation5 + $0x1f00] ss:$16 sps:$4 sm:$0xff]  }
 0x426   : > { %7169 = vmatpush1.bf16.msra.mxu0 %v10724_v21  ;;  %7825 = vmatpush1.bf16.msra.mxu1 %v10727_v14  ;;  %v10819_v21 = vld [vmem:[#allocation5 + $0x1f08] ss:$16 sps:$4 sm:$0xff]   ;;  %v10824_v14 = vld [vmem:[#allocation5 + $0x1f24] ss:$16 sps:$4 sm:$0xff]  }
 0x427   : > { %7170 = vmatprep.subr.bf16.mxu0 %v10732_v23  ;;  %7826 = vmatprep.subr.bf16.mxu1 %v10735_v24  ;;  %v10827_v23 = vld [vmem:[#allocation5 + $0x1f2c] ss:$16 sps:$4 sm:$0xff]   ;;  %v10822_v24 = vld [vmem:[#allocation5 + $0x1f20] ss:$16 sps:$4 sm:$0xff]  }
 0x42a   : > { %7171 = vmatpush1.bf16.msra.mxu0 %v10730_v17  ;;  %7827 = vmatpush1.bf16.msra.mxu1 %v10733_v26  ;;  %v10825_v17 = vld [vmem:[#allocation5 + $0x1f28] ss:$16 sps:$4 sm:$0xff]   ;;  %v10830_v26 = vld [vmem:[#allocation5 + $0x1f44] ss:$16 sps:$4 sm:$0xff]  }
 0x42b   : > { %7172 = vmatprep.subr.bf16.mxu0 %v10738_v27  ;;  %7828 = vmatprep.subr.bf16.mxu1 %v10741_v19  ;;  %v10833_v27 = vld [vmem:[#allocation5 + $0x1f4c] ss:$16 sps:$4 sm:$0xff]   ;;  %v10828_v19 = vld [vmem:[#allocation5 + $0x1f40] ss:$16 sps:$4 sm:$0xff]  }
 0x42e   : > { %7173 = vmatpush1.bf16.msra.mxu0 %v10736_v29  ;;  %7829 = vmatpush1.bf16.msra.mxu1 %v10739_v30  ;;  %v10831_v29 = vld [vmem:[#allocation5 + $0x1f48] ss:$16 sps:$4 sm:$0xff]   ;;  %v10836_v30 = vld [vmem:[#allocation5 + $0x1f64] ss:$16 sps:$4 sm:$0xff]  }
 0x42f   : > { %7174 = vmatprep.subr.bf16.mxu0 %v10744_v22  ;;  %7830 = vmatprep.subr.bf16.mxu1 %v10747_v32  ;;  %v10839_v22 = vld [vmem:[#allocation5 + $0x1f6c] ss:$16 sps:$4 sm:$0xff]   ;;  %v10834_v32 = vld [vmem:[#allocation5 + $0x1f60] ss:$16 sps:$4 sm:$0xff]  }
 0x432   : > { %7175 = vmatpush1.bf16.msra.mxu0 %v10742_v33  ;;  %7831 = vmatpush1.bf16.msra.mxu1 %v10745_v34  ;;  %v10837_v33 = vld [vmem:[#allocation5 + $0x1f68] ss:$16 sps:$4 sm:$0xff]   ;;  %v10842_v34 = vld [vmem:[#allocation5 + $0x1f84] ss:$16 sps:$4 sm:$0xff]  }
 0x433   : > { %7176 = vmatprep.subr.bf16.mxu0 %v10750_v35  ;;  %7832 = vmatprep.subr.bf16.mxu1 %v10753_v36  ;;  %v10845_v35 = vld [vmem:[#allocation5 + $0x1f8c] ss:$16 sps:$4 sm:$0xff]   ;;  %v10840_v36 = vld [vmem:[#allocation5 + $0x1f80] ss:$16 sps:$4 sm:$0xff]  }
 0x436   : > { %7177 = vmatpush1.bf16.msra.mxu0 %v10748_v37  ;;  %7833 = vmatpush1.bf16.msra.mxu1 %v10751_v38  ;;  %v10843_v37 = vld [vmem:[#allocation5 + $0x1f88] ss:$16 sps:$4 sm:$0xff]   ;;  %v10848_v38 = vld [vmem:[#allocation5 + $0x1fa4] ss:$16 sps:$4 sm:$0xff]  }
 0x437   : > { %7178 = vmatprep.subr.bf16.mxu0 %v10756_v39  ;;  %7834 = vmatprep.subr.bf16.mxu1 %v10759_v40  ;;  %v10851_v39 = vld [vmem:[#allocation5 + $0x1fac] ss:$16 sps:$4 sm:$0xff]   ;;  %v10846_v40 = vld [vmem:[#allocation5 + $0x1fa0] ss:$16 sps:$4 sm:$0xff]  }
 0x43a   : > { %7179 = vmatpush1.bf16.msra.mxu0 %v10754_v41  ;;  %7835 = vmatpush1.bf16.msra.mxu1 %v10757_v42  ;;  %v10849_v41 = vld [vmem:[#allocation5 + $0x1fa8] ss:$16 sps:$4 sm:$0xff]   ;;  %v10854_v42 = vld [vmem:[#allocation5 + $0x1fc4] ss:$16 sps:$4 sm:$0xff]  }
 0x43b   : > { %7180 = vmatprep.subr.bf16.mxu0 %v10762_v43  ;;  %7836 = vmatprep.subr.bf16.mxu1 %v10765_v44  ;;  %v10857_v43 = vld [vmem:[#allocation5 + $0x1fcc] ss:$16 sps:$4 sm:$0xff]   ;;  %v10852_v44 = vld [vmem:[#allocation5 + $0x1fc0] ss:$16 sps:$4 sm:$0xff]  }
 0x43e   : > { %7181 = vmatpush1.bf16.msra.mxu0 %v10760_v45  ;;  %7837 = vmatpush1.bf16.msra.mxu1 %v10763_v46  ;;  %v10855_v45 = vld [vmem:[#allocation5 + $0x1fc8] ss:$16 sps:$4 sm:$0xff]   ;;  %v10860_v46 = vld [vmem:[#allocation5 + $0x1fe4] ss:$16 sps:$4 sm:$0xff]  }
 0x43f   : > { %7191 = vmatprep.subr.bf16.mxu0 %v10770_v47  ;;  %7847 = vmatprep.subr.bf16.mxu1 %v10773_v48  ;;  %v10863_v47 = vld [vmem:[#allocation5 + $0x1fec] ss:$16 sps:$4 sm:$0xff]   ;;  %v10858_v48 = vld [vmem:[#allocation5 + $0x1fe0] ss:$16 sps:$4 sm:$0xff]  }
 0x441   : > { %7183 = vmatmul.mubr.bf16.vlgmr.msra.gmra.mrb[0].mxu0 %v8071_v49  ;;  %7839 = vmatmul.mubr.bf16.vlgmr.msra.gmra.mrb[0].mxu1 %v8071_v49  ;;  %v10861_v49 = vld [vmem:[#allocation5 + $0x1fe8] ss:$16 sps:$4 sm:$0xff]  }
 0x442   : > { %7192 = vmatpush1.bf16.msra.mxu0 %v10768_v50  ;;  %7848 = vmatpush1.bf16.msra.mxu1 %v10771_v51  ;;  %v8073_v50 = vcombine.low %v11355_v31, %v11355_v31  ;;  %v1324_v51 = vlaneseq }
 0x443   : > { %7193 = vmatprep.subr.bf16.mxu0 %v10776_v52  ;;  %7849 = vmatprep.subr.bf16.mxu1 %v10779_v25 }
 0x444   : > { %7223 = vmatprep.mubr.bf16.mxu0 %v8074_v53  ;;  %7879 = vmatprep.mubr.bf16.mxu1 %v8074_v53  ;;  %v1325_v52 = vshrl.u32 %v1324_v51, 7 }
 0x446   : > { %7194 = vmatpush1.bf16.msra.mxu0 %v10774_v54  ;;  %7850 = vmatpush1.bf16.msra.mxu1 %v10777_v55  ;;  %v1326_v25 = vsub.s32 0, %v1325_v52  ;;  %v1334_v53 = vsub.s32 2, %v1325_v52  ;;  %v1322_v54 = vld [vmem:[#allocation7] sm:$0xf]  ;;  %v1330_v55 = vsub.s32 1, %v1325_v52 }
 0x447   : > { %7195 = vmatprep.subr.bf16.mxu0 %v10782_v28  ;;  %7851 = vmatprep.subr.bf16.mxu1 %v10785_v56  ;;  %v1338_v28 = vsub.s32 3, %v1325_v52 }
 0x448   : > { %v1327_v56 = vrot.slane %v1322_v54, %v1326_v25 }
 0x44a   : > { %7196 = vmatpush1.bf16.msra.mxu0 %v10780_v57  ;;  %7852 = vmatpush1.bf16.msra.mxu1 %v10783_v58  ;;  %v1335_v57 = vrot.slane %v1322_v54, %v1334_v53  ;;  %v7892_v58 = vld [vmem:[#allocation8] sm:$0xf] }
 0x44b   : > { %7197 = vmatprep.subr.bf16.mxu0 %v10788_v59  ;;  %7853 = vmatprep.subr.bf16.mxu1 %v10791_v60  ;;  %v1331_v59 = vrot.slane %v1322_v54, %v1330_v55  ;;  %v1339_v60 = vrot.slane %v1322_v54, %v1338_v28  ;;  %v7897_v31 = vrot.slane %v7892_v58, %v1326_v25 }
 0x44e   : > { %7198 = vmatpush1.bf16.msra.mxu0 %v10786_v61  ;;  %7854 = vmatpush1.bf16.msra.mxu1 %v10789_v62 }
 0x44f   : > { %7199 = vmatprep.subr.bf16.mxu0 %v10794_v63  ;;  %7855 = vmatprep.subr.bf16.mxu1 %v10797_v0 }
 0x452   : > { %7200 = vmatpush1.bf16.msra.mxu0 %v10792_v1  ;;  %7856 = vmatpush1.bf16.msra.mxu1 %v10795_v2 }
 0x453   : > { %7201 = vmatprep.subr.bf16.mxu0 %v10800_v3  ;;  %7857 = vmatprep.subr.bf16.mxu1 %v10803_v4  ;;  %v7901_v4 = vrot.slane %v7892_v58, %v1330_v55 }
 0x456   : > { %7202 = vmatpush1.bf16.msra.mxu0 %v10798_v5  ;;  %7858 = vmatpush1.bf16.msra.mxu1 %v10801_v6 }
 0x457   : > { %7203 = vmatprep.subr.bf16.mxu0 %v10806_v7  ;;  %7859 = vmatprep.subr.bf16.mxu1 %v10809_v8 }
 0x45a   : > { %7204 = vmatpush1.bf16.msra.mxu0 %v10804_v9  ;;  %7860 = vmatpush1.bf16.msra.mxu1 %v10807_v10 }
 0x45b   : > { %7205 = vmatprep.subr.bf16.mxu0 %v10812_v12  ;;  %7861 = vmatprep.subr.bf16.mxu1 %v10815_v13  ;;  %v7905_v13 = vrot.slane %v7892_v58, %v1334_v53 }
 0x45e   : > { %7206 = vmatpush1.bf16.msra.mxu0 %v10810_v15  ;;  %7862 = vmatpush1.bf16.msra.mxu1 %v10813_v16 }
 0x45f   : > { %7207 = vmatprep.subr.bf16.mxu0 %v10818_v18  ;;  %7863 = vmatprep.subr.bf16.mxu1 %v10821_v20 }
 0x462   : > { %7208 = vmatpush1.bf16.msra.mxu0 %v10816_v11  ;;  %7864 = vmatpush1.bf16.msra.mxu1 %v10819_v21  ;;  %v7909_v11 = vrot.slane %v7892_v58, %v1338_v28 }
 0x463   : > { %7209 = vmatprep.subr.bf16.mxu0 %v10824_v14  ;;  %7865 = vmatprep.subr.bf16.mxu1 %v10827_v23 }
 0x466   : > { %7210 = vmatpush1.bf16.msra.mxu0 %v10822_v24  ;;  %7866 = vmatpush1.bf16.msra.mxu1 %v10825_v17 }
 0x467   : > { %7211 = vmatprep.subr.bf16.mxu0 %v10830_v26  ;;  %7867 = vmatprep.subr.bf16.mxu1 %v10833_v27  ;;  %v7924_v26 = vstv %s7923_s24 }
 0x46a   : > { %7212 = vmatpush1.bf16.msra.mxu0 %v10828_v19  ;;  %7868 = vmatpush1.bf16.msra.mxu1 %v10831_v29 }
 0x46b   : > { %7213 = vmatprep.subr.bf16.mxu0 %v10836_v30  ;;  %7869 = vmatprep.subr.bf16.mxu1 %v10839_v22 }
 0x46e   : > { %7214 = vmatpush1.bf16.msra.mxu0 %v10834_v32  ;;  %7870 = vmatpush1.bf16.msra.mxu1 %v10837_v33 }
 0x46f   : > { %7215 = vmatprep.subr.bf16.mxu0 %v10842_v34  ;;  %7871 = vmatprep.subr.bf16.mxu1 %v10845_v35 }
 0x472   : > { %7216 = vmatpush1.bf16.msra.mxu0 %v10840_v36  ;;  %7872 = vmatpush1.bf16.msra.mxu1 %v10843_v37 }
 0x473   : > { %7217 = vmatprep.subr.bf16.mxu0 %v10848_v38  ;;  %7873 = vmatprep.subr.bf16.mxu1 %v10851_v39 }
 0x476   : > { %7218 = vmatpush1.bf16.msra.mxu0 %v10846_v40  ;;  %7874 = vmatpush1.bf16.msra.mxu1 %v10849_v41 }
 0x477   : > { %7219 = vmatprep.subr.bf16.mxu0 %v10854_v42  ;;  %7875 = vmatprep.subr.bf16.mxu1 %v10857_v43 }
 0x47a   : > { %7220 = vmatpush1.bf16.msra.mxu0 %v10852_v44  ;;  %7876 = vmatpush1.bf16.msra.mxu1 %v10855_v45 }
 0x47b   : > { %7221 = vmatprep.subr.bf16.mxu0 %v10860_v46  ;;  %7877 = vmatprep.subr.bf16.mxu1 %v10863_v47 }
 0x47e   : > { %7222 = vmatpush1.bf16.msra.mxu0 %v10858_v48  ;;  %7878 = vmatpush1.bf16.msra.mxu1 %v10861_v49 }
 0x481   : > { %7224 = vmatmul.mubr.bf16.vlgmr.msra.gmra.mrb[0].mxu0 %v8073_v50  ;;  %7880 = vmatmul.mubr.bf16.vlgmr.msra.gmra.mrb[0].mxu1 %v8073_v50 }
 0x554   : > { %v7225_v61 = vpop.f32.mrb[0].mxu0  ;;  %v7881_v62 = vpop.f32.mrb[0].mxu1 }
 0x555   : > { %v9102_v63 = vadd.f32 %v7225_v61, %v1327_v56  ;;  %v9104_v0 = vadd.f32 %v7881_v62, %v1335_v57  ;;  %v7227_v1 = vpop.f32.mrb[1].mxu0  ;;  %v7883_v2 = vpop.f32.mrb[1].mxu1 }
 0x556   : > { %v9103_v3 = vadd.f32 %v7227_v1, %v1331_v59  ;;  %v9105_v5 = vadd.f32 %v7883_v2, %v1339_v60  ;;  %v7229_v6 = vpop.f32.mrb[2].mxu0  ;;  %v7885_v7 = vpop.f32.mrb[2].mxu1 }
 0x557   : > { %v7888_v8 = vmax.f32 %v9102_v63, 0.0  ;;  %v7230_v9 = vpop.f32.mrb[3].mxu0  ;;  %v7886_v10 = vpop.f32.mrb[3].mxu1  ;;  %v7890_v12 = vmax.f32 %v9104_v0, 0.0 }
 0x558   : > { %v7889_v15 = vmax.f32 %v9103_v3, 0.0  ;;  %v7891_v20 = vmax.f32 %v9105_v5, 0.0 }
 0x559   : > { %v7914_v16 = vmul.f32 %v7897_v31, %v7888_v8  ;;  %v7916_v21 = vmul.f32 %v7905_v13, %v7890_v12 }
 0x55a   : > { %v7915_v18 = vmul.f32 %v7901_v4, %v7889_v15  ;;  %v7917_v23 = vmul.f32 %v7909_v11, %v7891_v20 }
 0x55c   : > { %v7918_v14 = vadd.f32 %v7915_v18, %v7914_v16 }
 0x55e   : > { %v7919_v24 = vadd.f32 %v7918_v14, %v7916_v21 }
 0x560   : > { %v7920_v17 = vadd.f32 %v7919_v24, %v7917_v23 }
 0x562   : > { %7921 = vadd.xlane.f32.xlu0 %v7920_v17 }
 0x5ef   : > { %v7922_v27 = vpop.xlane.xlu0 %7921 }
 0x5f0   : > { %v7925_v19 = vadd.f32 %v7924_v26, %v7922_v27 }
 0x5f2   : > { %v7926_v29 = vsub.f32 0.0, %v7925_v19 }
 0x5f4   : > { %v7927_v30 = vmul.f32 1.442695, %v7926_v29 }
 0x5f6   : > { %10866 = vpow2.f32 %v7927_v30 }
 0x600   : > { %v10867_v22 = vpop.eup %10866 }
 0x601   : > { %v7929_v32 = vadd.f32 1.0, %v10867_v22 }
 0x603   : > { %10868 = vrcp.f32 %v7929_v32 }
 0x60d   : > { %v10869_v33 = vpop.eup %10868 }
 0x60e   : > { %7933 = vst.msk [vmem:[%s281_s16] sm:$0xff] %vm7932_vm0, %v10869_v33 }
 0x60f PF: > { %p18_p9 = scmp.ge.s32.totalorder %s11188_s13, 5   ;;  %s11399_s20 = smov %s11018_s21 }
 0x610   : > { %s11400_s21 = smov %s11022_s22  ;;  %s11401_s22 = smov %s11198_s28 }
 0x611   : > { %s11402_s23 = smov %s11188_s13  ;;  %20 = sbr.rel (!%p18_p9) target bundleno = 7 (0x7), region = 92 }
 0x618   :  { %7953 = vsyncpa [#allocation4], 1 }
 0x619   :  { %7955 = vsyncpa [#allocation4 + $0x1], 1 }
 0x61a   :  { %7956 = vsyncpa [#allocation6], 1 }
 0x61b   :  { %7957 = vsyncpa [#allocation9], 1 }

</bundles_post_ra>
